<compile_context>
chip_gen: v6e
topology: v6e:2x2x1
jax: 0.10.0
libtpu: 0.0.40
codegen_flags: <defaults>
</compile_context>

<pallas_src>
import numpy as np
import jax
import jax.numpy as jnp
from jax import lax
from jax.experimental import pallas as pl
from jax.experimental.pallas import tpu as pltpu


# (Cin, Cout) per layer of HybridAutoencoder_6.
_ENC = [(2, 10), (10, 20), (20, 40)]     # stride-2 Conv2d
_DEC = [(40, 20), (20, 10), (10, 2)]     # stride-2 ConvTranspose2d


# ---------------------------------------------------------------------------
# One-time parameter packing (hoisted out of the per-forward path).
# ---------------------------------------------------------------------------
def _pack_conv_s2(w, b, h_in, w_in):
    """Conv2d(k=3, s=2, p=1).  w: (Cout, Cin, 3, 3) torch layout.
    Returns Wbig (3, Win*Cin, Wo*Cout), R (3, Ho, Hin), bias (1, Wo*Cout)."""
    w = np.asarray(w, np.float32)
    b = np.asarray(b, np.float32)
    cout, cin = int(w.shape[0]), int(w.shape[1])
    ho, wo = h_in // 2, w_in // 2
    wbig = np.zeros((3, w_in * cin, wo * cout), np.float32)
    for dh in range(3):
        for dw in range(3):
            for j in range(wo):
                col = 2 * j + dw - 1            # unpadded input column
                if 0 <= col < w_in:
                    wbig[dh, col * cin:(col + 1) * cin,
                         j * cout:(j + 1) * cout] += w[:, :, dh, dw].T
    rsel = np.zeros((3, ho, h_in), np.float32)
    for dh in range(3):
        for i in range(ho):
            h = 2 * i + dh - 1                  # unpadded input row
            if 0 <= h < h_in:
                rsel[dh, i, h] = 1.0
    bt = np.tile(b, wo)[None, :].astype(np.float32)
    return wbig, rsel, bt


def _pack_convT_s2(w_t, b, h_in, w_in):
    """ConvTranspose2d(k=3, s=2, p=1, output_padding=1), subpixel form.
    w_t: (Cin, Cout, 3, 3) torch layout.
    Returns V (3, Win*Cin, 2*Win*Cout) with V[0]=even rows, V[1]=odd rows from
    x[i], V[2]=odd rows from x[i+1]; E (2, 2*Hin, Hin) row interleavers;
    bias (1, 2*Win*Cout)."""
    w_t = np.asarray(w_t, np.float32)
    b = np.asarray(b, np.float32)
    cin, cout = int(w_t.shape[0]), int(w_t.shape[1])
    v = np.zeros((3, w_in * cin, 2 * w_in * cout), np.float32)

    def add(idx, col, ow, kh, kw):
        if 0 <= col < w_in:
            v[idx, col * cin:(col + 1) * cin,
              ow * cout:(ow + 1) * cout] += w_t[:, :, kh, kw]

    for j in range(w_in):
        # even output rows (oh = 2i): kh = 1
        add(0, j,     2 * j,     1, 1)
        add(0, j + 1, 2 * j + 1, 1, 0)
        add(0, j,     2 * j + 1, 1, 2)
        # odd output rows (oh = 2i+1), contribution from x[i]: kh = 2
        add(1, j,     2 * j,     2, 1)
        add(1, j + 1, 2 * j + 1, 2, 0)
        add(1, j,     2 * j + 1, 2, 2)
        # odd output rows, contribution from x[i+1]: kh = 0
        add(2, j,     2 * j,     0, 1)
        add(2, j + 1, 2 * j + 1, 0, 0)
        add(2, j,     2 * j + 1, 0, 2)
    e = np.zeros((2, 2 * h_in, h_in), np.float32)
    for i in range(h_in):
        e[0, 2 * i, i] = 1.0
        e[1, 2 * i + 1, i] = 1.0
    bt = np.tile(b, 2 * w_in)[None, :].astype(np.float32)
    return v, e, bt


def init_params(key):
    """Raw parameters in PyTorch layout."""
    def w(key, shape, scale=0.1):
        return scale * jax.random.normal(key, shape, jnp.float32)

    ks = jax.random.split(key, 12)
    return {
        "e1w": w(ks[0], (10, 2, 3, 3)),  "e1b": w(ks[1], (10,)),
        "e2w": w(ks[2], (20, 10, 3, 3)), "e2b": w(ks[3], (20,)),
        "e3w": w(ks[4], (40, 20, 3, 3)), "e3b": w(ks[5], (40,)),
        "d1w": w(ks[6], (40, 20, 3, 3)), "d1b": w(ks[7], (20,)),
        "d2w": w(ks[8], (20, 10, 3, 3)), "d2b": w(ks[9], (10,)),
        "d3w": w(ks[10], (10, 2, 3, 3)), "d3b": w(ks[11], (2,)),
    }


def pack_params(params, H=16, W=16):
    """Pack raw params into the matrices the fused kernel consumes (once)."""
    enc_hw = [(H, W), (H // 2, W // 2), (H // 4, W // 4)]
    dec_hw = [(H // 8, W // 8), (H // 4, W // 4), (H // 2, W // 2)]
    packed = []
    for (h, w_), name in zip(enc_hw, ("e1", "e2", "e3")):
        packed += list(_pack_conv_s2(params[name + "w"], params[name + "b"], h, w_))
    for (h, w_), name in zip(dec_hw, ("d1", "d2", "d3")):
        packed += list(_pack_convT_s2(params[name + "w"], params[name + "b"], h, w_))
    return [jnp.asarray(a) for a in packed]


# ---------------------------------------------------------------------------
# Fused forward pass (single pallas_call).
# ---------------------------------------------------------------------------
@jax.jit
def hybrid_autoencoder_6_forward(x_complex, packed):
    """x_complex: (1, N, H, W) complex64 -> (1, N, H, W) complex64."""
    _, N, H, W = x_complex.shape
    assert H % 8 == 0 and W % 8 == 0
    c1o, c2o, c3o = _ENC[0][1], _ENC[1][1], _ENC[2][1]
    d1o, d2o = _DEC[0][1], _DEC[1][1]

    # squeeze(0) + ComplexToChannels, channels-last, flattened to (N, H, W*2).
    x = jnp.squeeze(x_complex, axis=0)
    x_in = jnp.stack([x.real, x.imag], axis=-1).reshape(N, H, 2 * W)

    def kernel(x_ref,
               w_e1, r_e1, b_e1, w_e2, r_e2, b_e2, w_e3, r_e3, b_e3,
               v_d1, e_d1, b_d1, v_d2, e_d2, b_d2, v_d3, e_d3, b_d3,
               out_ref, a1, a2, a3, a4, a5):
        f32 = jnp.float32

        def mm(a, b):
            return jnp.dot(a, b, preferred_element_type=f32)

        # Conv-transpose inputs carry one zero pad row at the bottom.
        a3[...] = jnp.zeros(a3.shape, f32)
        a4[...] = jnp.zeros(a4.shape, f32)
        a5[...] = jnp.zeros(a5.shape, f32)

        # ---------------- encoder: 3x (stride-2 conv + ReLU) ----------------
        enc_layers = [
            (x_ref, w_e1, r_e1, b_e1, a1, H // 2),
            (a1,    w_e2, r_e2, b_e2, a2, H // 4),
            (a2,    w_e3, r_e3, b_e3, a3, H // 8),
        ]
        for src, wb, rs, bias, dst, rows_out in enc_layers:
            for n in range(N):
                x2d = src[n]                          # (H_in, W_in*Cin)
                acc = mm(mm(rs[0], x2d), wb[0])
                acc = acc + mm(mm(rs[1], x2d), wb[1])
                acc = acc + mm(mm(rs[2], x2d), wb[2])
                y2d = jnp.maximum(acc + bias[...], 0.0)
                dst[n, 0:rows_out, :] = y2d

        # ---------------- decoder: 3x (stride-2 convT + ReLU) ---------------
        dec_layers = [
            (a3, v_d1, e_d1, b_d1, a4,      H // 8),
            (a4, v_d2, e_d2, b_d2, a5,      H // 4),
            (a5, v_d3, e_d3, b_d3, out_ref, H // 2),
        ]
        for src, v, ev, bias, dst, h_in in dec_layers:
            for n in range(N):
                xc = src[n, 0:h_in, :]                # rows i
                xs = src[n, 1:h_in + 1, :]            # rows i+1 (last = zero pad)
                even_rows = mm(xc, v[0])
                odd_rows = mm(xc, v[1]) + mm(xs, v[2])
                full = mm(ev[0], even_rows) + mm(ev[1], odd_rows)
                y2d = jnp.maximum(full + bias[...], 0.0)
                dst[n, 0:2 * h_in, :] = y2d

    def full_spec(shape):
        if len(shape) == 2:
            return pl.BlockSpec(shape, lambda: (0, 0))
        return pl.BlockSpec(shape, lambda: (0, 0, 0))

    operands = [x_in] + list(packed)
    out = pl.pallas_call(
        kernel,
        out_shape=jax.ShapeDtypeStruct((N, H, 2 * W), jnp.float32),
        in_specs=[full_spec(op.shape) for op in operands],
        out_specs=full_spec((N, H, 2 * W)),
        scratch_shapes=[
            pltpu.VMEM((N, H // 2, (W // 2) * c1o), jnp.float32),       # e1 out
            pltpu.VMEM((N, H // 4, (W // 4) * c2o), jnp.float32),       # e2 out
            pltpu.VMEM((N, H // 8 + 1, (W // 8) * c3o), jnp.float32),   # e3 out (+pad row)
            pltpu.VMEM((N, H // 4 + 1, (W // 4) * d1o), jnp.float32),   # d1 out (+pad row)
            pltpu.VMEM((N, H // 2 + 1, (W // 2) * d2o), jnp.float32),   # d2 out (+pad row)
        ],
    )(*operands)

    # ChannelsToComplex + unsqueeze(0)
    y = out.reshape(N, H, W, 2)
    return lax.complex(y[..., 0], y[..., 1])[None]


# ---------------------------------------------------------------------------
# Pure-JAX (XLA conv) reference for correctness check.
# ---------------------------------------------------------------------------
def _ref_conv(x, w, b, stride):
    y = lax.conv_general_dilated(
        x, w, window_strides=(stride, stride), padding=[(1, 1), (1, 1)],
        dimension_numbers=("NCHW", "OIHW", "NCHW"),
        precision=lax.Precision.HIGHEST)
    return jnp.maximum(y + b[None, :, None, None], 0.0)


def _ref_convT(x, w_t, b):
    w_conv = jnp.flip(w_t, axis=(2, 3)).transpose(1, 0, 2, 3)
    y = lax.conv_general_dilated(
        x, w_conv, window_strides=(1, 1), padding=[(1, 2), (1, 2)],
        lhs_dilation=(2, 2), dimension_numbers=("NCHW", "OIHW", "NCHW"),
        precision=lax.Precision.HIGHEST)
    return jnp.maximum(y + b[None, :, None, None], 0.0)


def reference_forward(x_complex, p):
    x = jnp.squeeze(x_complex, axis=0)
    x = jnp.stack([x.real, x.imag], axis=1)
    x = _ref_conv(x, p["e1w"], p["e1b"], 2)
    x = _ref_conv(x, p["e2w"], p["e2b"], 2)
    x = _ref_conv(x, p["e3w"], p["e3b"], 2)
    x = _ref_convT(x, p["d1w"], p["d1b"])
    x = _ref_convT(x, p["d2w"], p["d2b"])
    x = _ref_convT(x, p["d3w"], p["d3b"])
    return lax.complex(x[:, 0], x[:, 1])[None]


if __name__ == "__main__":
    key = jax.random.PRNGKey(0)
    k_par, k_re, k_im = jax.random.split(key, 3)

    params = init_params(k_par)
    packed = pack_params(params, H=16, W=16)

    N, H, W = 2, 16, 16
    x_re = jax.random.normal(k_re, (1, N, H, W), jnp.float32)
    x_im = jax.random.normal(k_im, (1, N, H, W), jnp.float32)
    x = lax.complex(x_re, x_im)                      # (1, 2, 16, 16) complex64

    out = jax.block_until_ready(hybrid_autoencoder_6_forward(x, packed))
    assert out.shape == (1, N, H, W) and out.dtype == jnp.complex64

    ref = jax.block_until_ready(reference_forward(x, params))
    np.testing.assert_allclose(np.asarray(out), np.asarray(ref),
                               rtol=2e-4, atol=2e-4)

    print("KERNEL_OK")
</pallas_src>

<mosaic_0001>
module attributes {stable_mosaic.version = 11 : i64} {
  func.func @kernel(%arg0: memref<2x16x32xf32, #tpu.memory_space<vmem>>, %arg1: memref<3x32x80xf32, #tpu.memory_space<vmem>>, %arg2: memref<3x8x16xf32, #tpu.memory_space<vmem>>, %arg3: memref<1x80xf32, #tpu.memory_space<vmem>>, %arg4: memref<3x80x80xf32, #tpu.memory_space<vmem>>, %arg5: memref<3x4x8xf32, #tpu.memory_space<vmem>>, %arg6: memref<1x80xf32, #tpu.memory_space<vmem>>, %arg7: memref<3x80x80xf32, #tpu.memory_space<vmem>>, %arg8: memref<3x2x4xf32, #tpu.memory_space<vmem>>, %arg9: memref<1x80xf32, #tpu.memory_space<vmem>>, %arg10: memref<3x80x80xf32, #tpu.memory_space<vmem>>, %arg11: memref<2x4x2xf32, #tpu.memory_space<vmem>>, %arg12: memref<1x80xf32, #tpu.memory_space<vmem>>, %arg13: memref<3x80x80xf32, #tpu.memory_space<vmem>>, %arg14: memref<2x8x4xf32, #tpu.memory_space<vmem>>, %arg15: memref<1x80xf32, #tpu.memory_space<vmem>>, %arg16: memref<3x80x32xf32, #tpu.memory_space<vmem>>, %arg17: memref<2x16x8xf32, #tpu.memory_space<vmem>>, %arg18: memref<1x32xf32, #tpu.memory_space<vmem>>, %arg19: memref<2x16x32xf32, #tpu.memory_space<vmem>>, %arg20: memref<2x8x80xf32, #tpu.memory_space<vmem>>, %arg21: memref<2x4x80xf32, #tpu.memory_space<vmem>>, %arg22: memref<2x3x80xf32, #tpu.memory_space<vmem>>, %arg23: memref<2x5x80xf32, #tpu.memory_space<vmem>>, %arg24: memref<2x9x80xf32, #tpu.memory_space<vmem>>) attributes {dimension_semantics = [], scalar_prefetch = 0 : i64, scratch_operands = 5 : i64, tpu.core_type = #tpu.core_type<tc>} {
    %cst = arith.constant 0.000000e+00 : f32
    %0 = vector.broadcast %cst : f32 to vector<2x3x80xf32>
    %c0 = arith.constant 0 : index
    %c0_0 = arith.constant 0 : index
    %c0_1 = arith.constant 0 : index
    %1 = vector.load %arg22[%c0, %c0_0, %c0_1] : memref<2x3x80xf32, #tpu.memory_space<vmem>>, vector<2x3x80xf32>
    tpu.vector_store %arg22[%c0, %c0_0, %c0_1], %0 {strides = array<i32>} : memref<2x3x80xf32, #tpu.memory_space<vmem>>, vector<2x3x80xf32>,
    %cst_2 = arith.constant 0.000000e+00 : f32
    %2 = vector.broadcast %cst_2 : f32 to vector<2x5x80xf32>
    %c0_3 = arith.constant 0 : index
    %c0_4 = arith.constant 0 : index
    %c0_5 = arith.constant 0 : index
    %3 = vector.load %arg23[%c0_3, %c0_4, %c0_5] : memref<2x5x80xf32, #tpu.memory_space<vmem>>, vector<2x5x80xf32>
    tpu.vector_store %arg23[%c0_3, %c0_4, %c0_5], %2 {strides = array<i32>} : memref<2x5x80xf32, #tpu.memory_space<vmem>>, vector<2x5x80xf32>,
    %cst_6 = arith.constant 0.000000e+00 : f32
    %4 = vector.broadcast %cst_6 : f32 to vector<2x9x80xf32>
    %c0_7 = arith.constant 0 : index
    %c0_8 = arith.constant 0 : index
    %c0_9 = arith.constant 0 : index
    %5 = vector.load %arg24[%c0_7, %c0_8, %c0_9] : memref<2x9x80xf32, #tpu.memory_space<vmem>>, vector<2x9x80xf32>
    tpu.vector_store %arg24[%c0_7, %c0_8, %c0_9], %4 {strides = array<i32>} : memref<2x9x80xf32, #tpu.memory_space<vmem>>, vector<2x9x80xf32>,
    %c0_10 = arith.constant 0 : index
    %c0_11 = arith.constant 0 : index
    %c0_12 = arith.constant 0 : index
    %6 = vector.load %arg0[%c0_10, %c0_11, %c0_12] : memref<2x16x32xf32, #tpu.memory_space<vmem>>, vector<1x16x32xf32>
    %7 = vector.shape_cast %6 : vector<1x16x32xf32> to vector<16x32xf32>
    %c0_13 = arith.constant 0 : index
    %c0_14 = arith.constant 0 : index
    %c0_15 = arith.constant 0 : index
    %8 = vector.load %arg2[%c0_13, %c0_14, %c0_15] : memref<3x8x16xf32, #tpu.memory_space<vmem>>, vector<1x8x16xf32>
    %9 = vector.shape_cast %8 : vector<1x8x16xf32> to vector<8x16xf32>
    %cst_16 = arith.constant dense<0.000000e+00> : vector<8x32xf32>
    %10 = tpu.matmul %9, %7, %cst_16 {dimension_numbers = #tpu.dot_dimension_numbers<[1], [0], [0], [1], [0, 0, 1, 1], [], []>} : vector<8x16xf32>, vector<16x32xf32>, vector<8x32xf32> -> vector<8x32xf32>
    %c0_17 = arith.constant 0 : index
    %c0_18 = arith.constant 0 : index
    %c0_19 = arith.constant 0 : index
    %11 = vector.load %arg1[%c0_17, %c0_18, %c0_19] : memref<3x32x80xf32, #tpu.memory_space<vmem>>, vector<1x32x80xf32>
    %12 = vector.shape_cast %11 : vector<1x32x80xf32> to vector<32x80xf32>
    %cst_20 = arith.constant dense<0.000000e+00> : vector<8x80xf32>
    %13 = tpu.matmul %10, %12, %cst_20 {dimension_numbers = #tpu.dot_dimension_numbers<[1], [0], [0], [1], [0, 0, 1, 1], [], []>} : vector<8x32xf32>, vector<32x80xf32>, vector<8x80xf32> -> vector<8x80xf32>
    %c1 = arith.constant 1 : index
    %c0_21 = arith.constant 0 : index
    %c0_22 = arith.constant 0 : index
    %14 = vector.load %arg2[%c1, %c0_21, %c0_22] : memref<3x8x16xf32, #tpu.memory_space<vmem>>, vector<1x8x16xf32>
    %15 = vector.shape_cast %14 : vector<1x8x16xf32> to vector<8x16xf32>
    %cst_23 = arith.constant dense<0.000000e+00> : vector<8x32xf32>
    %16 = tpu.matmul %15, %7, %cst_23 {dimension_numbers = #tpu.dot_dimension_numbers<[1], [0], [0], [1], [0, 0, 1, 1], [], []>} : vector<8x16xf32>, vector<16x32xf32>, vector<8x32xf32> -> vector<8x32xf32>
    %c1_24 = arith.constant 1 : index
    %c0_25 = arith.constant 0 : index
    %c0_26 = arith.constant 0 : index
    %17 = vector.load %arg1[%c1_24, %c0_25, %c0_26] : memref<3x32x80xf32, #tpu.memory_space<vmem>>, vector<1x32x80xf32>
    %18 = vector.shape_cast %17 : vector<1x32x80xf32> to vector<32x80xf32>
    %cst_27 = arith.constant dense<0.000000e+00> : vector<8x80xf32>
    %19 = tpu.matmul %16, %18, %cst_27 {dimension_numbers = #tpu.dot_dimension_numbers<[1], [0], [0], [1], [0, 0, 1, 1], [], []>} : vector<8x32xf32>, vector<32x80xf32>, vector<8x80xf32> -> vector<8x80xf32>
    %20 = arith.addf %13, %19 : vector<8x80xf32>
    %c2 = arith.constant 2 : index
    %c0_28 = arith.constant 0 : index
    %c0_29 = arith.constant 0 : index
    %21 = vector.load %arg2[%c2, %c0_28, %c0_29] : memref<3x8x16xf32, #tpu.memory_space<vmem>>, vector<1x8x16xf32>
    %22 = vector.shape_cast %21 : vector<1x8x16xf32> to vector<8x16xf32>
    %cst_30 = arith.constant dense<0.000000e+00> : vector<8x32xf32>
    %23 = tpu.matmul %22, %7, %cst_30 {dimension_numbers = #tpu.dot_dimension_numbers<[1], [0], [0], [1], [0, 0, 1, 1], [], []>} : vector<8x16xf32>, vector<16x32xf32>, vector<8x32xf32> -> vector<8x32xf32>
    %c2_31 = arith.constant 2 : index
    %c0_32 = arith.constant 0 : index
    %c0_33 = arith.constant 0 : index
    %24 = vector.load %arg1[%c2_31, %c0_32, %c0_33] : memref<3x32x80xf32, #tpu.memory_space<vmem>>, vector<1x32x80xf32>
    %25 = vector.shape_cast %24 : vector<1x32x80xf32> to vector<32x80xf32>
    %cst_34 = arith.constant dense<0.000000e+00> : vector<8x80xf32>
    %26 = tpu.matmul %23, %25, %cst_34 {dimension_numbers = #tpu.dot_dimension_numbers<[1], [0], [0], [1], [0, 0, 1, 1], [], []>} : vector<8x32xf32>, vector<32x80xf32>, vector<8x80xf32> -> vector<8x80xf32>
    %27 = arith.addf %20, %26 : vector<8x80xf32>
    %c0_35 = arith.constant 0 : index
    %c0_36 = arith.constant 0 : index
    %28 = vector.load %arg3[%c0_35, %c0_36] : memref<1x80xf32, #tpu.memory_space<vmem>>, vector<1x80xf32>
    %29 = vector.broadcast %28 : vector<1x80xf32> to vector<8x80xf32>
    %30 = arith.addf %27, %29 : vector<8x80xf32>
    %cst_37 = arith.constant 0.000000e+00 : f32
    %31 = vector.broadcast %cst_37 : f32 to vector<8x80xf32>
    %32 = arith.maximumf %30, %31 : vector<8x80xf32>
    %c0_38 = arith.constant 0 : index
    %c0_39 = arith.constant 0 : index
    %c0_40 = arith.constant 0 : index
    %33 = vector.load %arg20[%c0_38, %c0_39, %c0_40] : memref<2x8x80xf32, #tpu.memory_space<vmem>>, vector<1x8x80xf32>
    %34 = vector.shape_cast %33 : vector<1x8x80xf32> to vector<8x80xf32>
    %35 = vector.shape_cast %32 : vector<8x80xf32> to vector<1x8x80xf32>
    tpu.vector_store %arg20[%c0_38, %c0_39, %c0_40], %35 {strides = array<i32>} : memref<2x8x80xf32, #tpu.memory_space<vmem>>, vector<1x8x80xf32>,
    %c1_41 = arith.constant 1 : index
    %c0_42 = arith.constant 0 : index
    %c0_43 = arith.constant 0 : index
    %36 = vector.load %arg0[%c1_41, %c0_42, %c0_43] : memref<2x16x32xf32, #tpu.memory_space<vmem>>, vector<1x16x32xf32>
    %37 = vector.shape_cast %36 : vector<1x16x32xf32> to vector<16x32xf32>
    %c0_44 = arith.constant 0 : index
    %c0_45 = arith.constant 0 : index
    %c0_46 = arith.constant 0 : index
    %38 = vector.load %arg2[%c0_44, %c0_45, %c0_46] : memref<3x8x16xf32, #tpu.memory_space<vmem>>, vector<1x8x16xf32>
    %39 = vector.shape_cast %38 : vector<1x8x16xf32> to vector<8x16xf32>
    %cst_47 = arith.constant dense<0.000000e+00> : vector<8x32xf32>
    %40 = tpu.matmul %39, %37, %cst_47 {dimension_numbers = #tpu.dot_dimension_numbers<[1], [0], [0], [1], [0, 0, 1, 1], [], []>} : vector<8x16xf32>, vector<16x32xf32>, vector<8x32xf32> -> vector<8x32xf32>
    %c0_48 = arith.constant 0 : index
    %c0_49 = arith.constant 0 : index
    %c0_50 = arith.constant 0 : index
    %41 = vector.load %arg1[%c0_48, %c0_49, %c0_50] : memref<3x32x80xf32, #tpu.memory_space<vmem>>, vector<1x32x80xf32>
    %42 = vector.shape_cast %41 : vector<1x32x80xf32> to vector<32x80xf32>
    %cst_51 = arith.constant dense<0.000000e+00> : vector<8x80xf32>
    %43 = tpu.matmul %40, %42, %cst_51 {dimension_numbers = #tpu.dot_dimension_numbers<[1], [0], [0], [1], [0, 0, 1, 1], [], []>} : vector<8x32xf32>, vector<32x80xf32>, vector<8x80xf32> -> vector<8x80xf32>
    %c1_52 = arith.constant 1 : index
    %c0_53 = arith.constant 0 : index
    %c0_54 = arith.constant 0 : index
    %44 = vector.load %arg2[%c1_52, %c0_53, %c0_54] : memref<3x8x16xf32, #tpu.memory_space<vmem>>, vector<1x8x16xf32>
    %45 = vector.shape_cast %44 : vector<1x8x16xf32> to vector<8x16xf32>
    %cst_55 = arith.constant dense<0.000000e+00> : vector<8x32xf32>
    %46 = tpu.matmul %45, %37, %cst_55 {dimension_numbers = #tpu.dot_dimension_numbers<[1], [0], [0], [1], [0, 0, 1, 1], [], []>} : vector<8x16xf32>, vector<16x32xf32>, vector<8x32xf32> -> vector<8x32xf32>
    %c1_56 = arith.constant 1 : index
    %c0_57 = arith.constant 0 : index
    %c0_58 = arith.constant 0 : index
    %47 = vector.load %arg1[%c1_56, %c0_57, %c0_58] : memref<3x32x80xf32, #tpu.memory_space<vmem>>, vector<1x32x80xf32>
    %48 = vector.shape_cast %47 : vector<1x32x80xf32> to vector<32x80xf32>
    %cst_59 = arith.constant dense<0.000000e+00> : vector<8x80xf32>
    %49 = tpu.matmul %46, %48, %cst_59 {dimension_numbers = #tpu.dot_dimension_numbers<[1], [0], [0], [1], [0, 0, 1, 1], [], []>} : vector<8x32xf32>, vector<32x80xf32>, vector<8x80xf32> -> vector<8x80xf32>
    %50 = arith.addf %43, %49 : vector<8x80xf32>
    %c2_60 = arith.constant 2 : index
    %c0_61 = arith.constant 0 : index
    %c0_62 = arith.constant 0 : index
    %51 = vector.load %arg2[%c2_60, %c0_61, %c0_62] : memref<3x8x16xf32, #tpu.memory_space<vmem>>, vector<1x8x16xf32>
    %52 = vector.shape_cast %51 : vector<1x8x16xf32> to vector<8x16xf32>
    %cst_63 = arith.constant dense<0.000000e+00> : vector<8x32xf32>
    %53 = tpu.matmul %52, %37, %cst_63 {dimension_numbers = #tpu.dot_dimension_numbers<[1], [0], [0], [1], [0, 0, 1, 1], [], []>} : vector<8x16xf32>, vector<16x32xf32>, vector<8x32xf32> -> vector<8x32xf32>
    %c2_64 = arith.constant 2 : index
    %c0_65 = arith.constant 0 : index
    %c0_66 = arith.constant 0 : index
    %54 = vector.load %arg1[%c2_64, %c0_65, %c0_66] : memref<3x32x80xf32, #tpu.memory_space<vmem>>, vector<1x32x80xf32>
    %55 = vector.shape_cast %54 : vector<1x32x80xf32> to vector<32x80xf32>
    %cst_67 = arith.constant dense<0.000000e+00> : vector<8x80xf32>
    %56 = tpu.matmul %53, %55, %cst_67 {dimension_numbers = #tpu.dot_dimension_numbers<[1], [0], [0], [1], [0, 0, 1, 1], [], []>} : vector<8x32xf32>, vector<32x80xf32>, vector<8x80xf32> -> vector<8x80xf32>
    %57 = arith.addf %50, %56 : vector<8x80xf32>
    %c0_68 = arith.constant 0 : index
    %c0_69 = arith.constant 0 : index
    %58 = vector.load %arg3[%c0_68, %c0_69] : memref<1x80xf32, #tpu.memory_space<vmem>>, vector<1x80xf32>
    %59 = vector.broadcast %58 : vector<1x80xf32> to vector<8x80xf32>
    %60 = arith.addf %57, %59 : vector<8x80xf32>
    %cst_70 = arith.constant 0.000000e+00 : f32
    %61 = vector.broadcast %cst_70 : f32 to vector<8x80xf32>
    %62 = arith.maximumf %60, %61 : vector<8x80xf32>
    %c1_71 = arith.constant 1 : index
    %c0_72 = arith.constant 0 : index
    %c0_73 = arith.constant 0 : index
    %63 = vector.load %arg20[%c1_71, %c0_72, %c0_73] : memref<2x8x80xf32, #tpu.memory_space<vmem>>, vector<1x8x80xf32>
    %64 = vector.shape_cast %63 : vector<1x8x80xf32> to vector<8x80xf32>
    %65 = vector.shape_cast %62 : vector<8x80xf32> to vector<1x8x80xf32>
    tpu.vector_store %arg20[%c1_71, %c0_72, %c0_73], %65 {strides = array<i32>} : memref<2x8x80xf32, #tpu.memory_space<vmem>>, vector<1x8x80xf32>,
    %c0_74 = arith.constant 0 : index
    %c0_75 = arith.constant 0 : index
    %c0_76 = arith.constant 0 : index
    %66 = vector.load %arg20[%c0_74, %c0_75, %c0_76] : memref<2x8x80xf32, #tpu.memory_space<vmem>>, vector<1x8x80xf32>
    %67 = vector.shape_cast %66 : vector<1x8x80xf32> to vector<8x80xf32>
    %c0_77 = arith.constant 0 : index
    %c0_78 = arith.constant 0 : index
    %c0_79 = arith.constant 0 : index
    %68 = vector.load %arg5[%c0_77, %c0_78, %c0_79] : memref<3x4x8xf32, #tpu.memory_space<vmem>>, vector<1x4x8xf32>
    %69 = vector.shape_cast %68 : vector<1x4x8xf32> to vector<4x8xf32>
    %cst_80 = arith.constant dense<0.000000e+00> : vector<4x80xf32>
    %70 = tpu.matmul %69, %67, %cst_80 {dimension_numbers = #tpu.dot_dimension_numbers<[1], [0], [0], [1], [0, 0, 1, 1], [], []>} : vector<4x8xf32>, vector<8x80xf32>, vector<4x80xf32> -> vector<4x80xf32>
    %c0_81 = arith.constant 0 : index
    %c0_82 = arith.constant 0 : index
    %c0_83 = arith.constant 0 : index
    %71 = vector.load %arg4[%c0_81, %c0_82, %c0_83] : memref<3x80x80xf32, #tpu.memory_space<vmem>>, vector<1x80x80xf32>
    %72 = vector.shape_cast %71 : vector<1x80x80xf32> to vector<80x80xf32>
    %cst_84 = arith.constant dense<0.000000e+00> : vector<4x80xf32>
    %73 = tpu.matmul %70, %72, %cst_84 {dimension_numbers = #tpu.dot_dimension_numbers<[1], [0], [0], [1], [0, 0, 1, 1], [], []>} : vector<4x80xf32>, vector<80x80xf32>, vector<4x80xf32> -> vector<4x80xf32>
    %c1_85 = arith.constant 1 : index
    %c0_86 = arith.constant 0 : index
    %c0_87 = arith.constant 0 : index
    %74 = vector.load %arg5[%c1_85, %c0_86, %c0_87] : memref<3x4x8xf32, #tpu.memory_space<vmem>>, vector<1x4x8xf32>
    %75 = vector.shape_cast %74 : vector<1x4x8xf32> to vector<4x8xf32>
    %cst_88 = arith.constant dense<0.000000e+00> : vector<4x80xf32>
    %76 = tpu.matmul %75, %67, %cst_88 {dimension_numbers = #tpu.dot_dimension_numbers<[1], [0], [0], [1], [0, 0, 1, 1], [], []>} : vector<4x8xf32>, vector<8x80xf32>, vector<4x80xf32> -> vector<4x80xf32>
    %c1_89 = arith.constant 1 : index
    %c0_90 = arith.constant 0 : index
    %c0_91 = arith.constant 0 : index
    %77 = vector.load %arg4[%c1_89, %c0_90, %c0_91] : memref<3x80x80xf32, #tpu.memory_space<vmem>>, vector<1x80x80xf32>
    %78 = vector.shape_cast %77 : vector<1x80x80xf32> to vector<80x80xf32>
    %cst_92 = arith.constant dense<0.000000e+00> : vector<4x80xf32>
    %79 = tpu.matmul %76, %78, %cst_92 {dimension_numbers = #tpu.dot_dimension_numbers<[1], [0], [0], [1], [0, 0, 1, 1], [], []>} : vector<4x80xf32>, vector<80x80xf32>, vector<4x80xf32> -> vector<4x80xf32>
    %80 = arith.addf %73, %79 : vector<4x80xf32>
    %c2_93 = arith.constant 2 : index
    %c0_94 = arith.constant 0 : index
    %c0_95 = arith.constant 0 : index
    %81 = vector.load %arg5[%c2_93, %c0_94, %c0_95] : memref<3x4x8xf32, #tpu.memory_space<vmem>>, vector<1x4x8xf32>
    %82 = vector.shape_cast %81 : vector<1x4x8xf32> to vector<4x8xf32>
    %cst_96 = arith.constant dense<0.000000e+00> : vector<4x80xf32>
    %83 = tpu.matmul %82, %67, %cst_96 {dimension_numbers = #tpu.dot_dimension_numbers<[1], [0], [0], [1], [0, 0, 1, 1], [], []>} : vector<4x8xf32>, vector<8x80xf32>, vector<4x80xf32> -> vector<4x80xf32>
    %c2_97 = arith.constant 2 : index
    %c0_98 = arith.constant 0 : index
    %c0_99 = arith.constant 0 : index
    %84 = vector.load %arg4[%c2_97, %c0_98, %c0_99] : memref<3x80x80xf32, #tpu.memory_space<vmem>>, vector<1x80x80xf32>
    %85 = vector.shape_cast %84 : vector<1x80x80xf32> to vector<80x80xf32>
    %cst_100 = arith.constant dense<0.000000e+00> : vector<4x80xf32>
    %86 = tpu.matmul %83, %85, %cst_100 {dimension_numbers = #tpu.dot_dimension_numbers<[1], [0], [0], [1], [0, 0, 1, 1], [], []>} : vector<4x80xf32>, vector<80x80xf32>, vector<4x80xf32> -> vector<4x80xf32>
    %87 = arith.addf %80, %86 : vector<4x80xf32>
    %c0_101 = arith.constant 0 : index
    %c0_102 = arith.constant 0 : index
    %88 = vector.load %arg6[%c0_101, %c0_102] : memref<1x80xf32, #tpu.memory_space<vmem>>, vector<1x80xf32>
    %89 = vector.broadcast %88 : vector<1x80xf32> to vector<4x80xf32>
    %90 = arith.addf %87, %89 : vector<4x80xf32>
    %cst_103 = arith.constant 0.000000e+00 : f32
    %91 = vector.broadcast %cst_103 : f32 to vector<4x80xf32>
    %92 = arith.maximumf %90, %91 : vector<4x80xf32>
    %c0_104 = arith.constant 0 : index
    %c0_105 = arith.constant 0 : index
    %c0_106 = arith.constant 0 : index
    %93 = vector.load %arg21[%c0_104, %c0_105, %c0_106] : memref<2x4x80xf32, #tpu.memory_space<vmem>>, vector<1x4x80xf32>
    %94 = vector.shape_cast %93 : vector<1x4x80xf32> to vector<4x80xf32>
    %95 = vector.shape_cast %92 : vector<4x80xf32> to vector<1x4x80xf32>
    tpu.vector_store %arg21[%c0_104, %c0_105, %c0_106], %95 {strides = array<i32>} : memref<2x4x80xf32, #tpu.memory_space<vmem>>, vector<1x4x80xf32>,
    %c1_107 = arith.constant 1 : index
    %c0_108 = arith.constant 0 : index
    %c0_109 = arith.constant 0 : index
    %96 = vector.load %arg20[%c1_107, %c0_108, %c0_109] : memref<2x8x80xf32, #tpu.memory_space<vmem>>, vector<1x8x80xf32>
    %97 = vector.shape_cast %96 : vector<1x8x80xf32> to vector<8x80xf32>
    %c0_110 = arith.constant 0 : index
    %c0_111 = arith.constant 0 : index
    %c0_112 = arith.constant 0 : index
    %98 = vector.load %arg5[%c0_110, %c0_111, %c0_112] : memref<3x4x8xf32, #tpu.memory_space<vmem>>, vector<1x4x8xf32>
    %99 = vector.shape_cast %98 : vector<1x4x8xf32> to vector<4x8xf32>
    %cst_113 = arith.constant dense<0.000000e+00> : vector<4x80xf32>
    %100 = tpu.matmul %99, %97, %cst_113 {dimension_numbers = #tpu.dot_dimension_numbers<[1], [0], [0], [1], [0, 0, 1, 1], [], []>} : vector<4x8xf32>, vector<8x80xf32>, vector<4x80xf32> -> vector<4x80xf32>
    %c0_114 = arith.constant 0 : index
    %c0_115 = arith.constant 0 : index
    %c0_116 = arith.constant 0 : index
    %101 = vector.load %arg4[%c0_114, %c0_115, %c0_116] : memref<3x80x80xf32, #tpu.memory_space<vmem>>, vector<1x80x80xf32>
    %102 = vector.shape_cast %101 : vector<1x80x80xf32> to vector<80x80xf32>
    %cst_117 = arith.constant dense<0.000000e+00> : vector<4x80xf32>
    %103 = tpu.matmul %100, %102, %cst_117 {dimension_numbers = #tpu.dot_dimension_numbers<[1], [0], [0], [1], [0, 0, 1, 1], [], []>} : vector<4x80xf32>, vector<80x80xf32>, vector<4x80xf32> -> vector<4x80xf32>
    %c1_118 = arith.constant 1 : index
    %c0_119 = arith.constant 0 : index
    %c0_120 = arith.constant 0 : index
    %104 = vector.load %arg5[%c1_118, %c0_119, %c0_120] : memref<3x4x8xf32, #tpu.memory_space<vmem>>, vector<1x4x8xf32>
    %105 = vector.shape_cast %104 : vector<1x4x8xf32> to vector<4x8xf32>
    %cst_121 = arith.constant dense<0.000000e+00> : vector<4x80xf32>
    %106 = tpu.matmul %105, %97, %cst_121 {dimension_numbers = #tpu.dot_dimension_numbers<[1], [0], [0], [1], [0, 0, 1, 1], [], []>} : vector<4x8xf32>, vector<8x80xf32>, vector<4x80xf32> -> vector<4x80xf32>
    %c1_122 = arith.constant 1 : index
    %c0_123 = arith.constant 0 : index
    %c0_124 = arith.constant 0 : index
    %107 = vector.load %arg4[%c1_122, %c0_123, %c0_124] : memref<3x80x80xf32, #tpu.memory_space<vmem>>, vector<1x80x80xf32>
    %108 = vector.shape_cast %107 : vector<1x80x80xf32> to vector<80x80xf32>
    %cst_125 = arith.constant dense<0.000000e+00> : vector<4x80xf32>
    %109 = tpu.matmul %106, %108, %cst_125 {dimension_numbers = #tpu.dot_dimension_numbers<[1], [0], [0], [1], [0, 0, 1, 1], [], []>} : vector<4x80xf32>, vector<80x80xf32>, vector<4x80xf32> -> vector<4x80xf32>
    %110 = arith.addf %103, %109 : vector<4x80xf32>
    %c2_126 = arith.constant 2 : index
    %c0_127 = arith.constant 0 : index
    %c0_128 = arith.constant 0 : index
    %111 = vector.load %arg5[%c2_126, %c0_127, %c0_128] : memref<3x4x8xf32, #tpu.memory_space<vmem>>, vector<1x4x8xf32>
    %112 = vector.shape_cast %111 : vector<1x4x8xf32> to vector<4x8xf32>
    %cst_129 = arith.constant dense<0.000000e+00> : vector<4x80xf32>
    %113 = tpu.matmul %112, %97, %cst_129 {dimension_numbers = #tpu.dot_dimension_numbers<[1], [0], [0], [1], [0, 0, 1, 1], [], []>} : vector<4x8xf32>, vector<8x80xf32>, vector<4x80xf32> -> vector<4x80xf32>
    %c2_130 = arith.constant 2 : index
    %c0_131 = arith.constant 0 : index
    %c0_132 = arith.constant 0 : index
    %114 = vector.load %arg4[%c2_130, %c0_131, %c0_132] : memref<3x80x80xf32, #tpu.memory_space<vmem>>, vector<1x80x80xf32>
    %115 = vector.shape_cast %114 : vector<1x80x80xf32> to vector<80x80xf32>
    %cst_133 = arith.constant dense<0.000000e+00> : vector<4x80xf32>
    %116 = tpu.matmul %113, %115, %cst_133 {dimension_numbers = #tpu.dot_dimension_numbers<[1], [0], [0], [1], [0, 0, 1, 1], [], []>} : vector<4x80xf32>, vector<80x80xf32>, vector<4x80xf32> -> vector<4x80xf32>
    %117 = arith.addf %110, %116 : vector<4x80xf32>
    %c0_134 = arith.constant 0 : index
    %c0_135 = arith.constant 0 : index
    %118 = vector.load %arg6[%c0_134, %c0_135] : memref<1x80xf32, #tpu.memory_space<vmem>>, vector<1x80xf32>
    %119 = vector.broadcast %118 : vector<1x80xf32> to vector<4x80xf32>
    %120 = arith.addf %117, %119 : vector<4x80xf32>
    %cst_136 = arith.constant 0.000000e+00 : f32
    %121 = vector.broadcast %cst_136 : f32 to vector<4x80xf32>
    %122 = arith.maximumf %120, %121 : vector<4x80xf32>
    %c1_137 = arith.constant 1 : index
    %c0_138 = arith.constant 0 : index
    %c0_139 = arith.constant 0 : index
    %123 = vector.load %arg21[%c1_137, %c0_138, %c0_139] : memref<2x4x80xf32, #tpu.memory_space<vmem>>, vector<1x4x80xf32>
    %124 = vector.shape_cast %123 : vector<1x4x80xf32> to vector<4x80xf32>
    %125 = vector.shape_cast %122 : vector<4x80xf32> to vector<1x4x80xf32>
    tpu.vector_store %arg21[%c1_137, %c0_138, %c0_139], %125 {strides = array<i32>} : memref<2x4x80xf32, #tpu.memory_space<vmem>>, vector<1x4x80xf32>,
    %c0_140 = arith.constant 0 : index
    %c0_141 = arith.constant 0 : index
    %c0_142 = arith.constant 0 : index
    %126 = vector.load %arg21[%c0_140, %c0_141, %c0_142] : memref<2x4x80xf32, #tpu.memory_space<vmem>>, vector<1x4x80xf32>
    %127 = vector.shape_cast %126 : vector<1x4x80xf32> to vector<4x80xf32>
    %c0_143 = arith.constant 0 : index
    %c0_144 = arith.constant 0 : index
    %c0_145 = arith.constant 0 : index
    %128 = vector.load %arg8[%c0_143, %c0_144, %c0_145] : memref<3x2x4xf32, #tpu.memory_space<vmem>>, vector<1x2x4xf32>
    %129 = vector.shape_cast %128 : vector<1x2x4xf32> to vector<2x4xf32>
    %cst_146 = arith.constant dense<0.000000e+00> : vector<2x80xf32>
    %130 = tpu.matmul %129, %127, %cst_146 {dimension_numbers = #tpu.dot_dimension_numbers<[1], [0], [0], [1], [0, 0, 1, 1], [], []>} : vector<2x4xf32>, vector<4x80xf32>, vector<2x80xf32> -> vector<2x80xf32>
    %c0_147 = arith.constant 0 : index
    %c0_148 = arith.constant 0 : index
    %c0_149 = arith.constant 0 : index
    %131 = vector.load %arg7[%c0_147, %c0_148, %c0_149] : memref<3x80x80xf32, #tpu.memory_space<vmem>>, vector<1x80x80xf32>
    %132 = vector.shape_cast %131 : vector<1x80x80xf32> to vector<80x80xf32>
    %cst_150 = arith.constant dense<0.000000e+00> : vector<2x80xf32>
    %133 = tpu.matmul %130, %132, %cst_150 {dimension_numbers = #tpu.dot_dimension_numbers<[1], [0], [0], [1], [0, 0, 1, 1], [], []>} : vector<2x80xf32>, vector<80x80xf32>, vector<2x80xf32> -> vector<2x80xf32>
    %c1_151 = arith.constant 1 : index
    %c0_152 = arith.constant 0 : index
    %c0_153 = arith.constant 0 : index
    %134 = vector.load %arg8[%c1_151, %c0_152, %c0_153] : memref<3x2x4xf32, #tpu.memory_space<vmem>>, vector<1x2x4xf32>
    %135 = vector.shape_cast %134 : vector<1x2x4xf32> to vector<2x4xf32>
    %cst_154 = arith.constant dense<0.000000e+00> : vector<2x80xf32>
    %136 = tpu.matmul %135, %127, %cst_154 {dimension_numbers = #tpu.dot_dimension_numbers<[1], [0], [0], [1], [0, 0, 1, 1], [], []>} : vector<2x4xf32>, vector<4x80xf32>, vector<2x80xf32> -> vector<2x80xf32>
    %c1_155 = arith.constant 1 : index
    %c0_156 = arith.constant 0 : index
    %c0_157 = arith.constant 0 : index
    %137 = vector.load %arg7[%c1_155, %c0_156, %c0_157] : memref<3x80x80xf32, #tpu.memory_space<vmem>>, vector<1x80x80xf32>
    %138 = vector.shape_cast %137 : vector<1x80x80xf32> to vector<80x80xf32>
    %cst_158 = arith.constant dense<0.000000e+00> : vector<2x80xf32>
    %139 = tpu.matmul %136, %138, %cst_158 {dimension_numbers = #tpu.dot_dimension_numbers<[1], [0], [0], [1], [0, 0, 1, 1], [], []>} : vector<2x80xf32>, vector<80x80xf32>, vector<2x80xf32> -> vector<2x80xf32>
    %140 = arith.addf %133, %139 : vector<2x80xf32>
    %c2_159 = arith.constant 2 : index
    %c0_160 = arith.constant 0 : index
    %c0_161 = arith.constant 0 : index
    %141 = vector.load %arg8[%c2_159, %c0_160, %c0_161] : memref<3x2x4xf32, #tpu.memory_space<vmem>>, vector<1x2x4xf32>
    %142 = vector.shape_cast %141 : vector<1x2x4xf32> to vector<2x4xf32>
    %cst_162 = arith.constant dense<0.000000e+00> : vector<2x80xf32>
    %143 = tpu.matmul %142, %127, %cst_162 {dimension_numbers = #tpu.dot_dimension_numbers<[1], [0], [0], [1], [0, 0, 1, 1], [], []>} : vector<2x4xf32>, vector<4x80xf32>, vector<2x80xf32> -> vector<2x80xf32>
    %c2_163 = arith.constant 2 : index
    %c0_164 = arith.constant 0 : index
    %c0_165 = arith.constant 0 : index
    %144 = vector.load %arg7[%c2_163, %c0_164, %c0_165] : memref<3x80x80xf32, #tpu.memory_space<vmem>>, vector<1x80x80xf32>
    %145 = vector.shape_cast %144 : vector<1x80x80xf32> to vector<80x80xf32>
    %cst_166 = arith.constant dense<0.000000e+00> : vector<2x80xf32>
    %146 = tpu.matmul %143, %145, %cst_166 {dimension_numbers = #tpu.dot_dimension_numbers<[1], [0], [0], [1], [0, 0, 1, 1], [], []>} : vector<2x80xf32>, vector<80x80xf32>, vector<2x80xf32> -> vector<2x80xf32>
    %147 = arith.addf %140, %146 : vector<2x80xf32>
    %c0_167 = arith.constant 0 : index
    %c0_168 = arith.constant 0 : index
    %148 = vector.load %arg9[%c0_167, %c0_168] : memref<1x80xf32, #tpu.memory_space<vmem>>, vector<1x80xf32>
    %149 = vector.broadcast %148 : vector<1x80xf32> to vector<2x80xf32>
    %150 = arith.addf %147, %149 : vector<2x80xf32>
    %cst_169 = arith.constant 0.000000e+00 : f32
    %151 = vector.broadcast %cst_169 : f32 to vector<2x80xf32>
    %152 = arith.maximumf %150, %151 : vector<2x80xf32>
    %c0_170 = arith.constant 0 : index
    %c0_171 = arith.constant 0 : index
    %c0_172 = arith.constant 0 : index
    %153 = vector.load %arg22[%c0_170, %c0_171, %c0_172] : memref<2x3x80xf32, #tpu.memory_space<vmem>>, vector<1x2x80xf32>
    %154 = vector.shape_cast %153 : vector<1x2x80xf32> to vector<2x80xf32>
    %155 = vector.shape_cast %152 : vector<2x80xf32> to vector<1x2x80xf32>
    tpu.vector_store %arg22[%c0_170, %c0_171, %c0_172], %155 {strides = array<i32>} : memref<2x3x80xf32, #tpu.memory_space<vmem>>, vector<1x2x80xf32>,
    %c1_173 = arith.constant 1 : index
    %c0_174 = arith.constant 0 : index
    %c0_175 = arith.constant 0 : index
    %156 = vector.load %arg21[%c1_173, %c0_174, %c0_175] : memref<2x4x80xf32, #tpu.memory_space<vmem>>, vector<1x4x80xf32>
    %157 = vector.shape_cast %156 : vector<1x4x80xf32> to vector<4x80xf32>
    %c0_176 = arith.constant 0 : index
    %c0_177 = arith.constant 0 : index
    %c0_178 = arith.constant 0 : index
    %158 = vector.load %arg8[%c0_176, %c0_177, %c0_178] : memref<3x2x4xf32, #tpu.memory_space<vmem>>, vector<1x2x4xf32>
    %159 = vector.shape_cast %158 : vector<1x2x4xf32> to vector<2x4xf32>
    %cst_179 = arith.constant dense<0.000000e+00> : vector<2x80xf32>
    %160 = tpu.matmul %159, %157, %cst_179 {dimension_numbers = #tpu.dot_dimension_numbers<[1], [0], [0], [1], [0, 0, 1, 1], [], []>} : vector<2x4xf32>, vector<4x80xf32>, vector<2x80xf32> -> vector<2x80xf32>
    %c0_180 = arith.constant 0 : index
    %c0_181 = arith.constant 0 : index
    %c0_182 = arith.constant 0 : index
    %161 = vector.load %arg7[%c0_180, %c0_181, %c0_182] : memref<3x80x80xf32, #tpu.memory_space<vmem>>, vector<1x80x80xf32>
    %162 = vector.shape_cast %161 : vector<1x80x80xf32> to vector<80x80xf32>
    %cst_183 = arith.constant dense<0.000000e+00> : vector<2x80xf32>
    %163 = tpu.matmul %160, %162, %cst_183 {dimension_numbers = #tpu.dot_dimension_numbers<[1], [0], [0], [1], [0, 0, 1, 1], [], []>} : vector<2x80xf32>, vector<80x80xf32>, vector<2x80xf32> -> vector<2x80xf32>
    %c1_184 = arith.constant 1 : index
    %c0_185 = arith.constant 0 : index
    %c0_186 = arith.constant 0 : index
    %164 = vector.load %arg8[%c1_184, %c0_185, %c0_186] : memref<3x2x4xf32, #tpu.memory_space<vmem>>, vector<1x2x4xf32>
    %165 = vector.shape_cast %164 : vector<1x2x4xf32> to vector<2x4xf32>
    %cst_187 = arith.constant dense<0.000000e+00> : vector<2x80xf32>
    %166 = tpu.matmul %165, %157, %cst_187 {dimension_numbers = #tpu.dot_dimension_numbers<[1], [0], [0], [1], [0, 0, 1, 1], [], []>} : vector<2x4xf32>, vector<4x80xf32>, vector<2x80xf32> -> vector<2x80xf32>
    %c1_188 = arith.constant 1 : index
    %c0_189 = arith.constant 0 : index
    %c0_190 = arith.constant 0 : index
    %167 = vector.load %arg7[%c1_188, %c0_189, %c0_190] : memref<3x80x80xf32, #tpu.memory_space<vmem>>, vector<1x80x80xf32>
    %168 = vector.shape_cast %167 : vector<1x80x80xf32> to vector<80x80xf32>
    %cst_191 = arith.constant dense<0.000000e+00> : vector<2x80xf32>
    %169 = tpu.matmul %166, %168, %cst_191 {dimension_numbers = #tpu.dot_dimension_numbers<[1], [0], [0], [1], [0, 0, 1, 1], [], []>} : vector<2x80xf32>, vector<80x80xf32>, vector<2x80xf32> -> vector<2x80xf32>
    %170 = arith.addf %163, %169 : vector<2x80xf32>
    %c2_192 = arith.constant 2 : index
    %c0_193 = arith.constant 0 : index
    %c0_194 = arith.constant 0 : index
    %171 = vector.load %arg8[%c2_192, %c0_193, %c0_194] : memref<3x2x4xf32, #tpu.memory_space<vmem>>, vector<1x2x4xf32>
    %172 = vector.shape_cast %171 : vector<1x2x4xf32> to vector<2x4xf32>
    %cst_195 = arith.constant dense<0.000000e+00> : vector<2x80xf32>
    %173 = tpu.matmul %172, %157, %cst_195 {dimension_numbers = #tpu.dot_dimension_numbers<[1], [0], [0], [1], [0, 0, 1, 1], [], []>} : vector<2x4xf32>, vector<4x80xf32>, vector<2x80xf32> -> vector<2x80xf32>
    %c2_196 = arith.constant 2 : index
    %c0_197 = arith.constant 0 : index
    %c0_198 = arith.constant 0 : index
    %174 = vector.load %arg7[%c2_196, %c0_197, %c0_198] : memref<3x80x80xf32, #tpu.memory_space<vmem>>, vector<1x80x80xf32>
    %175 = vector.shape_cast %174 : vector<1x80x80xf32> to vector<80x80xf32>
    %cst_199 = arith.constant dense<0.000000e+00> : vector<2x80xf32>
    %176 = tpu.matmul %173, %175, %cst_199 {dimension_numbers = #tpu.dot_dimension_numbers<[1], [0], [0], [1], [0, 0, 1, 1], [], []>} : vector<2x80xf32>, vector<80x80xf32>, vector<2x80xf32> -> vector<2x80xf32>
    %177 = arith.addf %170, %176 : vector<2x80xf32>
    %c0_200 = arith.constant 0 : index
    %c0_201 = arith.constant 0 : index
    %178 = vector.load %arg9[%c0_200, %c0_201] : memref<1x80xf32, #tpu.memory_space<vmem>>, vector<1x80xf32>
    %179 = vector.broadcast %178 : vector<1x80xf32> to vector<2x80xf32>
    %180 = arith.addf %177, %179 : vector<2x80xf32>
    %cst_202 = arith.constant 0.000000e+00 : f32
    %181 = vector.broadcast %cst_202 : f32 to vector<2x80xf32>
    %182 = arith.maximumf %180, %181 : vector<2x80xf32>
    %c1_203 = arith.constant 1 : index
    %c0_204 = arith.constant 0 : index
    %c0_205 = arith.constant 0 : index
    %183 = vector.load %arg22[%c1_203, %c0_204, %c0_205] : memref<2x3x80xf32, #tpu.memory_space<vmem>>, vector<1x2x80xf32>
    %184 = vector.shape_cast %183 : vector<1x2x80xf32> to vector<2x80xf32>
    %185 = vector.shape_cast %182 : vector<2x80xf32> to vector<1x2x80xf32>
    tpu.vector_store %arg22[%c1_203, %c0_204, %c0_205], %185 {strides = array<i32>} : memref<2x3x80xf32, #tpu.memory_space<vmem>>, vector<1x2x80xf32>,
    %c0_206 = arith.constant 0 : index
    %c0_207 = arith.constant 0 : index
    %c0_208 = arith.constant 0 : index
    %186 = vector.load %arg22[%c0_206, %c0_207, %c0_208] : memref<2x3x80xf32, #tpu.memory_space<vmem>>, vector<1x2x80xf32>
    %187 = vector.shape_cast %186 : vector<1x2x80xf32> to vector<2x80xf32>
    %c0_209 = arith.constant 0 : index
    %c1_210 = arith.constant 1 : index
    %c0_211 = arith.constant 0 : index
    %188 = vector.load %arg22[%c0_209, %c1_210, %c0_211] : memref<2x3x80xf32, #tpu.memory_space<vmem>>, vector<1x2x80xf32>
    %189 = vector.shape_cast %188 : vector<1x2x80xf32> to vector<2x80xf32>
    %c0_212 = arith.constant 0 : index
    %c0_213 = arith.constant 0 : index
    %c0_214 = arith.constant 0 : index
    %190 = vector.load %arg10[%c0_212, %c0_213, %c0_214] : memref<3x80x80xf32, #tpu.memory_space<vmem>>, vector<1x80x80xf32>
    %191 = vector.shape_cast %190 : vector<1x80x80xf32> to vector<80x80xf32>
    %cst_215 = arith.constant dense<0.000000e+00> : vector<2x80xf32>
    %192 = tpu.matmul %187, %191, %cst_215 {dimension_numbers = #tpu.dot_dimension_numbers<[1], [0], [0], [1], [0, 0, 1, 1], [], []>} : vector<2x80xf32>, vector<80x80xf32>, vector<2x80xf32> -> vector<2x80xf32>
    %c1_216 = arith.constant 1 : index
    %c0_217 = arith.constant 0 : index
    %c0_218 = arith.constant 0 : index
    %193 = vector.load %arg10[%c1_216, %c0_217, %c0_218] : memref<3x80x80xf32, #tpu.memory_space<vmem>>, vector<1x80x80xf32>
    %194 = vector.shape_cast %193 : vector<1x80x80xf32> to vector<80x80xf32>
    %cst_219 = arith.constant dense<0.000000e+00> : vector<2x80xf32>
    %195 = tpu.matmul %187, %194, %cst_219 {dimension_numbers = #tpu.dot_dimension_numbers<[1], [0], [0], [1], [0, 0, 1, 1], [], []>} : vector<2x80xf32>, vector<80x80xf32>, vector<2x80xf32> -> vector<2x80xf32>
    %c2_220 = arith.constant 2 : index
    %c0_221 = arith.constant 0 : index
    %c0_222 = arith.constant 0 : index
    %196 = vector.load %arg10[%c2_220, %c0_221, %c0_222] : memref<3x80x80xf32, #tpu.memory_space<vmem>>, vector<1x80x80xf32>
    %197 = vector.shape_cast %196 : vector<1x80x80xf32> to vector<80x80xf32>
    %cst_223 = arith.constant dense<0.000000e+00> : vector<2x80xf32>
    %198 = tpu.matmul %189, %197, %cst_223 {dimension_numbers = #tpu.dot_dimension_numbers<[1], [0], [0], [1], [0, 0, 1, 1], [], []>} : vector<2x80xf32>, vector<80x80xf32>, vector<2x80xf32> -> vector<2x80xf32>
    %199 = arith.addf %195, %198 : vector<2x80xf32>
    %c0_224 = arith.constant 0 : index
    %c0_225 = arith.constant 0 : index
    %c0_226 = arith.constant 0 : index
    %200 = vector.load %arg11[%c0_224, %c0_225, %c0_226] : memref<2x4x2xf32, #tpu.memory_space<vmem>>, vector<1x4x2xf32>
    %201 = vector.shape_cast %200 : vector<1x4x2xf32> to vector<4x2xf32>
    %cst_227 = arith.constant dense<0.000000e+00> : vector<4x80xf32>
    %202 = tpu.matmul %201, %192, %cst_227 {dimension_numbers = #tpu.dot_dimension_numbers<[1], [0], [0], [1], [0, 0, 1, 1], [], []>} : vector<4x2xf32>, vector<2x80xf32>, vector<4x80xf32> -> vector<4x80xf32>
    %c1_228 = arith.constant 1 : index
    %c0_229 = arith.constant 0 : index
    %c0_230 = arith.constant 0 : index
    %203 = vector.load %arg11[%c1_228, %c0_229, %c0_230] : memref<2x4x2xf32, #tpu.memory_space<vmem>>, vector<1x4x2xf32>
    %204 = vector.shape_cast %203 : vector<1x4x2xf32> to vector<4x2xf32>
    %cst_231 = arith.constant dense<0.000000e+00> : vector<4x80xf32>
    %205 = tpu.matmul %204, %199, %cst_231 {dimension_numbers = #tpu.dot_dimension_numbers<[1], [0], [0], [1], [0, 0, 1, 1], [], []>} : vector<4x2xf32>, vector<2x80xf32>, vector<4x80xf32> -> vector<4x80xf32>
    %206 = arith.addf %202, %205 : vector<4x80xf32>
    %c0_232 = arith.constant 0 : index
    %c0_233 = arith.constant 0 : index
    %207 = vector.load %arg12[%c0_232, %c0_233] : memref<1x80xf32, #tpu.memory_space<vmem>>, vector<1x80xf32>
    %208 = vector.broadcast %207 : vector<1x80xf32> to vector<4x80xf32>
    %209 = arith.addf %206, %208 : vector<4x80xf32>
    %cst_234 = arith.constant 0.000000e+00 : f32
    %210 = vector.broadcast %cst_234 : f32 to vector<4x80xf32>
    %211 = arith.maximumf %209, %210 : vector<4x80xf32>
    %c0_235 = arith.constant 0 : index
    %c0_236 = arith.constant 0 : index
    %c0_237 = arith.constant 0 : index
    %212 = vector.load %arg23[%c0_235, %c0_236, %c0_237] : memref<2x5x80xf32, #tpu.memory_space<vmem>>, vector<1x4x80xf32>
    %213 = vector.shape_cast %212 : vector<1x4x80xf32> to vector<4x80xf32>
    %214 = vector.shape_cast %211 : vector<4x80xf32> to vector<1x4x80xf32>
    tpu.vector_store %arg23[%c0_235, %c0_236, %c0_237], %214 {strides = array<i32>} : memref<2x5x80xf32, #tpu.memory_space<vmem>>, vector<1x4x80xf32>,
    %c1_238 = arith.constant 1 : index
    %c0_239 = arith.constant 0 : index
    %c0_240 = arith.constant 0 : index
    %215 = vector.load %arg22[%c1_238, %c0_239, %c0_240] : memref<2x3x80xf32, #tpu.memory_space<vmem>>, vector<1x2x80xf32>
    %216 = vector.shape_cast %215 : vector<1x2x80xf32> to vector<2x80xf32>
    %c1_241 = arith.constant 1 : index
    %c1_242 = arith.constant 1 : index
    %c0_243 = arith.constant 0 : index
    %217 = vector.load %arg22[%c1_241, %c1_242, %c0_243] : memref<2x3x80xf32, #tpu.memory_space<vmem>>, vector<1x2x80xf32>
    %218 = vector.shape_cast %217 : vector<1x2x80xf32> to vector<2x80xf32>
    %c0_244 = arith.constant 0 : index
    %c0_245 = arith.constant 0 : index
    %c0_246 = arith.constant 0 : index
    %219 = vector.load %arg10[%c0_244, %c0_245, %c0_246] : memref<3x80x80xf32, #tpu.memory_space<vmem>>, vector<1x80x80xf32>
    %220 = vector.shape_cast %219 : vector<1x80x80xf32> to vector<80x80xf32>
    %cst_247 = arith.constant dense<0.000000e+00> : vector<2x80xf32>
    %221 = tpu.matmul %216, %220, %cst_247 {dimension_numbers = #tpu.dot_dimension_numbers<[1], [0], [0], [1], [0, 0, 1, 1], [], []>} : vector<2x80xf32>, vector<80x80xf32>, vector<2x80xf32> -> vector<2x80xf32>
    %c1_248 = arith.constant 1 : index
    %c0_249 = arith.constant 0 : index
    %c0_250 = arith.constant 0 : index
    %222 = vector.load %arg10[%c1_248, %c0_249, %c0_250] : memref<3x80x80xf32, #tpu.memory_space<vmem>>, vector<1x80x80xf32>
    %223 = vector.shape_cast %222 : vector<1x80x80xf32> to vector<80x80xf32>
    %cst_251 = arith.constant dense<0.000000e+00> : vector<2x80xf32>
    %224 = tpu.matmul %216, %223, %cst_251 {dimension_numbers = #tpu.dot_dimension_numbers<[1], [0], [0], [1], [0, 0, 1, 1], [], []>} : vector<2x80xf32>, vector<80x80xf32>, vector<2x80xf32> -> vector<2x80xf32>
    %c2_252 = arith.constant 2 : index
    %c0_253 = arith.constant 0 : index
    %c0_254 = arith.constant 0 : index
    %225 = vector.load %arg10[%c2_252, %c0_253, %c0_254] : memref<3x80x80xf32, #tpu.memory_space<vmem>>, vector<1x80x80xf32>
    %226 = vector.shape_cast %225 : vector<1x80x80xf32> to vector<80x80xf32>
    %cst_255 = arith.constant dense<0.000000e+00> : vector<2x80xf32>
    %227 = tpu.matmul %218, %226, %cst_255 {dimension_numbers = #tpu.dot_dimension_numbers<[1], [0], [0], [1], [0, 0, 1, 1], [], []>} : vector<2x80xf32>, vector<80x80xf32>, vector<2x80xf32> -> vector<2x80xf32>
    %228 = arith.addf %224, %227 : vector<2x80xf32>
    %c0_256 = arith.constant 0 : index
    %c0_257 = arith.constant 0 : index
    %c0_258 = arith.constant 0 : index
    %229 = vector.load %arg11[%c0_256, %c0_257, %c0_258] : memref<2x4x2xf32, #tpu.memory_space<vmem>>, vector<1x4x2xf32>
    %230 = vector.shape_cast %229 : vector<1x4x2xf32> to vector<4x2xf32>
    %cst_259 = arith.constant dense<0.000000e+00> : vector<4x80xf32>
    %231 = tpu.matmul %230, %221, %cst_259 {dimension_numbers = #tpu.dot_dimension_numbers<[1], [0], [0], [1], [0, 0, 1, 1], [], []>} : vector<4x2xf32>, vector<2x80xf32>, vector<4x80xf32> -> vector<4x80xf32>
    %c1_260 = arith.constant 1 : index
    %c0_261 = arith.constant 0 : index
    %c0_262 = arith.constant 0 : index
    %232 = vector.load %arg11[%c1_260, %c0_261, %c0_262] : memref<2x4x2xf32, #tpu.memory_space<vmem>>, vector<1x4x2xf32>
    %233 = vector.shape_cast %232 : vector<1x4x2xf32> to vector<4x2xf32>
    %cst_263 = arith.constant dense<0.000000e+00> : vector<4x80xf32>
    %234 = tpu.matmul %233, %228, %cst_263 {dimension_numbers = #tpu.dot_dimension_numbers<[1], [0], [0], [1], [0, 0, 1, 1], [], []>} : vector<4x2xf32>, vector<2x80xf32>, vector<4x80xf32> -> vector<4x80xf32>
    %235 = arith.addf %231, %234 : vector<4x80xf32>
    %c0_264 = arith.constant 0 : index
    %c0_265 = arith.constant 0 : index
    %236 = vector.load %arg12[%c0_264, %c0_265] : memref<1x80xf32, #tpu.memory_space<vmem>>, vector<1x80xf32>
    %237 = vector.broadcast %236 : vector<1x80xf32> to vector<4x80xf32>
    %238 = arith.addf %235, %237 : vector<4x80xf32>
    %cst_266 = arith.constant 0.000000e+00 : f32
    %239 = vector.broadcast %cst_266 : f32 to vector<4x80xf32>
    %240 = arith.maximumf %238, %239 : vector<4x80xf32>
    %c1_267 = arith.constant 1 : index
    %c0_268 = arith.constant 0 : index
    %c0_269 = arith.constant 0 : index
    %241 = vector.load %arg23[%c1_267, %c0_268, %c0_269] : memref<2x5x80xf32, #tpu.memory_space<vmem>>, vector<1x4x80xf32>
    %242 = vector.shape_cast %241 : vector<1x4x80xf32> to vector<4x80xf32>
    %243 = vector.shape_cast %240 : vector<4x80xf32> to vector<1x4x80xf32>
    tpu.vector_store %arg23[%c1_267, %c0_268, %c0_269], %243 {strides = array<i32>} : memref<2x5x80xf32, #tpu.memory_space<vmem>>, vector<1x4x80xf32>,
    %c0_270 = arith.constant 0 : index
    %c0_271 = arith.constant 0 : index
    %c0_272 = arith.constant 0 : index
    %244 = vector.load %arg23[%c0_270, %c0_271, %c0_272] : memref<2x5x80xf32, #tpu.memory_space<vmem>>, vector<1x4x80xf32>
    %245 = vector.shape_cast %244 : vector<1x4x80xf32> to vector<4x80xf32>
    %c0_273 = arith.constant 0 : index
    %c1_274 = arith.constant 1 : index
    %c0_275 = arith.constant 0 : index
    %246 = vector.load %arg23[%c0_273, %c1_274, %c0_275] : memref<2x5x80xf32, #tpu.memory_space<vmem>>, vector<1x4x80xf32>
    %247 = vector.shape_cast %246 : vector<1x4x80xf32> to vector<4x80xf32>
    %c0_276 = arith.constant 0 : index
    %c0_277 = arith.constant 0 : index
    %c0_278 = arith.constant 0 : index
    %248 = vector.load %arg13[%c0_276, %c0_277, %c0_278] : memref<3x80x80xf32, #tpu.memory_space<vmem>>, vector<1x80x80xf32>
    %249 = vector.shape_cast %248 : vector<1x80x80xf32> to vector<80x80xf32>
    %cst_279 = arith.constant dense<0.000000e+00> : vector<4x80xf32>
    %250 = tpu.matmul %245, %249, %cst_279 {dimension_numbers = #tpu.dot_dimension_numbers<[1], [0], [0], [1], [0, 0, 1, 1], [], []>} : vector<4x80xf32>, vector<80x80xf32>, vector<4x80xf32> -> vector<4x80xf32>
    %c1_280 = arith.constant 1 : index
    %c0_281 = arith.constant 0 : index
    %c0_282 = arith.constant 0 : index
    %251 = vector.load %arg13[%c1_280, %c0_281, %c0_282] : memref<3x80x80xf32, #tpu.memory_space<vmem>>, vector<1x80x80xf32>
    %252 = vector.shape_cast %251 : vector<1x80x80xf32> to vector<80x80xf32>
    %cst_283 = arith.constant dense<0.000000e+00> : vector<4x80xf32>
    %253 = tpu.matmul %245, %252, %cst_283 {dimension_numbers = #tpu.dot_dimension_numbers<[1], [0], [0], [1], [0, 0, 1, 1], [], []>} : vector<4x80xf32>, vector<80x80xf32>, vector<4x80xf32> -> vector<4x80xf32>
    %c2_284 = arith.constant 2 : index
    %c0_285 = arith.constant 0 : index
    %c0_286 = arith.constant 0 : index
    %254 = vector.load %arg13[%c2_284, %c0_285, %c0_286] : memref<3x80x80xf32, #tpu.memory_space<vmem>>, vector<1x80x80xf32>
    %255 = vector.shape_cast %254 : vector<1x80x80xf32> to vector<80x80xf32>
    %cst_287 = arith.constant dense<0.000000e+00> : vector<4x80xf32>
    %256 = tpu.matmul %247, %255, %cst_287 {dimension_numbers = #tpu.dot_dimension_numbers<[1], [0], [0], [1], [0, 0, 1, 1], [], []>} : vector<4x80xf32>, vector<80x80xf32>, vector<4x80xf32> -> vector<4x80xf32>
    %257 = arith.addf %253, %256 : vector<4x80xf32>
    %c0_288 = arith.constant 0 : index
    %c0_289 = arith.constant 0 : index
    %c0_290 = arith.constant 0 : index
    %258 = vector.load %arg14[%c0_288, %c0_289, %c0_290] : memref<2x8x4xf32, #tpu.memory_space<vmem>>, vector<1x8x4xf32>
    %259 = vector.shape_cast %258 : vector<1x8x4xf32> to vector<8x4xf32>
    %cst_291 = arith.constant dense<0.000000e+00> : vector<8x80xf32>
    %260 = tpu.matmul %259, %250, %cst_291 {dimension_numbers = #tpu.dot_dimension_numbers<[1], [0], [0], [1], [0, 0, 1, 1], [], []>} : vector<8x4xf32>, vector<4x80xf32>, vector<8x80xf32> -> vector<8x80xf32>
    %c1_292 = arith.constant 1 : index
    %c0_293 = arith.constant 0 : index
    %c0_294 = arith.constant 0 : index
    %261 = vector.load %arg14[%c1_292, %c0_293, %c0_294] : memref<2x8x4xf32, #tpu.memory_space<vmem>>, vector<1x8x4xf32>
    %262 = vector.shape_cast %261 : vector<1x8x4xf32> to vector<8x4xf32>
    %cst_295 = arith.constant dense<0.000000e+00> : vector<8x80xf32>
    %263 = tpu.matmul %262, %257, %cst_295 {dimension_numbers = #tpu.dot_dimension_numbers<[1], [0], [0], [1], [0, 0, 1, 1], [], []>} : vector<8x4xf32>, vector<4x80xf32>, vector<8x80xf32> -> vector<8x80xf32>
    %264 = arith.addf %260, %263 : vector<8x80xf32>
    %c0_296 = arith.constant 0 : index
    %c0_297 = arith.constant 0 : index
    %265 = vector.load %arg15[%c0_296, %c0_297] : memref<1x80xf32, #tpu.memory_space<vmem>>, vector<1x80xf32>
    %266 = vector.broadcast %265 : vector<1x80xf32> to vector<8x80xf32>
    %267 = arith.addf %264, %266 : vector<8x80xf32>
    %cst_298 = arith.constant 0.000000e+00 : f32
    %268 = vector.broadcast %cst_298 : f32 to vector<8x80xf32>
    %269 = arith.maximumf %267, %268 : vector<8x80xf32>
    %c0_299 = arith.constant 0 : index
    %c0_300 = arith.constant 0 : index
    %c0_301 = arith.constant 0 : index
    %270 = vector.load %arg24[%c0_299, %c0_300, %c0_301] : memref<2x9x80xf32, #tpu.memory_space<vmem>>, vector<1x8x80xf32>
    %271 = vector.shape_cast %270 : vector<1x8x80xf32> to vector<8x80xf32>
    %272 = vector.shape_cast %269 : vector<8x80xf32> to vector<1x8x80xf32>
    tpu.vector_store %arg24[%c0_299, %c0_300, %c0_301], %272 {strides = array<i32>} : memref<2x9x80xf32, #tpu.memory_space<vmem>>, vector<1x8x80xf32>,
    %c1_302 = arith.constant 1 : index
    %c0_303 = arith.constant 0 : index
    %c0_304 = arith.constant 0 : index
    %273 = vector.load %arg23[%c1_302, %c0_303, %c0_304] : memref<2x5x80xf32, #tpu.memory_space<vmem>>, vector<1x4x80xf32>
    %274 = vector.shape_cast %273 : vector<1x4x80xf32> to vector<4x80xf32>
    %c1_305 = arith.constant 1 : index
    %c1_306 = arith.constant 1 : index
    %c0_307 = arith.constant 0 : index
    %275 = vector.load %arg23[%c1_305, %c1_306, %c0_307] : memref<2x5x80xf32, #tpu.memory_space<vmem>>, vector<1x4x80xf32>
    %276 = vector.shape_cast %275 : vector<1x4x80xf32> to vector<4x80xf32>
    %c0_308 = arith.constant 0 : index
    %c0_309 = arith.constant 0 : index
    %c0_310 = arith.constant 0 : index
    %277 = vector.load %arg13[%c0_308, %c0_309, %c0_310] : memref<3x80x80xf32, #tpu.memory_space<vmem>>, vector<1x80x80xf32>
    %278 = vector.shape_cast %277 : vector<1x80x80xf32> to vector<80x80xf32>
    %cst_311 = arith.constant dense<0.000000e+00> : vector<4x80xf32>
    %279 = tpu.matmul %274, %278, %cst_311 {dimension_numbers = #tpu.dot_dimension_numbers<[1], [0], [0], [1], [0, 0, 1, 1], [], []>} : vector<4x80xf32>, vector<80x80xf32>, vector<4x80xf32> -> vector<4x80xf32>
    %c1_312 = arith.constant 1 : index
    %c0_313 = arith.constant 0 : index
    %c0_314 = arith.constant 0 : index
    %280 = vector.load %arg13[%c1_312, %c0_313, %c0_314] : memref<3x80x80xf32, #tpu.memory_space<vmem>>, vector<1x80x80xf32>
    %281 = vector.shape_cast %280 : vector<1x80x80xf32> to vector<80x80xf32>
    %cst_315 = arith.constant dense<0.000000e+00> : vector<4x80xf32>
    %282 = tpu.matmul %274, %281, %cst_315 {dimension_numbers = #tpu.dot_dimension_numbers<[1], [0], [0], [1], [0, 0, 1, 1], [], []>} : vector<4x80xf32>, vector<80x80xf32>, vector<4x80xf32> -> vector<4x80xf32>
    %c2_316 = arith.constant 2 : index
    %c0_317 = arith.constant 0 : index
    %c0_318 = arith.constant 0 : index
    %283 = vector.load %arg13[%c2_316, %c0_317, %c0_318] : memref<3x80x80xf32, #tpu.memory_space<vmem>>, vector<1x80x80xf32>
    %284 = vector.shape_cast %283 : vector<1x80x80xf32> to vector<80x80xf32>
    %cst_319 = arith.constant dense<0.000000e+00> : vector<4x80xf32>
    %285 = tpu.matmul %276, %284, %cst_319 {dimension_numbers = #tpu.dot_dimension_numbers<[1], [0], [0], [1], [0, 0, 1, 1], [], []>} : vector<4x80xf32>, vector<80x80xf32>, vector<4x80xf32> -> vector<4x80xf32>
    %286 = arith.addf %282, %285 : vector<4x80xf32>
    %c0_320 = arith.constant 0 : index
    %c0_321 = arith.constant 0 : index
    %c0_322 = arith.constant 0 : index
    %287 = vector.load %arg14[%c0_320, %c0_321, %c0_322] : memref<2x8x4xf32, #tpu.memory_space<vmem>>, vector<1x8x4xf32>
    %288 = vector.shape_cast %287 : vector<1x8x4xf32> to vector<8x4xf32>
    %cst_323 = arith.constant dense<0.000000e+00> : vector<8x80xf32>
    %289 = tpu.matmul %288, %279, %cst_323 {dimension_numbers = #tpu.dot_dimension_numbers<[1], [0], [0], [1], [0, 0, 1, 1], [], []>} : vector<8x4xf32>, vector<4x80xf32>, vector<8x80xf32> -> vector<8x80xf32>
    %c1_324 = arith.constant 1 : index
    %c0_325 = arith.constant 0 : index
    %c0_326 = arith.constant 0 : index
    %290 = vector.load %arg14[%c1_324, %c0_325, %c0_326] : memref<2x8x4xf32, #tpu.memory_space<vmem>>, vector<1x8x4xf32>
    %291 = vector.shape_cast %290 : vector<1x8x4xf32> to vector<8x4xf32>
    %cst_327 = arith.constant dense<0.000000e+00> : vector<8x80xf32>
    %292 = tpu.matmul %291, %286, %cst_327 {dimension_numbers = #tpu.dot_dimension_numbers<[1], [0], [0], [1], [0, 0, 1, 1], [], []>} : vector<8x4xf32>, vector<4x80xf32>, vector<8x80xf32> -> vector<8x80xf32>
    %293 = arith.addf %289, %292 : vector<8x80xf32>
    %c0_328 = arith.constant 0 : index
    %c0_329 = arith.constant 0 : index
    %294 = vector.load %arg15[%c0_328, %c0_329] : memref<1x80xf32, #tpu.memory_space<vmem>>, vector<1x80xf32>
    %295 = vector.broadcast %294 : vector<1x80xf32> to vector<8x80xf32>
    %296 = arith.addf %293, %295 : vector<8x80xf32>
    %cst_330 = arith.constant 0.000000e+00 : f32
    %297 = vector.broadcast %cst_330 : f32 to vector<8x80xf32>
    %298 = arith.maximumf %296, %297 : vector<8x80xf32>
    %c1_331 = arith.constant 1 : index
    %c0_332 = arith.constant 0 : index
    %c0_333 = arith.constant 0 : index
    %299 = vector.load %arg24[%c1_331, %c0_332, %c0_333] : memref<2x9x80xf32, #tpu.memory_space<vmem>>, vector<1x8x80xf32>
    %300 = vector.shape_cast %299 : vector<1x8x80xf32> to vector<8x80xf32>
    %301 = vector.shape_cast %298 : vector<8x80xf32> to vector<1x8x80xf32>
    tpu.vector_store %arg24[%c1_331, %c0_332, %c0_333], %301 {strides = array<i32>} : memref<2x9x80xf32, #tpu.memory_space<vmem>>, vector<1x8x80xf32>,
    %c0_334 = arith.constant 0 : index
    %c0_335 = arith.constant 0 : index
    %c0_336 = arith.constant 0 : index
    %302 = vector.load %arg24[%c0_334, %c0_335, %c0_336] : memref<2x9x80xf32, #tpu.memory_space<vmem>>, vector<1x8x80xf32>
    %303 = vector.shape_cast %302 : vector<1x8x80xf32> to vector<8x80xf32>
    %c0_337 = arith.constant 0 : index
    %c1_338 = arith.constant 1 : index
    %c0_339 = arith.constant 0 : index
    %304 = vector.load %arg24[%c0_337, %c1_338, %c0_339] : memref<2x9x80xf32, #tpu.memory_space<vmem>>, vector<1x8x80xf32>
    %305 = vector.shape_cast %304 : vector<1x8x80xf32> to vector<8x80xf32>
    %c0_340 = arith.constant 0 : index
    %c0_341 = arith.constant 0 : index
    %c0_342 = arith.constant 0 : index
    %306 = vector.load %arg16[%c0_340, %c0_341, %c0_342] : memref<3x80x32xf32, #tpu.memory_space<vmem>>, vector<1x80x32xf32>
    %307 = vector.shape_cast %306 : vector<1x80x32xf32> to vector<80x32xf32>
    %cst_343 = arith.constant dense<0.000000e+00> : vector<8x32xf32>
    %308 = tpu.matmul %303, %307, %cst_343 {dimension_numbers = #tpu.dot_dimension_numbers<[1], [0], [0], [1], [0, 0, 1, 1], [], []>} : vector<8x80xf32>, vector<80x32xf32>, vector<8x32xf32> -> vector<8x32xf32>
    %c1_344 = arith.constant 1 : index
    %c0_345 = arith.constant 0 : index
    %c0_346 = arith.constant 0 : index
    %309 = vector.load %arg16[%c1_344, %c0_345, %c0_346] : memref<3x80x32xf32, #tpu.memory_space<vmem>>, vector<1x80x32xf32>
    %310 = vector.shape_cast %309 : vector<1x80x32xf32> to vector<80x32xf32>
    %cst_347 = arith.constant dense<0.000000e+00> : vector<8x32xf32>
    %311 = tpu.matmul %303, %310, %cst_347 {dimension_numbers = #tpu.dot_dimension_numbers<[1], [0], [0], [1], [0, 0, 1, 1], [], []>} : vector<8x80xf32>, vector<80x32xf32>, vector<8x32xf32> -> vector<8x32xf32>
    %c2_348 = arith.constant 2 : index
    %c0_349 = arith.constant 0 : index
    %c0_350 = arith.constant 0 : index
    %312 = vector.load %arg16[%c2_348, %c0_349, %c0_350] : memref<3x80x32xf32, #tpu.memory_space<vmem>>, vector<1x80x32xf32>
    %313 = vector.shape_cast %312 : vector<1x80x32xf32> to vector<80x32xf32>
    %cst_351 = arith.constant dense<0.000000e+00> : vector<8x32xf32>
    %314 = tpu.matmul %305, %313, %cst_351 {dimension_numbers = #tpu.dot_dimension_numbers<[1], [0], [0], [1], [0, 0, 1, 1], [], []>} : vector<8x80xf32>, vector<80x32xf32>, vector<8x32xf32> -> vector<8x32xf32>
    %315 = arith.addf %311, %314 : vector<8x32xf32>
    %c0_352 = arith.constant 0 : index
    %c0_353 = arith.constant 0 : index
    %c0_354 = arith.constant 0 : index
    %316 = vector.load %arg17[%c0_352, %c0_353, %c0_354] : memref<2x16x8xf32, #tpu.memory_space<vmem>>, vector<1x16x8xf32>
    %317 = vector.shape_cast %316 : vector<1x16x8xf32> to vector<16x8xf32>
    %cst_355 = arith.constant dense<0.000000e+00> : vector<16x32xf32>
    %318 = tpu.matmul %317, %308, %cst_355 {dimension_numbers = #tpu.dot_dimension_numbers<[1], [0], [0], [1], [0, 0, 1, 1], [], []>} : vector<16x8xf32>, vector<8x32xf32>, vector<16x32xf32> -> vector<16x32xf32>
    %c1_356 = arith.constant 1 : index
    %c0_357 = arith.constant 0 : index
    %c0_358 = arith.constant 0 : index
    %319 = vector.load %arg17[%c1_356, %c0_357, %c0_358] : memref<2x16x8xf32, #tpu.memory_space<vmem>>, vector<1x16x8xf32>
    %320 = vector.shape_cast %319 : vector<1x16x8xf32> to vector<16x8xf32>
    %cst_359 = arith.constant dense<0.000000e+00> : vector<16x32xf32>
    %321 = tpu.matmul %320, %315, %cst_359 {dimension_numbers = #tpu.dot_dimension_numbers<[1], [0], [0], [1], [0, 0, 1, 1], [], []>} : vector<16x8xf32>, vector<8x32xf32>, vector<16x32xf32> -> vector<16x32xf32>
    %322 = arith.addf %318, %321 : vector<16x32xf32>
    %c0_360 = arith.constant 0 : index
    %c0_361 = arith.constant 0 : index
    %323 = vector.load %arg18[%c0_360, %c0_361] : memref<1x32xf32, #tpu.memory_space<vmem>>, vector<1x32xf32>
    %324 = vector.broadcast %323 : vector<1x32xf32> to vector<16x32xf32>
    %325 = arith.addf %322, %324 : vector<16x32xf32>
    %cst_362 = arith.constant 0.000000e+00 : f32
    %326 = vector.broadcast %cst_362 : f32 to vector<16x32xf32>
    %327 = arith.maximumf %325, %326 : vector<16x32xf32>
    %c0_363 = arith.constant 0 : index
    %c0_364 = arith.constant 0 : index
    %c0_365 = arith.constant 0 : index
    %328 = vector.load %arg19[%c0_363, %c0_364, %c0_365] : memref<2x16x32xf32, #tpu.memory_space<vmem>>, vector<1x16x32xf32>
    %329 = vector.shape_cast %328 : vector<1x16x32xf32> to vector<16x32xf32>
    %330 = vector.shape_cast %327 : vector<16x32xf32> to vector<1x16x32xf32>
    tpu.vector_store %arg19[%c0_363, %c0_364, %c0_365], %330 {strides = array<i32>} : memref<2x16x32xf32, #tpu.memory_space<vmem>>, vector<1x16x32xf32>,
    %c1_366 = arith.constant 1 : index
    %c0_367 = arith.constant 0 : index
    %c0_368 = arith.constant 0 : index
    %331 = vector.load %arg24[%c1_366, %c0_367, %c0_368] : memref<2x9x80xf32, #tpu.memory_space<vmem>>, vector<1x8x80xf32>
    %332 = vector.shape_cast %331 : vector<1x8x80xf32> to vector<8x80xf32>
    %c1_369 = arith.constant 1 : index
    %c1_370 = arith.constant 1 : index
    %c0_371 = arith.constant 0 : index
    %333 = vector.load %arg24[%c1_369, %c1_370, %c0_371] : memref<2x9x80xf32, #tpu.memory_space<vmem>>, vector<1x8x80xf32>
    %334 = vector.shape_cast %333 : vector<1x8x80xf32> to vector<8x80xf32>
    %c0_372 = arith.constant 0 : index
    %c0_373 = arith.constant 0 : index
    %c0_374 = arith.constant 0 : index
    %335 = vector.load %arg16[%c0_372, %c0_373, %c0_374] : memref<3x80x32xf32, #tpu.memory_space<vmem>>, vector<1x80x32xf32>
    %336 = vector.shape_cast %335 : vector<1x80x32xf32> to vector<80x32xf32>
    %cst_375 = arith.constant dense<0.000000e+00> : vector<8x32xf32>
    %337 = tpu.matmul %332, %336, %cst_375 {dimension_numbers = #tpu.dot_dimension_numbers<[1], [0], [0], [1], [0, 0, 1, 1], [], []>} : vector<8x80xf32>, vector<80x32xf32>, vector<8x32xf32> -> vector<8x32xf32>
    %c1_376 = arith.constant 1 : index
    %c0_377 = arith.constant 0 : index
    %c0_378 = arith.constant 0 : index
    %338 = vector.load %arg16[%c1_376, %c0_377, %c0_378] : memref<3x80x32xf32, #tpu.memory_space<vmem>>, vector<1x80x32xf32>
    %339 = vector.shape_cast %338 : vector<1x80x32xf32> to vector<80x32xf32>
    %cst_379 = arith.constant dense<0.000000e+00> : vector<8x32xf32>
    %340 = tpu.matmul %332, %339, %cst_379 {dimension_numbers = #tpu.dot_dimension_numbers<[1], [0], [0], [1], [0, 0, 1, 1], [], []>} : vector<8x80xf32>, vector<80x32xf32>, vector<8x32xf32> -> vector<8x32xf32>
    %c2_380 = arith.constant 2 : index
    %c0_381 = arith.constant 0 : index
    %c0_382 = arith.constant 0 : index
    %341 = vector.load %arg16[%c2_380, %c0_381, %c0_382] : memref<3x80x32xf32, #tpu.memory_space<vmem>>, vector<1x80x32xf32>
    %342 = vector.shape_cast %341 : vector<1x80x32xf32> to vector<80x32xf32>
    %cst_383 = arith.constant dense<0.000000e+00> : vector<8x32xf32>
    %343 = tpu.matmul %334, %342, %cst_383 {dimension_numbers = #tpu.dot_dimension_numbers<[1], [0], [0], [1], [0, 0, 1, 1], [], []>} : vector<8x80xf32>, vector<80x32xf32>, vector<8x32xf32> -> vector<8x32xf32>
    %344 = arith.addf %340, %343 : vector<8x32xf32>
    %c0_384 = arith.constant 0 : index
    %c0_385 = arith.constant 0 : index
    %c0_386 = arith.constant 0 : index
    %345 = vector.load %arg17[%c0_384, %c0_385, %c0_386] : memref<2x16x8xf32, #tpu.memory_space<vmem>>, vector<1x16x8xf32>
    %346 = vector.shape_cast %345 : vector<1x16x8xf32> to vector<16x8xf32>
    %cst_387 = arith.constant dense<0.000000e+00> : vector<16x32xf32>
    %347 = tpu.matmul %346, %337, %cst_387 {dimension_numbers = #tpu.dot_dimension_numbers<[1], [0], [0], [1], [0, 0, 1, 1], [], []>} : vector<16x8xf32>, vector<8x32xf32>, vector<16x32xf32> -> vector<16x32xf32>
    %c1_388 = arith.constant 1 : index
    %c0_389 = arith.constant 0 : index
    %c0_390 = arith.constant 0 : index
    %348 = vector.load %arg17[%c1_388, %c0_389, %c0_390] : memref<2x16x8xf32, #tpu.memory_space<vmem>>, vector<1x16x8xf32>
    %349 = vector.shape_cast %348 : vector<1x16x8xf32> to vector<16x8xf32>
    %cst_391 = arith.constant dense<0.000000e+00> : vector<16x32xf32>
    %350 = tpu.matmul %349, %344, %cst_391 {dimension_numbers = #tpu.dot_dimension_numbers<[1], [0], [0], [1], [0, 0, 1, 1], [], []>} : vector<16x8xf32>, vector<8x32xf32>, vector<16x32xf32> -> vector<16x32xf32>
    %351 = arith.addf %347, %350 : vector<16x32xf32>
    %c0_392 = arith.constant 0 : index
    %c0_393 = arith.constant 0 : index
    %352 = vector.load %arg18[%c0_392, %c0_393] : memref<1x32xf32, #tpu.memory_space<vmem>>, vector<1x32xf32>
    %353 = vector.broadcast %352 : vector<1x32xf32> to vector<16x32xf32>
    %354 = arith.addf %351, %353 : vector<16x32xf32>
    %cst_394 = arith.constant 0.000000e+00 : f32
    %355 = vector.broadcast %cst_394 : f32 to vector<16x32xf32>
    %356 = arith.maximumf %354, %355 : vector<16x32xf32>
    %c1_395 = arith.constant 1 : index
    %c0_396 = arith.constant 0 : index
    %c0_397 = arith.constant 0 : index
    %357 = vector.load %arg19[%c1_395, %c0_396, %c0_397] : memref<2x16x32xf32, #tpu.memory_space<vmem>>, vector<1x16x32xf32>
    %358 = vector.shape_cast %357 : vector<1x16x32xf32> to vector<16x32xf32>
    %359 = vector.shape_cast %356 : vector<16x32xf32> to vector<1x16x32xf32>
    tpu.vector_store %arg19[%c1_395, %c0_396, %c0_397], %359 {strides = array<i32>} : memref<2x16x32xf32, #tpu.memory_space<vmem>>, vector<1x16x32xf32>,
    return
  }
}

</mosaic_0001>

<bundles_post_ra>
// kernel: custom-call.1
= control target key start
LH: loop header
LB: loop body
LE: loop exit
PB: predicated region body
PF: predicated region fallthrough
CT: control target
= control target key end

     0   :  { %s51_s0 = inlined_call_operand.hbm [shape: c64[1,2,16,16], index: 0, kind: input, shape index: {}]   ;;  %s52_s1 = inlined_call_operand.vmem [shape: f32[1,2,16,16], index: 1, kind: output, shape index: {}]  }
   0x1   :  { %s2_s8 = scalar_lea.hbm %s51_s0, 512 }
   0x2   :  { %3 = vsyncpa [#allocation0], 0  ;;  %s4_s11 = sshll.u32 %s52_s1, 4  ;;  %s5_s11 = int_to_ptr.vmem [resolvable:$true] %s4_s11 }
   0x3   :  { %s20_s12 = scalar_lea.vmem %s5_s11, 512  ;;  %p25_p1 = scmp.lt.s32.totalorder %s5_s11, %s5_s11 }
   0x4   :  { %p21_p0 = scmp.ne.s32.totalorder %s5_s11, %s20_s12  ;;  %p26_p2 = scmp.lt.s32.totalorder %s20_s12, %s20_s12 }
   0x6   :  { %p27_p3 = por %p26_p2, %p25_p1 }
   0x8   :  { %p28_p4 = pnand %p27_p3, %p21_p0 }
   0xa   :  { %31 = shalt.err (!%p28_p4)  }
   0xb   :  { %7 = dma.hbm_to_vmem [thread:$0]  %s2_s8, 512, %s5_s11, [#allocation0] }
   0xc   :  { %33 = dma.done.wait [#allocation0], 512  }
   0xd   :  { %34 = vsyncadd [#allocation0], 4294966784 }
   0xe   :  { %9 = vsyncpa [#allocation0], 1 }

// kernel: custom-call
= control target key start
LH: loop header
LB: loop body
LE: loop exit
PB: predicated region body
PF: predicated region fallthrough
CT: control target
= control target key end

     0   :  { %2 = vsyncpa [#allocation0], 0  ;;  %s47_s0 = inlined_call_operand.hbm [shape: c64[1,2,16,16], index: 0, kind: input, shape index: {}]   ;;  %s48_s1 = inlined_call_operand.vmem [shape: f32[1,2,16,16], index: 1, kind: output, shape index: {}]  }
   0x1   :  { %s3_s8 = sshll.u32 %s48_s1, 4  ;;  %s4_s8 = int_to_ptr.vmem [resolvable:$true] %s3_s8 }
   0x2   :  { %s17_s9 = scalar_lea.vmem %s4_s8, 512  ;;  %p22_p1 = scmp.lt.s32.totalorder %s4_s8, %s4_s8 }
   0x3   :  { %p18_p0 = scmp.ne.s32.totalorder %s4_s8, %s17_s9  ;;  %p23_p2 = scmp.lt.s32.totalorder %s17_s9, %s17_s9 }
   0x5   :  { %p24_p3 = por %p23_p2, %p22_p1 }
   0x7   :  { %p25_p4 = pnand %p24_p3, %p18_p0 }
   0x9   :  { %28 = shalt.err (!%p25_p4)  }
   0xa   :  { %6 = dma.hbm_to_vmem [thread:$0]  %s47_s0, 512, %s4_s8, [#allocation0] }
   0xb   :  { %29 = dma.done.wait [#allocation0], 512  }
   0xc   :  { %30 = vsyncadd [#allocation0], 4294966784 }
   0xd   :  { %8 = vsyncpa [#allocation0], 1 }

// kernel: custom-call.2
= control target key start
LH: loop header
LB: loop body
LE: loop exit
PB: predicated region body
PF: predicated region fallthrough
CT: control target
= control target key end

     0   :  { %s112_s0 = inlined_call_operand.vmem [shape: f32[1,2,16,16], index: 0, kind: input, shape index: {}]   ;;  %s113_s1 = inlined_call_operand.vmem [shape: f32[1,2,16,16], index: 1, kind: input, shape index: {}]   ;;  %s114_s2 = inlined_call_operand.vmem [shape: c64[1,2,16,16], index: 2, kind: output, shape index: {}]  }
   0x1   :  { %v5_v0 = vld [vmem:[%s112_s0] sm:$0xff]  ;;  %v36_v1 = vld [vmem:[%s112_s0 + $0x8] sm:$0xff]  ;;  %v38_v2 = vld [vmem:[%s112_s0 + $0x10] sm:$0xff] }
   0x2   :  { %6 = vst [vmem:[%s114_s2] sm:$0xff] %v5_v0  ;;  %37 = vst [vmem:[%s114_s2 + $0x8] sm:$0xff] %v36_v1  ;;  %v40_v3 = vld [vmem:[%s112_s0 + $0x18] sm:$0xff]  ;;  %v19_v4 = vld [vmem:[%s113_s1] sm:$0xff] }
   0x3   :  { %39 = vst [vmem:[%s114_s2 + $0x10] sm:$0xff] %v38_v2  ;;  %v43_v5 = vld [vmem:[%s113_s1 + $0x8] sm:$0xff]  ;;  %41 = vst [vmem:[%s114_s2 + $0x18] sm:$0xff] %v40_v3  ;;  %v45_v6 = vld [vmem:[%s113_s1 + $0x10] sm:$0xff] }
   0x4   :  { %42 = vst [vmem:[%s114_s2 + $0x20] sm:$0xff] %v19_v4  ;;  %44 = vst [vmem:[%s114_s2 + $0x28] sm:$0xff] %v43_v5  ;;  %v47_v7 = vld [vmem:[%s113_s1 + $0x18] sm:$0xff] }
   0x5   :  { %46 = vst [vmem:[%s114_s2 + $0x30] sm:$0xff] %v45_v6  ;;  %48 = vst [vmem:[%s114_s2 + $0x38] sm:$0xff] %v47_v7 }

// kernel: hybrid_autoencoder_6_forward.1
= control target key start
LH: loop header
LB: loop body
LE: loop exit
PB: predicated region body
PF: predicated region fallthrough
CT: control target
= control target key end

     0   :  { %s9112_s0 = inlined_call_operand.vmem [shape: f32[2,16,32], index: 0, kind: input, shape index: {}]   ;;  %s9113_s1 = inlined_call_operand.hbm [shape: f32[3,32,80], index: 1, kind: input, shape index: {}]   ;;  %s9114_s2 = inlined_call_operand.vmem [shape: f32[3,8,16], index: 2, kind: input, shape index: {}]   ;;  %s9115_s3 = inlined_call_operand.vmem [shape: f32[1,80], index: 3, kind: input, shape index: {}]   ;;  %s9116_s4 = inlined_call_operand.vmem [shape: f32[3,80,80], index: 4, kind: input, shape index: {}]   ;;  %s9117_s5 = inlined_call_operand.vmem [shape: f32[3,4,8], index: 5, kind: input, shape index: {}]   ;;  %s9118_s6 = inlined_call_operand.vmem [shape: f32[1,80], index: 6, kind: input, shape index: {}]   ;;  %s9119_s7 = inlined_call_operand.vmem [shape: f32[3,80,80], index: 7, kind: input, shape index: {}]   ;;  %s9120_s8 = inlined_call_operand.vmem [shape: f32[3,2,4], index: 8, kind: input, shape index: {}]   ;;  %s9121_s9 = inlined_call_operand.hbm [shape: f32[1,80], index: 9, kind: input, shape index: {}]   ;;  %s9122_s10 = inlined_call_operand.vmem [shape: f32[3,80,80], index: 10, kind: input, shape index: {}]   ;;  %s9123_s11 = inlined_call_operand.vmem [shape: f32[2,4,2], index: 11, kind: input, shape index: {}]   ;;  %s9124_s12 = inlined_call_operand.vmem [shape: f32[1,80], index: 12, kind: input, shape index: {}]   ;;  %s9125_s13 = inlined_call_operand.hbm [shape: f32[3,80,80], index: 13, kind: input, shape index: {}]   ;;  %s9126_s14 = inlined_call_operand.vmem [shape: f32[2,8,4], index: 14, kind: input, shape index: {}]   ;;  %s9127_s15 = inlined_call_operand.vmem [shape: f32[1,80], index: 15, kind: input, shape index: {}]   ;;  %s9128_s16 = inlined_call_operand.vmem [shape: f32[3,80,32], index: 16, kind: input, shape index: {}]   ;;  %s9129_s17 = inlined_call_operand.vmem [shape: f32[2,16,8], index: 17, kind: input, shape index: {}]   ;;  %s9130_s18 = inlined_call_operand.vmem [shape: f32[1,32], index: 18, kind: input, shape index: {}]   ;;  %s9131_s19 = inlined_call_operand.vmem [shape: f32[2,16,32], index: 19, kind: output, shape index: {}]  }
   0x1   :  { %9134 = sst [smem:[#allocation14_spill]] %s9112_s0 }
   0x2   :  { %9135 = sst [smem:[#allocation15_spill]] %s9113_s1 }
   0x3   :  { %9136 = sst [smem:[#allocation16_spill]] %s9114_s2 }
   0x4   :  { %9137 = sst [smem:[#allocation17_spill]] %s9115_s3 }
   0x5   :  { %24 = vsyncpa [#allocation8], 0 }
   0x6   :  { %25 = vsyncpa [#allocation10], 0  ;;  %s7227_s0 = smov [#allocation9]   ;;  %s7228_s20 = smov [#allocation7]  }
   0x7   :  { %s60_s30 = sshll.u32 %s7227_s0, 4  ;;  %s33_s21 = sshll.u32 %s7228_s20, 4  ;;  %s61_s30 = int_to_ptr.vmem [resolvable:$true] %s60_s30  ;;  %s34_s21 = int_to_ptr.vmem [resolvable:$true] %s33_s21 }
   0x8   :  { %s7171_s1 = scalar_lea.vmem %s61_s30, 16  ;;  %s7175_s22 = scalar_lea.vmem %s61_s30, 32 }
   0x9   :  { %p7172_p0 = scmp.ne.s32.totalorder %s61_s30, %s7171_s1  ;;  %p7176_p1 = scmp.lt.s32.totalorder %s61_s30, %s61_s30 }
   0xa   :  { %p7177_p2 = scmp.lt.s32.totalorder %s7175_s22, %s7171_s1 }
   0xc   :  { %p7178_p3 = por %p7177_p2, %p7176_p1 }
   0xe   :  { %p7179_p4 = pnand %p7178_p3, %p7172_p0 }
  0x10   :  { %7182 = shalt.err (!%p7179_p4)
}
  0x11   :  { %63 = dma.hbm_to_vmem [thread:$0]  %s9121_s9, 16, %s61_s30, [#allocation10]  }
  0x12   :  { %s7191_s24 = scalar_lea.vmem %s34_s21, 1536  ;;  %p7196_p6 = scmp.lt.s32.totalorder %s34_s21, %s34_s21 }
  0x13   :  { %p7192_p5 = scmp.ne.s32.totalorder %s34_s21, %s7191_s24  ;;  %p7197_p7 = scmp.lt.s32.totalorder %s7191_s24, %s7191_s24 }
  0x15   :  { %p7198_p8 = por %p7197_p7, %p7196_p6 }
  0x17   :  { %p7199_p9 = pnand %p7198_p8, %p7192_p5 }
  0x19   :  { %7202 = shalt.err (!%p7199_p9)
}
  0x1a   :  { %s7229_s25 = smov 128   ;;  %s7230_s3 = smov 8  }
  0x1b   :  { %s9138_s28 = sld [smem:[#allocation15_spill]]  ;;  %s7231_s29 = smov [#allocation11]  }
  0x1c   :  { %s75_s0 = sshll.u32 %s7231_s29, 4  ;;  %s76_s0 = int_to_ptr.vmem [resolvable:$true] %s75_s0 }
  0x1d   :  { %s7211_s20 = scalar_lea.vmem %s76_s0, 3840  ;;  %p7216_p11 = scmp.lt.s32.totalorder %s76_s0, %s76_s0 }
  0x1e   :  { %p7212_p10 = scmp.ne.s32.totalorder %s76_s0, %s7211_s20  ;;  %p7217_p12 = scmp.lt.s32.totalorder %s7211_s20, %s7211_s20 }
  0x20   :  { %p7218_p13 = por %p7217_p12, %p7216_p11 }
  0x21   :  { %39 = dma.hbm_to_vmem [thread:$0]  %s9138_s28, 1536, %s34_s21, [#allocation8], %s7229_s25, %s7229_s25, %s7230_s3  }
  0x22   :  { %p7219_p0 = pnand %p7218_p13, %p7212_p10 }
  0x24   :  { %7222 = shalt.err (!%p7219_p0)
}
  0x25   :  { %81 = dma.hbm_to_vmem [thread:$0]  %s9125_s13, 3840, %s76_s0, [#allocation10], %s7229_s25, %s7229_s25, %s7230_s3  }
  0x26   :  { %7223 = dma.done.wait [#allocation8], 1536  }
  0x27   :  { %7224 = vsyncadd [#allocation8], 4294965760 }
  0x28   :  { %7225 = dma.done.wait [#allocation10], 3856  }
  0x29   :  { %7226 = vsyncadd [#allocation10], 4294963440  ;;  %v7232_v0 = vmov 0.0   ;;  %vm7233_vm0 = vmmov 0   ;;  %s9139_s22 = sld [smem:[#allocation14_spill]]  ;;  %vm116_vm1 = vcmask 130048  }
  0x2a   :  { %6238 = vmatprep.subr.mxu0 %v7232_v0  ;;  %6242 = vmatprep.mubr.msk.f32.mxu0 %vm7233_vm0, %v7232_v0  ;;  %s9140_s25 = sld [smem:[#allocation16_spill]]  ;;  %v7358_v4 = vld [vmem:[#allocation7 + $0x18] sm:$0xff]  ;;  %v192_v5 = vld [vmem:[#allocation7 + $0x10] sm:$0xff]  ;;  %v191_v8 = vld [vmem:[#allocation7 + $0x8] sm:$0xff]  ;;  %vm274_vm2 = vcmask 261120   ;;  %vm107_vm3 = vcmask 654336  }
  0x2b   :  { %6263 = vmatprep.subr.mxu1 %v7232_v0  ;;  %6271 = vmatprep.mubr.msk.f32.mxu1 %vm7233_vm0, %v7232_v0  ;;  %v7371_v7 = vld [vmem:[#allocation7 + $0x38] sm:$0xff]  ;;  %v7381_v9 = vld [vmem:[#allocation7 + $0x30] sm:$0xff]  ;;  %v190_v10 = vld [vmem:[#allocation7] sm:$0xff]  ;;  %108 = vst.msk [vmem:[#allocation6] sm:$0xff] %vm107_vm3, %v7232_v0  ;;  %s9141_s1 = sld [smem:[#allocation17_spill]]  ;;  %vm1055_vm4 = vcmask 64512  }
  0x2c   :  { %6264 = vmatpush3.msra.mxu1 %v7358_v4  ;;  %v7385_v11 = vld [vmem:[#allocation7 + $0x28] sm:$0xff]  ;;  %v7390_v12 = vld [vmem:[#allocation7 + $0x20] sm:$0xff]  ;;  %v500_v20 = vld [vmem:[#allocation7 + $0x58] sm:$0xff]  ;;  %111 = vst.msk [vmem:[#allocation6 + $0x10] sm:$0xff] %vm107_vm3, %v7232_v0  ;;  %vm1540_vm5 = vcmask 650240   ;;  %vm2032_vm6 = vcmask 1043456  }
  0x2d   :  { %6265 = vmatprep.subr.mxu1 %v7232_v0  ;;  %v499_v21 = vld [vmem:[#allocation7 + $0x50] sm:$0xff]  ;;  %v498_v22 = vld [vmem:[#allocation7 + $0x48] sm:$0xff]  ;;  %v497_v23 = vld [vmem:[#allocation7 + $0x40] sm:$0xff]  ;;  %vm2028_vm7 = vcmask 31744   ;;  %vm101_vm8 = vcmask 649216   ;;  %vm2517_vm9 = vcmask 648192  }
  0x2e   :  { %6266 = vmatpush3.msra.mxu1 %v192_v5  ;;  %v7489_v46 = vld [vmem:[%s9116_s4 + $0x98] sm:$0xff]  ;;  %v1054_v48 = vld [vmem:[%s9117_s5] sm:$0xf]  ;;  %v7505_v51 = vld [vmem:[%s9116_s4 + $0x90] sm:$0xff]  ;;  %102 = vst.msk [vmem:[#allocation4] sm:$0x7] %vm101_vm8, %v7232_v0 }
  0x2f   :  { %v114_v1 = vld [vmem:[%s9139_s22 + $0x8] sm:$0xff]  ;;  %v113_v2 = vld [vmem:[%s9139_s22] sm:$0xff]  ;;  %6267 = vmatprep.subr.mxu1 %v7232_v0  ;;  %v7409_v18 = vld [vmem:[%s9139_s22 + $0x18] sm:$0xff]  ;;  %103 = vst.msk [vmem:[#allocation4 + $0x4] sm:$0x7] %vm101_vm8, %v7232_v0  ;;  %vm3263_vm10 = vcmask 1041408  }
  0x30   :  { %6239 = vmatpush3.msra.mxu0 %v114_v1  ;;  %v115_v3 = vld [vmem:[%s9140_s25] sm:$0xff]  ;;  %v5529_v6 = vld [vmem:[%s9140_s25 + $0x8] sm:$0xff]  ;;  %6268 = vmatpush3.msra.mxu1 %v191_v8  ;;  %v7403_v17 = vld [vmem:[%s9140_s25 + $0x10] sm:$0xff]  ;;  %vm3259_vm11 = vcmask 15360   ;;  %vm104_vm12 = vcmask 651264   ;;  %vm109_vm13 = vcmask 647168  }
  0x31   :  { %6240 = vmatprep.subr.mxu0 %v7232_v0  ;;  %6269 = vmatprep.subr.mxu1 %v7232_v0  ;;  %v7417_v19 = vld [vmem:[%s9139_s22 + $0x10] sm:$0xff]  ;;  %v7480_v36 = vld [vmem:[%s9141_s1] ss:$0 sm:$0xff]  ;;  %v5549_v52 = vld [vmem:[%s9117_s5 + $0x4] sm:$0xf] }
  0x32   :  { %6241 = vmatpush3.msra.mxu0 %v113_v2  ;;  %6270 = vmatpush3.msra.mxu1 %v190_v10  ;;  %v7518_v53 = vld [vmem:[%s9116_s4 + $0x88] sm:$0xff]  ;;  %v7531_v55 = vld [vmem:[%s9116_s4 + $0x80] sm:$0xff]  ;;  %v7545_v57 = vld [vmem:[%s9116_s4 + $0x78] sm:$0xff]  ;;  %105 = vst.msk [vmem:[#allocation5] sm:$0x1f] %vm104_vm12, %v7232_v0 }
  0x33   :  { %6243 = vmatmul.mubr.msk.f32.vlgmr.msra.gmra.mxu0 %vm116_vm1, %v115_v3  ;;  %6245 = vmatprep.subr.mxu0 %v7232_v0  ;;  %v7524_v54 = vld [vmem:[%s9116_s4 + $0x48] sm:$0xff]  ;;  %v7537_v56 = vld [vmem:[%s9116_s4 + $0x40] sm:$0xff]  ;;  %v7551_v58 = vld [vmem:[%s9116_s4 + $0x38] sm:$0xff]  ;;  %106 = vst.msk [vmem:[#allocation5 + $0x8] sm:$0x1f] %vm104_vm12, %v7232_v0 }
  0x34   :  { %6246 = vmatpush3.msra.mxu0 %v114_v1  ;;  %6249 = vmatprep.mubr.msk.f32.mxu0 %vm7233_vm0, %v7232_v0  ;;  %v7559_v59 = vld [vmem:[%s9116_s4 + $0x70] sm:$0xff]  ;;  %v7574_v61 = vld [vmem:[%s9116_s4 + $0x28] sm:$0xff]  ;;  %v7583_v62 = vld [vmem:[%s9116_s4 + $0x20] sm:$0xff]  ;;  %110 = vst.msk [vmem:[#allocation6 + $0x8] sm:$0x1] %vm109_vm13, %v7232_v0 }
  0x35   :  { %6247 = vmatprep.subr.mxu0 %v7232_v0  ;;  %6281 = vmatprep.subr.mxu1 %v7232_v0  ;;  %v7565_v60 = vld [vmem:[%s9116_s4 + $0x30] sm:$0xff]  ;;  %v7592_v63 = vld [vmem:[%s9116_s4 + $0x18] sm:$0xff]  ;;  %112 = vst.msk [vmem:[#allocation6 + $0x18] sm:$0x1] %vm109_vm13, %v7232_v0 }
  0x36   :  { %6248 = vmatpush3.msra.mxu0 %v113_v2 }
  0x37   :  { %6250 = vmatmul.mubr.msk.f32.vlgmr.msra.gmra.mxu0 %vm116_vm1, %v5529_v6  ;;  %6252 = vmatprep.subr.mxu0 %v7232_v0 }
  0x38   :  { %6253 = vmatpush3.msra.mxu0 %v7371_v7  ;;  %6260 = vmatprep.mubr.msk.f32.mxu0 %vm7233_vm0, %v7232_v0 }
  0x39   :  { %6254 = vmatprep.subr.mxu0 %v7232_v0 }
  0x3a   :  { %6255 = vmatpush3.msra.mxu0 %v7381_v9 }
  0x3b   :  { %6256 = vmatprep.subr.mxu0 %v7232_v0 }
  0x3c   :  { %6257 = vmatpush3.msra.mxu0 %v7385_v11 }
  0x3d   :  { %6258 = vmatprep.subr.mxu0 %v7232_v0 }
  0x3e   :  { %6259 = vmatpush3.msra.mxu0 %v7390_v12 }
  0x3f   :  { %6274 = vmatprep.subr.mxu0 %v7232_v0 }
  0xf3   :  { %v186_v13 = vpop.f32.mrf.mxu0 }
  0xf4   :  { %6272 = vmatmul.mubr.msk.f32.vlgmr.msra.gmra.mxu1 %vm274_vm2, %v186_v13 }
  0xf5   :  { %v6244_v14 = vpop.f32.mrf.mxu0  ;;  %6289 = vmatprep.mubr.msk.f32.mxu1 %vm7233_vm0, %v7232_v0  ;;  %6282 = vmatpush3.msra.mxu1 %v500_v20 }
  0xf6   :  { %6283 = vmatprep.subr.mxu1 %v7232_v0  ;;  %v7658_v14 = vld [vmem:[%s9116_s4 + $0xe0] sm:$0xff] }
  0xf7   :  { %v265_v15 = vpop.f32.mrf.mxu0  ;;  %6284 = vmatpush3.msra.mxu1 %v499_v21 }
  0xf8   :  { %6261 = vmatmul.mubr.msk.f32.vlgmr.msra.gmra.mxu0 %vm274_vm2, %v265_v15  ;;  %6285 = vmatprep.subr.mxu1 %v7232_v0 }
  0xf9   :  { %v6251_v16 = vpop.f32.mrf.mxu0  ;;  %6275 = vmatpush3.msra.mxu0 %v114_v1  ;;  %6278 = vmatprep.mubr.msk.f32.mxu0 %vm7233_vm0, %v7232_v0  ;;  %v7599_v1 = vld [vmem:[%s9116_s4 + $0x10] sm:$0xff] }
  0xfa   :  { %6276 = vmatprep.subr.mxu0 %v7232_v0  ;;  %6286 = vmatpush3.msra.mxu1 %v498_v22 }
  0xfb   :  { %6277 = vmatpush3.msra.mxu0 %v113_v2  ;;  %6287 = vmatprep.subr.mxu1 %v7232_v0  ;;  %v7608_v2 = vld [vmem:[%s9116_s4 + $0x68] sm:$0xff] }
  0xfc   :  { %6279 = vmatmul.mubr.msk.f32.vlgmr.msra.gmra.mxu0 %vm116_vm1, %v7403_v17  ;;  %6292 = vmatprep.subr.mxu0 %v7232_v0 }
  0xfd   :  { %6293 = vmatpush3.msra.mxu0 %v7409_v18  ;;  %6296 = vmatprep.mubr.msk.f32.mxu0 %vm7233_vm0, %v7232_v0 }
  0xfe   :  { %6294 = vmatprep.subr.mxu0 %v7232_v0  ;;  %6288 = vmatpush3.msra.mxu1 %v497_v23 }
  0xff   :  { %6295 = vmatpush3.msra.mxu0 %v7417_v19  ;;  %6306 = vmatprep.subr.mxu1 %v7232_v0 }
 0x100   :  { %6297 = vmatmul.mubr.msk.f32.vlgmr.msra.gmra.mxu0 %vm116_vm1, %v115_v3  ;;  %6299 = vmatprep.subr.mxu0 %v7232_v0  ;;  %v7614_v3 = vld [vmem:[%s9116_s4 + $0x8] sm:$0xff] }
 0x101   :  { %6300 = vmatpush3.msra.mxu0 %v7409_v18  ;;  %6303 = vmatprep.mubr.msk.f32.mxu0 %vm7233_vm0, %v7232_v0 }
 0x102   :  { %6301 = vmatprep.subr.mxu0 %v7232_v0 }
 0x103   :  { %6302 = vmatpush3.msra.mxu0 %v7417_v19 }
 0x104   :  { %6304 = vmatmul.mubr.msk.f32.vlgmr.msra.gmra.mxu0 %vm116_vm1, %v5529_v6  ;;  %6317 = vmatprep.subr.mxu0 %v7232_v0  ;;  %v7635_v6 = vld [vmem:[%s9116_s4 + $0x58] sm:$0xff] }
 0x105   :  { %6318 = vmatpush3.msra.mxu0 %v7358_v4  ;;  %6325 = vmatprep.mubr.msk.f32.mxu0 %vm7233_vm0, %v7232_v0  ;;  %v7621_v4 = vld [vmem:[%s9116_s4 + $0x60] sm:$0xff] }
 0x106   :  { %6319 = vmatprep.subr.mxu0 %v7232_v0 }
 0x107   :  { %6320 = vmatpush3.msra.mxu0 %v192_v5  ;;  %v7628_v5 = vld [vmem:[%s9116_s4] sm:$0xff] }
 0x108   :  { %6321 = vmatprep.subr.mxu0 %v7232_v0 }
 0x109   :  { %6322 = vmatpush3.msra.mxu0 %v191_v8 }
 0x10a   :  { %6323 = vmatprep.subr.mxu0 %v7232_v0 }
 0x10b   :  { %6324 = vmatpush3.msra.mxu0 %v190_v10 }
 0x10c   :  { %6335 = vmatprep.subr.mxu0 %v7232_v0 }
 0x1b4   :  { %v417_v24 = vpop.f32.mrf.mxu1 }
 0x1b6   :  { %v6273_v25 = vpop.f32.mrf.mxu1 }
 0x1b7   :  { %v7708_v25 = vld [vmem:[%s9116_s4 + $0xc0] sm:$0xff] }
 0x1b8   :  { %v344_v26 = vpop.f32.mrf.mxu0 }
 0x1b9   :  { %v418_v27 = vadd.f32 %v417_v24, %v344_v26  ;;  %v5578_v26 = vld [vmem:[%s9117_s5 + $0x4] sm:$0xf] }
 0x1ba   :  { %v6262_v28 = vpop.f32.mrf.mxu0 }
 0x1bb   :  { %v7754_v28 = vld [vmem:[%s9116_s4 + $0xb0] sm:$0xff] }
 0x1bc   :  { %v492_v29 = vpop.f32.mrf.mxu0 }
 0x1bd   :  { %6290 = vmatmul.mubr.msk.f32.vlgmr.msra.gmra.mxu1 %vm274_vm2, %v492_v29  ;;  %v7761_v29 = vld [vmem:[%s9116_s4 + $0xa8] sm:$0xff] }
 0x1be   :  { %v6280_v30 = vpop.f32.mrf.mxu0  ;;  %6307 = vmatpush3.msra.mxu1 %v7371_v7  ;;  %6314 = vmatprep.mubr.msk.f32.mxu1 %vm7233_vm0, %v7232_v0  ;;  %v7643_v7 = vld [vmem:[%s9116_s4 + $0x50] sm:$0xff] }
 0x1bf   :  { %6308 = vmatprep.subr.mxu1 %v7232_v0  ;;  %v7767_v30 = vld [vmem:[%s9116_s4 + $0xa0] sm:$0xff] }
 0x1c0   :  { %v658_v31 = vpop.f32.mrf.mxu0  ;;  %6309 = vmatpush3.msra.mxu1 %v7381_v9 }
 0x1c1   :  { %6310 = vmatprep.subr.mxu1 %v7232_v0  ;;  %6326 = vmatmul.mubr.msk.f32.vlgmr.msra.gmra.mxu0 %vm274_vm2, %v658_v31 }
 0x1c2   :  { %v6298_v32 = vpop.f32.mrf.mxu0  ;;  %6311 = vmatpush3.msra.mxu1 %v7385_v11  ;;  %6336 = vmatpush3.msra.mxu0 %v500_v20  ;;  %v7651_v11 = vld [vmem:[%s9116_s4 + $0xe8] sm:$0xff] }
 0x1c3   :  { %6312 = vmatprep.subr.mxu1 %v7232_v0  ;;  %6337 = vmatprep.subr.mxu0 %v7232_v0  ;;  %v5563_v20 = vld [vmem:[%s9117_s5 + $0x8] sm:$0xf] }
 0x1c4   :  { %v736_v33 = vpop.f32.mrf.mxu0  ;;  %6313 = vmatpush3.msra.mxu1 %v7390_v12  ;;  %6338 = vmatpush3.msra.mxu0 %v499_v21  ;;  %v7682_v21 = vld [vmem:[%s9116_s4 + $0xd0] sm:$0xff] }
 0x1c5   :  { %6315 = vmatmul.mubr.msk.f32.vlgmr.msra.gmra.mxu1 %vm274_vm2, %v736_v33  ;;  %6328 = vmatprep.subr.mxu1 %v7232_v0 }
 0x1c6   :  { %v6305_v34 = vpop.f32.mrf.mxu0  ;;  %6329 = vmatpush3.msra.mxu1 %v7409_v18  ;;  %6332 = vmatprep.mubr.msk.f32.mxu1 %vm7233_vm0, %v7232_v0  ;;  %v7669_v18 = vld [vmem:[%s9116_s4 + $0xd8] sm:$0xff] }
 0x1c7   :  { %6330 = vmatprep.subr.mxu1 %v7232_v0  ;;  %6339 = vmatprep.subr.mxu0 %v7232_v0 }
 0x1c8   :  { %6331 = vmatpush3.msra.mxu1 %v7417_v19  ;;  %6340 = vmatpush3.msra.mxu0 %v498_v22  ;;  %v7690_v22 = vld [vmem:[%s9116_s4 + $0xc8] sm:$0xff] }
 0x1c9   :  { %6333 = vmatmul.mubr.msk.f32.vlgmr.msra.gmra.mxu1 %vm116_vm1, %v7403_v17  ;;  %6341 = vmatprep.subr.mxu0 %v7232_v0 }
 0x1ca   :  { %6342 = vmatpush3.msra.mxu0 %v497_v23  ;;  %6343 = vmatprep.mubr.msk.f32.mxu0 %vm7233_vm0, %v7232_v0  ;;  %v1543_v23 = vld [vmem:[%s9117_s5] sm:$0xf] }
 0x1cb   :  { %6346 = vmatprep.subr.mxu1 %v7232_v0  ;;  %6348 = vmatprep.mubr.msk.f32.mxu1 %vm7233_vm0, %v7232_v0 }
 0x1cc   :  { %6356 = vmatprep.subr.mxu0 %v7232_v0 }
 0x27d   :  { %v570_v35 = vpop.f32.mrf.mxu1 }
 0x27e   :  { %v574_v37 = vadd.f32 %v570_v35, %v418_v27  ;;  %v7747_v27 = vld [vmem:[%s9116_s4 + $0xb8] sm:$0xff] }
 0x27f   :  { %v6291_v38 = vpop.f32.mrf.mxu1 }
 0x280   :  { %v582_v39 = vadd.f32 %v7480_v36, %v574_v37 }
 0x281   :  { %v886_v40 = vpop.f32.mrf.mxu0 }
 0x282   :  { %v583_v41 = vmax.f32 %v582_v39, 0.0 }
 0x283   :  { %v6327_v42 = vpop.f32.mrf.mxu0 }
 0x284   :  { %584 = vst.msk [vmem:[#allocation2] sm:$0xff] %vm107_vm3, %v583_v41  ;;  %v5592_v42 = vld [vmem:[%s9117_s5 + $0x8] sm:$0xf] }
 0x285   :  { %v813_v43 = vpop.f32.mrf.mxu1 }
 0x286   :  { %v7484_v44 = vadd.f32 %v886_v40, %v813_v43 }
 0x287   :  { %v6316_v45 = vpop.f32.mrf.mxu1 }
 0x289   :  { %v960_v47 = vpop.f32.mrf.mxu1 }
 0x28a   :  { %6344 = vmatmul.mubr.msk.f32.vlgmr.msra.gmra.mxu0 %vm274_vm2, %v960_v47 }
 0x28b   :  { %v6334_v49 = vpop.f32.mrf.mxu1  ;;  %v7495_v50 = vld [vmem:[#allocation2] sm:$0xff]  ;;  %6357 = vmatpush3.msra.mxu0 %v7489_v46  ;;  %6376 = vmatprep.mubr.msk.f32.mxu0 %vm7233_vm0, %v7232_v0 }
 0x28c   :  { %6347 = vmatpush3.msra.mxu1 %v7495_v50  ;;  %6358 = vmatprep.subr.mxu0 %v7232_v0 }
 0x28d   :  { %6349 = vmatmul.mubr.msk.f32.vlgmr.msra.gmra.mxu1 %vm1055_vm4, %v1054_v48  ;;  %6351 = vmatprep.subr.mxu1 %v7232_v0 }
 0x28e   :  { %6352 = vmatpush3.msra.mxu1 %v7495_v50  ;;  %6353 = vmatprep.mubr.msk.f32.mxu1 %vm7233_vm0, %v7232_v0 }
 0x28f   :  { %6379 = vmatprep.subr.mxu1 %v7232_v0  ;;  %6359 = vmatpush3.msra.mxu0 %v7505_v51 }
 0x290   :  { %6360 = vmatprep.subr.mxu0 %v7232_v0 }
 0x291   :  { %6354 = vmatmul.mubr.msk.f32.vlgmr.msra.gmra.mxu1 %vm1055_vm4, %v5549_v52  ;;  %6361 = vmatpush3.msra.mxu0 %v7518_v53 }
 0x292   :  { %6380 = vmatpush3.msra.mxu1 %v7524_v54  ;;  %6362 = vmatprep.subr.mxu0 %v7232_v0 }
 0x293   :  { %6381 = vmatprep.subr.mxu1 %v7232_v0  ;;  %6363 = vmatpush3.msra.mxu0 %v7531_v55 }
 0x294   :  { %6382 = vmatpush3.msra.mxu1 %v7537_v56  ;;  %6364 = vmatprep.subr.mxu0 %v7232_v0 }
 0x295   :  { %6383 = vmatprep.subr.mxu1 %v7232_v0  ;;  %6365 = vmatpush3.msra.mxu0 %v7545_v57 }
 0x296   :  { %6384 = vmatpush3.msra.mxu1 %v7551_v58  ;;  %6366 = vmatprep.subr.mxu0 %v7232_v0 }
 0x297   :  { %6385 = vmatprep.subr.mxu1 %v7232_v0  ;;  %6367 = vmatpush3.msra.mxu0 %v7559_v59 }
 0x298   :  { %6386 = vmatpush3.msra.mxu1 %v7565_v60  ;;  %6368 = vmatprep.subr.mxu0 %v7232_v0 }
 0x299   :  { %6387 = vmatprep.subr.mxu1 %v7232_v0  ;;  %6399 = vmatprep.mubr.msk.f32.mxu1 %vm7233_vm0, %v7232_v0 }
 0x29a   :  { %6388 = vmatpush3.msra.mxu1 %v7574_v61  ;;  %6369 = vmatpush3.msra.mxu0 %v7608_v2 }
 0x29b   :  { %6389 = vmatprep.subr.mxu1 %v7232_v0  ;;  %6370 = vmatprep.subr.mxu0 %v7232_v0 }
 0x29c   :  { %6390 = vmatpush3.msra.mxu1 %v7583_v62  ;;  %6371 = vmatpush3.msra.mxu0 %v7621_v4 }
 0x29d   :  { %6391 = vmatprep.subr.mxu1 %v7232_v0  ;;  %6372 = vmatprep.subr.mxu0 %v7232_v0 }
 0x29e   :  { %6392 = vmatpush3.msra.mxu1 %v7592_v63  ;;  %6373 = vmatpush3.msra.mxu0 %v7635_v6 }
 0x29f   :  { %6393 = vmatprep.subr.mxu1 %v7232_v0  ;;  %6374 = vmatprep.subr.mxu0 %v7232_v0 }
 0x2a0   :  { %6394 = vmatpush3.msra.mxu1 %v7599_v1  ;;  %6375 = vmatpush3.msra.mxu0 %v7643_v7 }
 0x2a1   :  { %6395 = vmatprep.subr.mxu1 %v7232_v0  ;;  %6402 = vmatprep.subr.mxu0 %v7232_v0 }
 0x2a2   :  { %6396 = vmatpush3.msra.mxu1 %v7614_v3 }
 0x2a3   :  { %6397 = vmatprep.subr.mxu1 %v7232_v0 }
 0x2a4   :  { %6398 = vmatpush3.msra.mxu1 %v7628_v5 }
 0x2a5   :  { %6407 = vmatprep.subr.mxu1 %v7232_v0 }
 0x34a   :  { %v1037_v8 = vpop.f32.mrf.mxu0 }
 0x34b   :  { %v1041_v9 = vadd.f32 %v1037_v8, %v7484_v44  ;;  %v7832_v44 = vld [vmem:[%s9118_s6] ss:$0 sm:$0xff]  ;;  %v7939_v8 = vld [vmem:[%s9119_s7 + $0x10] sm:$0xff] }
 0x34c   :  { %v6345_v10 = vpop.f32.mrf.mxu0 }
 0x34d   :  { %v1049_v12 = vadd.f32 %v7480_v36, %v1041_v9  ;;  %v1125_v13 = vpop.f32.mrf.mxu1  ;;  %v7946_v9 = vld [vmem:[%s9119_s7 + $0x70] sm:$0xff]  ;;  %v7960_v10 = vld [vmem:[%s9119_s7 + $0x68] sm:$0xff] }
 0x34e   :  { %6400 = vmatmul.mubr.msk.f32.vlgmr.msra.gmra.mxu1 %vm107_vm3, %v1125_v13  ;;  %v7980_v13 = vld [vmem:[%s9119_s7] sm:$0xff] }
 0x34f   :  { %v1050_v15 = vmax.f32 %v1049_v12, 0.0  ;;  %v6350_v16 = vpop.f32.mrf.mxu1  ;;  %6408 = vmatpush3.msra.mxu1 %v7651_v11  ;;  %6427 = vmatprep.mubr.msk.f32.mxu1 %vm7233_vm0, %v7232_v0  ;;  %v7973_v12 = vld [vmem:[%s9119_s7 + $0x60] sm:$0xff] }
 0x350   :  { %6409 = vmatprep.subr.mxu1 %v7232_v0 }
 0x351   :  { %1052 = vst.msk [vmem:[#allocation2 + $0x8] sm:$0xff] %vm107_vm3, %v1050_v15  ;;  %v1210_v17 = vpop.f32.mrf.mxu1  ;;  %6410 = vmatpush3.msra.mxu1 %v7658_v14  ;;  %v7995_v15 = vld [vmem:[%s9119_s7 + $0x50] sm:$0xff] }
 0x352   :  { %6377 = vmatmul.mubr.msk.f32.vlgmr.msra.gmra.mxu0 %vm107_vm3, %v1210_v17  ;;  %6411 = vmatprep.subr.mxu1 %v7232_v0 }
 0x353   :  { %6403 = vmatpush3.msra.mxu0 %v7495_v50  ;;  %v6355_v19 = vpop.f32.mrf.mxu1  ;;  %6404 = vmatprep.mubr.msk.f32.mxu0 %vm7233_vm0, %v7232_v0 }
 0x354   :  { %6430 = vmatprep.subr.mxu0 %v7232_v0  ;;  %6412 = vmatpush3.msra.mxu1 %v7669_v18 }
 0x355   :  { %6413 = vmatprep.subr.mxu1 %v7232_v0 }
 0x356   :  { %6405 = vmatmul.mubr.msk.f32.vlgmr.msra.gmra.mxu0 %vm1055_vm4, %v5563_v20  ;;  %6414 = vmatpush3.msra.mxu1 %v7682_v21 }
 0x357   :  { %6432 = vmatprep.mubr.msk.f32.mxu0 %vm7233_vm0, %v7232_v0  ;;  %6415 = vmatprep.subr.mxu1 %v7232_v0 }
 0x358   :  { %v7700_v24 = vld [vmem:[#allocation2 + $0x8] sm:$0xff]  ;;  %6416 = vmatpush3.msra.mxu1 %v7690_v22 }
 0x359   :  { %6431 = vmatpush3.msra.mxu0 %v7700_v24  ;;  %6417 = vmatprep.subr.mxu1 %v7232_v0 }
 0x35a   :  { %6433 = vmatmul.mubr.msk.f32.vlgmr.msra.gmra.mxu0 %vm1055_vm4, %v1543_v23  ;;  %6435 = vmatprep.subr.mxu0 %v7232_v0 }
 0x35b   :  { %6436 = vmatpush3.msra.mxu0 %v7700_v24  ;;  %6437 = vmatprep.mubr.msk.f32.mxu0 %vm7233_vm0, %v7232_v0 }
 0x35c   :  { %6440 = vmatprep.subr.mxu0 %v7232_v0  ;;  %6418 = vmatpush3.msra.mxu1 %v7708_v25 }
 0x35d   :  { %6419 = vmatprep.subr.mxu1 %v7232_v0 }
 0x35e   :  { %6438 = vmatmul.mubr.msk.f32.vlgmr.msra.gmra.mxu0 %vm1055_vm4, %v5578_v26  ;;  %6420 = vmatpush3.msra.mxu1 %v7747_v27  ;;  %v8016_v26 = vld [vmem:[%s9119_s7 + $0xe8] sm:$0xff] }
 0x35f   :  { %6441 = vmatpush3.msra.mxu0 %v7489_v46  ;;  %6460 = vmatprep.mubr.msk.f32.mxu0 %vm7233_vm0, %v7232_v0 }
 0x360   :  { %6442 = vmatprep.subr.mxu0 %v7232_v0  ;;  %6421 = vmatprep.subr.mxu1 %v7232_v0 }
 0x361   :  { %6443 = vmatpush3.msra.mxu0 %v7505_v51  ;;  %6422 = vmatpush3.msra.mxu1 %v7754_v28  ;;  %v7839_v51 = vld [vmem:[%s9119_s7 + $0x48] sm:$0xff] }
 0x362   :  { %6444 = vmatprep.subr.mxu0 %v7232_v0  ;;  %6423 = vmatprep.subr.mxu1 %v7232_v0 }
 0x363   :  { %6445 = vmatpush3.msra.mxu0 %v7518_v53  ;;  %6424 = vmatpush3.msra.mxu1 %v7761_v29  ;;  %v2027_v53 = vld [vmem:[%s9120_s8] sm:$0x3] }
 0x364   :  { %6446 = vmatprep.subr.mxu0 %v7232_v0  ;;  %6425 = vmatprep.subr.mxu1 %v7232_v0 }
 0x365   :  { %6447 = vmatpush3.msra.mxu0 %v7531_v55  ;;  %6426 = vmatpush3.msra.mxu1 %v7767_v30 }
 0x366   :  { %6448 = vmatprep.subr.mxu0 %v7232_v0  ;;  %6463 = vmatprep.subr.mxu1 %v7232_v0 }
 0x367   :  { %6449 = vmatpush3.msra.mxu0 %v7545_v57  ;;  %v5608_v57 = vld [vmem:[%s9120_s8 + $0x2] sm:$0x3] }
 0x368   :  { %6450 = vmatprep.subr.mxu0 %v7232_v0 }
 0x369   :  { %6451 = vmatpush3.msra.mxu0 %v7559_v59  ;;  %v7877_v59 = vld [vmem:[%s9119_s7 + $0x98] sm:$0xff] }
 0x36a   :  { %6452 = vmatprep.subr.mxu0 %v7232_v0 }
 0x36b   :  { %6453 = vmatpush3.msra.mxu0 %v7608_v2 }
 0x36c   :  { %6454 = vmatprep.subr.mxu0 %v7232_v0 }
 0x36d   :  { %6455 = vmatpush3.msra.mxu0 %v7621_v4  ;;  %v7911_v4 = vld [vmem:[%s9119_s7 + $0x20] sm:$0xff] }
 0x36e   :  { %6456 = vmatprep.subr.mxu0 %v7232_v0 }
 0x36f   :  { %6457 = vmatpush3.msra.mxu0 %v7635_v6  ;;  %v7925_v6 = vld [vmem:[%s9119_s7 + $0x18] sm:$0xff] }
 0x370   :  { %6458 = vmatprep.subr.mxu0 %v7232_v0 }
 0x371   :  { %6459 = vmatpush3.msra.mxu0 %v7643_v7  ;;  %v7932_v7 = vld [vmem:[%s9119_s7 + $0x78] sm:$0xff] }
 0x372   :  { %6486 = vmatprep.subr.mxu0 %v7232_v0 }
 0x40e   :  { %v1367_v31 = vpop.f32.mrf.mxu1 }
 0x410   :  { %v6401_v32 = vpop.f32.mrf.mxu1 }
 0x411   :  { %v8054_v32 = vld [vmem:[%s9119_s7 + $0xd0] sm:$0xff] }
 0x412   :  { %v1294_v33 = vpop.f32.mrf.mxu0 }
 0x413   :  { %v1368_v34 = vadd.f32 %v1367_v31, %v1294_v33  ;;  %v5640_v31 = vld [vmem:[%s9120_s8 + $0x2] sm:$0x3]  ;;  %v8063_v33 = vld [vmem:[%s9119_s7 + $0xc8] sm:$0xff] }
 0x414   :  { %v6378_v35 = vpop.f32.mrf.mxu0 }
 0x415   :  { %v8101_v35 = vld [vmem:[%s9119_s7 + $0xb8] sm:$0xff] }
 0x416   :  { %v1442_v36 = vpop.f32.mrf.mxu0 }
 0x417   :  { %6428 = vmatmul.mubr.msk.f32.vlgmr.msra.gmra.mxu1 %vm107_vm3, %v1442_v36  ;;  %v8108_v36 = vld [vmem:[%s9119_s7 + $0xb0] sm:$0xff] }
 0x418   :  { %6464 = vmatpush3.msra.mxu1 %v7524_v54  ;;  %v6406_v37 = vpop.f32.mrf.mxu0  ;;  %6483 = vmatprep.mubr.msk.f32.mxu1 %vm7233_vm0, %v7232_v0 }
 0x419   :  { %6465 = vmatprep.subr.mxu1 %v7232_v0  ;;  %v8115_v37 = vld [vmem:[%s9119_s7 + $0xa8] sm:$0xff] }
 0x41a   :  { %6466 = vmatpush3.msra.mxu1 %v7537_v56  ;;  %v1613_v38 = vpop.f32.mrf.mxu0  ;;  %v7856_v56 = vld [vmem:[%s9119_s7 + $0x40] sm:$0xff] }
 0x41b   :  { %6467 = vmatprep.subr.mxu1 %v7232_v0 }
 0x41c   :  { %6468 = vmatpush3.msra.mxu1 %v7551_v58  ;;  %v6434_v39 = vpop.f32.mrf.mxu0  ;;  %v7870_v58 = vld [vmem:[%s9119_s7 + $0x38] sm:$0xff] }
 0x41d   :  { %6469 = vmatprep.subr.mxu1 %v7232_v0 }
 0x41e   :  { %6470 = vmatpush3.msra.mxu1 %v7565_v60  ;;  %v1697_v40 = vpop.f32.mrf.mxu0  ;;  %v7883_v60 = vld [vmem:[%s9119_s7 + $0x30] sm:$0xff] }
 0x41f   :  { %6471 = vmatprep.subr.mxu1 %v7232_v0  ;;  %6461 = vmatmul.mubr.msk.f32.vlgmr.msra.gmra.mxu0 %vm107_vm3, %v1697_v40 }
 0x420   :  { %6472 = vmatpush3.msra.mxu1 %v7574_v61  ;;  %6487 = vmatpush3.msra.mxu0 %v7700_v24  ;;  %v6439_v41 = vpop.f32.mrf.mxu0 }
 0x421   :  { %6473 = vmatprep.subr.mxu1 %v7232_v0  ;;  %6488 = vmatprep.mubr.msk.f32.mxu0 %vm7233_vm0, %v7232_v0 }
 0x422   :  { %6474 = vmatpush3.msra.mxu1 %v7583_v62  ;;  %6491 = vmatprep.subr.mxu0 %v7232_v0  ;;  %v7890_v62 = vld [vmem:[%s9119_s7 + $0x90] sm:$0xff] }
 0x423   :  { %6475 = vmatprep.subr.mxu1 %v7232_v0  ;;  %6489 = vmatmul.mubr.msk.f32.vlgmr.msra.gmra.mxu0 %vm1055_vm4, %v5592_v42 }
 0x424   :  { %6476 = vmatpush3.msra.mxu1 %v7592_v63  ;;  %6492 = vmatpush3.msra.mxu0 %v7651_v11  ;;  %v7966_v11 = vld [vmem:[%s9119_s7 + $0x8] sm:$0xff] }
 0x425   :  { %6477 = vmatprep.subr.mxu1 %v7232_v0  ;;  %6493 = vmatprep.subr.mxu0 %v7232_v0 }
 0x426   :  { %6478 = vmatpush3.msra.mxu1 %v7599_v1  ;;  %6494 = vmatpush3.msra.mxu0 %v7658_v14  ;;  %v7897_v1 = vld [vmem:[%s9119_s7 + $0x28] sm:$0xff]  ;;  %v7987_v14 = vld [vmem:[%s9119_s7 + $0x58] sm:$0xff] }
 0x427   :  { %6479 = vmatprep.subr.mxu1 %v7232_v0  ;;  %6495 = vmatprep.subr.mxu0 %v7232_v0 }
 0x428   :  { %6480 = vmatpush3.msra.mxu1 %v7614_v3  ;;  %6496 = vmatpush3.msra.mxu0 %v7669_v18  ;;  %v7904_v3 = vld [vmem:[%s9119_s7 + $0x88] sm:$0xff] }
 0x429   :  { %6481 = vmatprep.subr.mxu1 %v7232_v0  ;;  %6497 = vmatprep.subr.mxu0 %v7232_v0 }
 0x42a   :  { %6482 = vmatpush3.msra.mxu1 %v7628_v5  ;;  %6498 = vmatpush3.msra.mxu0 %v7682_v21  ;;  %v7918_v5 = vld [vmem:[%s9119_s7 + $0x80] sm:$0xff] }
 0x42b   :  { %6484 = vmatmul.mubr.msk.f32.vlgmr.msra.gmra.mxu1 %vm107_vm3, %v1613_v38  ;;  %6499 = vmatprep.subr.mxu0 %v7232_v0  ;;  %v8121_v38 = vld [vmem:[%s9119_s7 + $0xa0] sm:$0xff] }
 0x42c   :  { %6500 = vmatpush3.msra.mxu0 %v7690_v22  ;;  %6511 = vmatprep.mubr.msk.f32.mxu0 %vm7233_vm0, %v7232_v0 }
 0x42d   :  { %6501 = vmatprep.subr.mxu0 %v7232_v0  ;;  %6514 = vmatprep.subr.mxu1 %v7232_v0 }
 0x42e   :  { %6502 = vmatpush3.msra.mxu0 %v7708_v25  ;;  %6516 = vmatprep.mubr.msk.f32.mxu1 %vm7233_vm0, %v7232_v0  ;;  %v5623_v25 = vld [vmem:[%s9120_s8 + $0x4] sm:$0x3] }
 0x42f   :  { %6503 = vmatprep.subr.mxu0 %v7232_v0 }
 0x430   :  { %6504 = vmatpush3.msra.mxu0 %v7747_v27  ;;  %v8022_v27 = vld [vmem:[%s9119_s7 + $0xe0] sm:$0xff] }
 0x431   :  { %6505 = vmatprep.subr.mxu0 %v7232_v0 }
 0x432   :  { %6506 = vmatpush3.msra.mxu0 %v7754_v28  ;;  %v2520_v28 = vld [vmem:[%s9120_s8] sm:$0x3] }
 0x433   :  { %6507 = vmatprep.subr.mxu0 %v7232_v0 }
 0x434   :  { %6508 = vmatpush3.msra.mxu0 %v7761_v29 }
 0x435   :  { %6509 = vmatprep.subr.mxu0 %v7232_v0 }
 0x436   :  { %6510 = vmatpush3.msra.mxu0 %v7767_v30  ;;  %v8041_v30 = vld [vmem:[%s9119_s7 + $0xd8] sm:$0xff] }
 0x437   :  { %6547 = vmatprep.subr.mxu0 %v7232_v0 }
 0x4d7   :  { %v1526_v43 = vpop.f32.mrf.mxu1 }
 0x4d8   :  { %v1530_v45 = vadd.f32 %v1526_v43, %v1368_v34  ;;  %v8072_v34 = vld [vmem:[%s9119_s7 + $0xc0] sm:$0xff] }
 0x4d9   :  { %v6429_v46 = vpop.f32.mrf.mxu1 }
 0x4da   :  { %v1538_v47 = vadd.f32 %v7832_v44, %v1530_v45 }
 0x4dc   :  { %v1539_v48 = vmax.f32 %v1538_v47, 0.0 }
 0x4de   :  { %1541 = vst.msk [vmem:[#allocation3] sm:$0xf] %vm1540_vm5, %v1539_v48 }
 0x4df   :  { %v1780_v49 = vpop.f32.mrf.mxu0 }
 0x4e1   :  { %v6462_v50 = vpop.f32.mrf.mxu0 }
 0x4e2   :  { %v5655_v50 = vld [vmem:[%s9120_s8 + $0x4] sm:$0x3] }
 0x4e3   :  { %v1927_v52 = vpop.f32.mrf.mxu0 }
 0x4e4   :  { %6512 = vmatmul.mubr.msk.f32.vlgmr.msra.gmra.mxu0 %vm107_vm3, %v1927_v52  ;;  %v8179_v52 = vld [vmem:[%s9122_s10 + $0x40] sm:$0xff] }
 0x4e5   :  { %v6490_v54 = vpop.f32.mrf.mxu0  ;;  %v7845_v55 = vld [vmem:[#allocation3] sm:$0xf]  ;;  %6548 = vmatpush3.msra.mxu0 %v7839_v51  ;;  %6567 = vmatprep.mubr.msk.f32.mxu0 %vm7233_vm0, %v7232_v0 }
 0x4e6   :  { %6515 = vmatpush3.msk.msra.mxu1 %vm2032_vm6, %v7845_v55  ;;  %6549 = vmatprep.subr.mxu0 %v7232_v0  ;;  %v8212_v54 = vld [vmem:[%s9122_s10 + $0x30] sm:$0xff] }
 0x4e7   :  { %6517 = vmatmul.mubr.msk.f32.vlgmr.msra.gmra.mxu1 %vm2028_vm7, %v2027_v53  ;;  %6519 = vmatprep.subr.mxu1 %v7232_v0  ;;  %v8187_v53 = vld [vmem:[%s9122_s10 + $0x38] sm:$0xff] }
 0x4e8   :  { %6520 = vmatpush3.msk.msra.mxu1 %vm2032_vm6, %v7845_v55  ;;  %6521 = vmatprep.mubr.msk.f32.mxu1 %vm7233_vm0, %v7232_v0 }
 0x4e9   :  { %6524 = vmatprep.subr.mxu1 %v7232_v0  ;;  %6550 = vmatpush3.msra.mxu0 %v7856_v56 }
 0x4ea   :  { %6551 = vmatprep.subr.mxu0 %v7232_v0 }
 0x4eb   :  { %v1853_v61 = vpop.f32.mrf.mxu1  ;;  %6522 = vmatmul.mubr.msk.f32.vlgmr.msra.gmra.mxu1 %vm2028_vm7, %v5608_v57  ;;  %6552 = vmatpush3.msra.mxu0 %v7870_v58  ;;  %v8233_v57 = vld [vmem:[%s9122_s10 + $0x18] sm:$0xff] }
 0x4ec   :  { %v1854_v63 = vadd.f32 %v1853_v61, %v1780_v49  ;;  %6525 = vmatpush3.msra.mxu1 %v7877_v59  ;;  %6553 = vmatprep.subr.mxu0 %v7232_v0 }
 0x4ed   :  { %v6485_v2 = vpop.f32.mrf.mxu1  ;;  %6526 = vmatprep.subr.mxu1 %v7232_v0  ;;  %6554 = vmatpush3.msra.mxu0 %v7883_v60 }
 0x4ee   :  { %6527 = vmatpush3.msra.mxu1 %v7890_v62  ;;  %6555 = vmatprep.subr.mxu0 %v7232_v0 }
 0x4ef   :  { %6528 = vmatprep.subr.mxu1 %v7232_v0  ;;  %6556 = vmatpush3.msra.mxu0 %v7897_v1 }
 0x4f0   :  { %6529 = vmatpush3.msra.mxu1 %v7904_v3  ;;  %6557 = vmatprep.subr.mxu0 %v7232_v0 }
 0x4f1   :  { %6530 = vmatprep.subr.mxu1 %v7232_v0  ;;  %6558 = vmatpush3.msra.mxu0 %v7911_v4 }
 0x4f2   :  { %6531 = vmatpush3.msra.mxu1 %v7918_v5  ;;  %6559 = vmatprep.subr.mxu0 %v7232_v0 }
 0x4f3   :  { %6532 = vmatprep.subr.mxu1 %v7232_v0  ;;  %6560 = vmatpush3.msra.mxu0 %v7925_v6 }
 0x4f4   :  { %6533 = vmatpush3.msra.mxu1 %v7932_v7  ;;  %6561 = vmatprep.subr.mxu0 %v7232_v0 }
 0x4f5   :  { %6534 = vmatprep.subr.mxu1 %v7232_v0  ;;  %6562 = vmatpush3.msra.mxu0 %v7939_v8 }
 0x4f6   :  { %6535 = vmatpush3.msra.mxu1 %v7946_v9  ;;  %6563 = vmatprep.subr.mxu0 %v7232_v0 }
 0x4f7   :  { %6536 = vmatprep.subr.mxu1 %v7232_v0  ;;  %6544 = vmatprep.mubr.msk.f32.mxu1 %vm7233_vm0, %v7232_v0 }
 0x4f8   :  { %6537 = vmatpush3.msra.mxu1 %v7960_v10  ;;  %6564 = vmatpush3.msra.mxu0 %v7966_v11 }
 0x4f9   :  { %6538 = vmatprep.subr.mxu1 %v7232_v0  ;;  %6565 = vmatprep.subr.mxu0 %v7232_v0 }
 0x4fa   :  { %6539 = vmatpush3.msra.mxu1 %v7973_v12  ;;  %6566 = vmatpush3.msra.mxu0 %v7980_v13 }
 0x4fb   :  { %6540 = vmatprep.subr.mxu1 %v7232_v0  ;;  %6598 = vmatprep.subr.mxu0 %v7232_v0 }
 0x4fc   :  { %6541 = vmatpush3.msra.mxu1 %v7987_v14 }
 0x4fd   :  { %6542 = vmatprep.subr.mxu1 %v7232_v0 }
 0x4fe   :  { %6543 = vmatpush3.msra.mxu1 %v7995_v15 }
 0x4ff   :  { %6570 = vmatprep.subr.mxu1 %v7232_v0 }
 0x5a4   :  { %v2010_v16 = vpop.f32.mrf.mxu0 }
 0x5a5   :  { %v2014_v17 = vadd.f32 %v2010_v16, %v1854_v63  ;;  %v8318_v16 = vld [vmem:[%s9122_s10 + $0xc8] sm:$0xff] }
 0x5a6   :  { %v6513_v18 = vpop.f32.mrf.mxu0 }
 0x5a7   :  { %v2022_v19 = vadd.f32 %v7832_v44, %v2014_v17  ;;  %v2102_v20 = vpop.f32.mrf.mxu1  ;;  %v8323_v17 = vld [vmem:[%s9122_s10 + $0x80] sm:$0xff] }
 0x5a8   :  { %6568 = vmatmul.mubr.msk.f32.vlgmr.msra.gmra.mxu0 %vm107_vm3, %v2102_v20  ;;  %v8334_v20 = vld [vmem:[%s9122_s10 + $0xc0] sm:$0xff] }
 0x5a9   :  { %v2023_v21 = vmax.f32 %v2022_v19, 0.0  ;;  %v6518_v22 = vpop.f32.mrf.mxu1  ;;  %6600 = vmatprep.mubr.msk.f32.mxu0 %vm7233_vm0, %v7232_v0 }
 0x5ab   :  { %2025 = vst.msk [vmem:[#allocation3 + $0x4] sm:$0xf] %vm1540_vm5, %v2023_v21  ;;  %v2187_v23 = vpop.f32.mrf.mxu1  ;;  %v8339_v21 = vld [vmem:[%s9122_s10 + $0x78] sm:$0xff] }
 0x5ac   :  { %6545 = vmatmul.mubr.msk.f32.vlgmr.msra.gmra.mxu1 %vm107_vm3, %v2187_v23  ;;  %v8348_v23 = vld [vmem:[%s9122_s10 + $0xb8] sm:$0xff] }
 0x5ad   :  { %6571 = vmatpush3.msk.msra.mxu1 %vm2032_vm6, %v7845_v55  ;;  %v6523_v24 = vpop.f32.mrf.mxu1  ;;  %6572 = vmatprep.mubr.msk.f32.mxu1 %vm7233_vm0, %v7232_v0  ;;  %v8219_v55 = vld [vmem:[%s9122_s10 + $0x28] sm:$0xff] }
 0x5ae   :  { %6575 = vmatprep.subr.mxu1 %v7232_v0  ;;  %v8353_v24 = vld [vmem:[%s9122_s10 + $0x70] sm:$0xff] }
 0x5b0   :  { %6573 = vmatmul.mubr.msk.f32.vlgmr.msra.gmra.mxu1 %vm2028_vm7, %v5623_v25  ;;  %v8362_v25 = vld [vmem:[%s9122_s10 + $0xb0] sm:$0xff] }
 0x5b1   :  { %6576 = vmatpush3.msra.mxu1 %v8016_v26  ;;  %6595 = vmatprep.mubr.msk.f32.mxu1 %vm7233_vm0, %v7232_v0 }
 0x5b2   :  { %v8030_v29 = vld [vmem:[#allocation3 + $0x4] sm:$0xf]  ;;  %6577 = vmatprep.subr.mxu1 %v7232_v0 }
 0x5b3   :  { %6599 = vmatpush3.msk.msra.mxu0 %vm2032_vm6, %v8030_v29  ;;  %6578 = vmatpush3.msra.mxu1 %v8022_v27 }
 0x5b4   :  { %6601 = vmatmul.mubr.msk.f32.vlgmr.msra.gmra.mxu0 %vm2028_vm7, %v2520_v28  ;;  %6603 = vmatprep.subr.mxu0 %v7232_v0  ;;  %v8381_v28 = vld [vmem:[%s9122_s10 + $0x60] sm:$0xff] }
 0x5b5   :  { %6604 = vmatpush3.msk.msra.mxu0 %vm2032_vm6, %v8030_v29  ;;  %6605 = vmatprep.mubr.msk.f32.mxu0 %vm7233_vm0, %v7232_v0 }
 0x5b6   :  { %6579 = vmatprep.subr.mxu1 %v7232_v0  ;;  %6608 = vmatprep.subr.mxu0 %v7232_v0 }
 0x5b7   :  { %6580 = vmatpush3.msra.mxu1 %v8041_v30 }
 0x5b8   :  { %6606 = vmatmul.mubr.msk.f32.vlgmr.msra.gmra.mxu0 %vm2028_vm7, %v5640_v31  ;;  %6581 = vmatprep.subr.mxu1 %v7232_v0  ;;  %v8404_v31 = vld [vmem:[%s9122_s10 + $0x50] sm:$0xff] }
 0x5b9   :  { %6582 = vmatpush3.msra.mxu1 %v8054_v32  ;;  %6609 = vmatpush3.msra.mxu0 %v7877_v59  ;;  %v8246_v59 = vld [vmem:[%s9122_s10 + $0x8] sm:$0xff] }
 0x5ba   :  { %6583 = vmatprep.subr.mxu1 %v7232_v0  ;;  %6610 = vmatprep.subr.mxu0 %v7232_v0 }
 0x5bb   :  { %6584 = vmatpush3.msra.mxu1 %v8063_v33  ;;  %6611 = vmatpush3.msra.mxu0 %v7890_v62  ;;  %v8258_v62 = vld [vmem:[#allocation9] ss:$0 sm:$0xff] }
 0x5bc   :  { %6585 = vmatprep.subr.mxu1 %v7232_v0  ;;  %6612 = vmatprep.subr.mxu0 %v7232_v0 }
 0x5bd   :  { %6586 = vmatpush3.msra.mxu1 %v8072_v34  ;;  %6613 = vmatpush3.msra.mxu0 %v7904_v3 }
 0x5be   :  { %6587 = vmatprep.subr.mxu1 %v7232_v0  ;;  %6614 = vmatprep.subr.mxu0 %v7232_v0 }
 0x5bf   :  { %6615 = vmatpush3.msra.mxu0 %v7918_v5  ;;  %6628 = vmatprep.mubr.msk.f32.mxu0 %vm7233_vm0, %v7232_v0 }
 0x5c0   :  { %6616 = vmatprep.subr.mxu0 %v7232_v0  ;;  %6588 = vmatpush3.msra.mxu1 %v8101_v35 }
 0x5c1   :  { %6617 = vmatpush3.msra.mxu0 %v7932_v7  ;;  %6589 = vmatprep.subr.mxu1 %v7232_v0 }
 0x5c2   :  { %6618 = vmatprep.subr.mxu0 %v7232_v0  ;;  %6590 = vmatpush3.msra.mxu1 %v8108_v36 }
 0x5c3   :  { %6619 = vmatpush3.msra.mxu0 %v7946_v9  ;;  %6591 = vmatprep.subr.mxu1 %v7232_v0  ;;  %v8277_v9 = vld [vmem:[%s9122_s10 + $0x98] sm:$0xff] }
 0x5c4   :  { %6620 = vmatprep.subr.mxu0 %v7232_v0  ;;  %6592 = vmatpush3.msra.mxu1 %v8115_v37 }
 0x5c5   :  { %6621 = vmatpush3.msra.mxu0 %v7960_v10  ;;  %6593 = vmatprep.subr.mxu1 %v7232_v0 }
 0x5c6   :  { %6622 = vmatprep.subr.mxu0 %v7232_v0  ;;  %6594 = vmatpush3.msra.mxu1 %v8121_v38 }
 0x5c7   :  { %6623 = vmatpush3.msra.mxu0 %v7973_v12  ;;  %6631 = vmatprep.subr.mxu1 %v7232_v0  ;;  %v8290_v12 = vld [vmem:[%s9122_s10 + $0xd8] sm:$0xff] }
 0x5c8   :  { %6624 = vmatprep.subr.mxu0 %v7232_v0 }
 0x5c9   :  { %6625 = vmatpush3.msra.mxu0 %v7987_v14  ;;  %v8304_v14 = vld [vmem:[%s9122_s10 + $0xd0] sm:$0xff] }
 0x5ca   :  { %6626 = vmatprep.subr.mxu0 %v7232_v0 }
 0x5cb   :  { %6627 = vmatpush3.msra.mxu0 %v7995_v15  ;;  %v8309_v15 = vld [vmem:[%s9122_s10 + $0x88] sm:$0xff] }
 0x5cc   :  { %6654 = vmatprep.subr.mxu0 %v7232_v0 }
 0x668   :  { %v2344_v39 = vpop.f32.mrf.mxu0 }
 0x66a   :  { %v6569_v40 = vpop.f32.mrf.mxu0 }
 0x66c   :  { %v2271_v41 = vpop.f32.mrf.mxu1 }
 0x66d   :  { %v8128_v42 = vadd.f32 %v2344_v39, %v2271_v41 }
 0x66e   :  { %v6546_v43 = vpop.f32.mrf.mxu1 }
 0x670   :  { %v2419_v44 = vpop.f32.mrf.mxu1 }
 0x671   :  { %6596 = vmatmul.mubr.msk.f32.vlgmr.msra.gmra.mxu1 %vm107_vm3, %v2419_v44 }
 0x672   :  { %6632 = vmatpush3.msra.mxu1 %v7839_v51  ;;  %v6574_v45 = vpop.f32.mrf.mxu1  ;;  %6651 = vmatprep.mubr.msk.f32.mxu1 %vm7233_vm0, %v7232_v0  ;;  %v8169_v51 = vld [vmem:[%s9122_s10 + $0x48] sm:$0xff] }
 0x673   :  { %6633 = vmatprep.subr.mxu1 %v7232_v0  ;;  %v5693_v45 = vld [vmem:[%s9123_s11 + $0x4] sm:$0xf] }
 0x674   :  { %6634 = vmatpush3.msra.mxu1 %v7856_v56  ;;  %v2593_v46 = vpop.f32.mrf.mxu0  ;;  %v8226_v56 = vld [vmem:[%s9122_s10 + $0x20] sm:$0xff] }
 0x675   :  { %6635 = vmatprep.subr.mxu1 %v7232_v0 }
 0x676   :  { %6636 = vmatpush3.msra.mxu1 %v7870_v58  ;;  %v6602_v47 = vpop.f32.mrf.mxu0  ;;  %v8239_v58 = vld [vmem:[%s9122_s10 + $0x10] sm:$0xff] }
 0x677   :  { %6637 = vmatprep.subr.mxu1 %v7232_v0  ;;  %v3256_v47 = vld [vmem:[%s9123_s11] sm:$0xf] }
 0x678   :  { %6638 = vmatpush3.msra.mxu1 %v7883_v60  ;;  %v2677_v48 = vpop.f32.mrf.mxu0  ;;  %v8254_v60 = vld [vmem:[%s9122_s10] sm:$0xff] }
 0x679   :  { %6639 = vmatprep.subr.mxu1 %v7232_v0  ;;  %6629 = vmatmul.mubr.msk.f32.vlgmr.msra.gmra.mxu0 %vm107_vm3, %v2677_v48 }
 0x67a   :  { %6640 = vmatpush3.msra.mxu1 %v7897_v1  ;;  %6655 = vmatpush3.msk.msra.mxu0 %vm2032_vm6, %v8030_v29  ;;  %v6607_v49 = vpop.f32.mrf.mxu0  ;;  %v8390_v29 = vld [vmem:[%s9122_s10 + $0xa0] sm:$0xff] }
 0x67b   :  { %6641 = vmatprep.subr.mxu1 %v7232_v0  ;;  %6656 = vmatprep.mubr.msk.f32.mxu0 %vm7233_vm0, %v7232_v0  ;;  %v8509_v49 = vld [vmem:[#allocation11 + $0xe8] sm:$0xff] }
 0x67c   :  { %6642 = vmatpush3.msra.mxu1 %v7911_v4  ;;  %6659 = vmatprep.subr.mxu0 %v7232_v0 }
 0x67d   :  { %6643 = vmatprep.subr.mxu1 %v7232_v0  ;;  %6657 = vmatmul.mubr.msk.f32.vlgmr.msra.gmra.mxu0 %vm2028_vm7, %v5655_v50  ;;  %v8513_v50 = vld [vmem:[#allocation11 + $0xe0] sm:$0xff] }
 0x67e   :  { %6644 = vmatpush3.msra.mxu1 %v7925_v6  ;;  %6660 = vmatpush3.msra.mxu0 %v8016_v26  ;;  %v8266_v6 = vld [vmem:[%s9122_s10 + $0xe8] sm:$0xff] }
 0x67f   :  { %6645 = vmatprep.subr.mxu1 %v7232_v0  ;;  %6661 = vmatprep.subr.mxu0 %v7232_v0  ;;  %v8367_v26 = vld [vmem:[%s9122_s10 + $0x68] sm:$0xff] }
 0x680   :  { %6646 = vmatpush3.msra.mxu1 %v7939_v8  ;;  %6662 = vmatpush3.msra.mxu0 %v8022_v27  ;;  %v8272_v8 = vld [vmem:[%s9122_s10 + $0xe0] sm:$0xff]  ;;  %v8376_v27 = vld [vmem:[%s9122_s10 + $0xa8] sm:$0xff] }
 0x681   :  { %6647 = vmatprep.subr.mxu1 %v7232_v0  ;;  %6663 = vmatprep.subr.mxu0 %v7232_v0 }
 0x682   :  { %6648 = vmatpush3.msra.mxu1 %v7966_v11  ;;  %6664 = vmatpush3.msra.mxu0 %v8041_v30  ;;  %v8395_v30 = vld [vmem:[%s9122_s10 + $0x58] sm:$0xff] }
 0x683   :  { %6649 = vmatprep.subr.mxu1 %v7232_v0  ;;  %6665 = vmatprep.subr.mxu0 %v7232_v0 }
 0x684   :  { %6650 = vmatpush3.msra.mxu1 %v7980_v13  ;;  %6666 = vmatpush3.msra.mxu0 %v8054_v32  ;;  %v8295_v13 = vld [vmem:[%s9122_s10 + $0x90] sm:$0xff] }
 0x685   :  { %6652 = vmatmul.mubr.msk.f32.vlgmr.msra.gmra.mxu1 %vm107_vm3, %v2593_v46  ;;  %6682 = vmatprep.subr.mxu1 %v7232_v0 }
 0x686   :  { %6683 = vmatpush3.msra.mxu1 %v8169_v51  ;;  %6667 = vmatprep.subr.mxu0 %v7232_v0 }
 0x687   :  { %6684 = vmatprep.subr.mxu1 %v7232_v0  ;;  %6668 = vmatpush3.msra.mxu0 %v8063_v33 }
 0x688   :  { %6685 = vmatpush3.msra.mxu1 %v8179_v52  ;;  %6669 = vmatprep.subr.mxu0 %v7232_v0 }
 0x689   :  { %6686 = vmatprep.subr.mxu1 %v7232_v0  ;;  %6670 = vmatpush3.msra.mxu0 %v8072_v34 }
 0x68a   :  { %6687 = vmatpush3.msra.mxu1 %v8187_v53  ;;  %6671 = vmatprep.subr.mxu0 %v7232_v0 }
 0x68b   :  { %6688 = vmatprep.subr.mxu1 %v7232_v0  ;;  %6672 = vmatpush3.msra.mxu0 %v8101_v35 }
 0x68c   :  { %6673 = vmatprep.subr.mxu0 %v7232_v0  ;;  %6679 = vmatprep.mubr.msk.f32.mxu0 %vm7233_vm0, %v7232_v0 }
 0x68d   :  { %6674 = vmatpush3.msra.mxu0 %v8108_v36  ;;  %6702 = vmatprep.mubr.msk.f32.mxu1 %vm7233_vm0, %v7232_v0 }
 0x68e   :  { %6675 = vmatprep.subr.mxu0 %v7232_v0  ;;  %6689 = vmatpush3.msra.mxu1 %v8212_v54 }
 0x68f   :  { %6676 = vmatpush3.msra.mxu0 %v8115_v37  ;;  %6690 = vmatprep.subr.mxu1 %v7232_v0 }
 0x690   :  { %6677 = vmatprep.subr.mxu0 %v7232_v0  ;;  %6691 = vmatpush3.msra.mxu1 %v8219_v55 }
 0x691   :  { %6678 = vmatpush3.msra.mxu0 %v8121_v38  ;;  %6692 = vmatprep.subr.mxu1 %v7232_v0 }
 0x692   :  { %6705 = vmatprep.subr.mxu0 %v7232_v0  ;;  %6693 = vmatpush3.msra.mxu1 %v8226_v56 }
 0x693   :  { %6694 = vmatprep.subr.mxu1 %v7232_v0 }
 0x694   :  { %6695 = vmatpush3.msra.mxu1 %v8233_v57 }
 0x695   :  { %6696 = vmatprep.subr.mxu1 %v7232_v0 }
 0x696   :  { %6697 = vmatpush3.msra.mxu1 %v8239_v58 }
 0x697   :  { %6698 = vmatprep.subr.mxu1 %v7232_v0 }
 0x698   :  { %6699 = vmatpush3.msra.mxu1 %v8246_v59 }
 0x699   :  { %6700 = vmatprep.subr.mxu1 %v7232_v0 }
 0x69a   :  { %6701 = vmatpush3.msra.mxu1 %v8254_v60 }
 0x69b   :  { %6728 = vmatprep.subr.mxu1 %v7232_v0 }
 0x731   :  { %v2503_v61 = vpop.f32.mrf.mxu1 }
 0x732   :  { %v2507_v63 = vadd.f32 %v2503_v61, %v8128_v42 }
 0x733   :  { %v6597_v1 = vpop.f32.mrf.mxu1 }
 0x734   :  { %v2515_v2 = vadd.f32 %v8258_v62, %v2507_v63  ;;  %v8554_v1 = vld [vmem:[%s9124_s12] ss:$0 sm:$0xff] }
 0x736   :  { %v2516_v3 = vmax.f32 %v2515_v2, 0.0 }
 0x738   :  { %2518 = vst.msk [vmem:[#allocation4] sm:$0x3] %vm2517_vm9, %v2516_v3 }
 0x739   :  { %v2760_v4 = vpop.f32.mrf.mxu0 }
 0x73b   :  { %v6630_v5 = vpop.f32.mrf.mxu0 }
 0x73d   :  { %v2907_v7 = vpop.f32.mrf.mxu0 }
 0x73e   :  { %6680 = vmatmul.mubr.msk.f32.vlgmr.msra.gmra.mxu0 %vm107_vm3, %v2907_v7 }
 0x73f   :  { %6706 = vmatpush3.msra.mxu0 %v8266_v6  ;;  %v6658_v10 = vpop.f32.mrf.mxu0  ;;  %v8280_v11 = vld [vmem:[#allocation4] sm:$0x3]  ;;  %6725 = vmatprep.mubr.msk.f32.mxu0 %vm7233_vm0, %v7232_v0 }
 0x740   :  { %6707 = vmatprep.subr.mxu0 %v7232_v0  ;;  %6703 = vmatmul.mubr.msk.f32.vlgmr.msra.gmra.mxu1 %vm107_vm3, %v8280_v11  ;;  %v3007_v32 = vld [vmem:[#allocation4 + $0x1] sm:$0x3] }
 0x741   :  { %6708 = vmatpush3.msra.mxu0 %v8272_v8  ;;  %6729 = vmatpush3.msra.mxu1 %v8277_v9 }
 0x742   :  { %6709 = vmatprep.subr.mxu0 %v7232_v0  ;;  %6730 = vmatprep.subr.mxu1 %v7232_v0 }
 0x743   :  { %6710 = vmatpush3.msra.mxu0 %v8290_v12  ;;  %6731 = vmatpush3.msra.mxu1 %v8295_v13 }
 0x744   :  { %6711 = vmatprep.subr.mxu0 %v7232_v0  ;;  %6732 = vmatprep.subr.mxu1 %v7232_v0 }
 0x745   :  { %v2833_v18 = vpop.f32.mrf.mxu1  ;;  %6712 = vmatpush3.msra.mxu0 %v8304_v14  ;;  %6733 = vmatpush3.msra.mxu1 %v8309_v15 }
 0x746   :  { %v8327_v19 = vadd.f32 %v2833_v18, %v2760_v4  ;;  %6713 = vmatprep.subr.mxu0 %v7232_v0  ;;  %6734 = vmatprep.subr.mxu1 %v7232_v0  ;;  %v8591_v18 = vld [vmem:[#allocation11 + $0x28] sm:$0xff] }
 0x747   :  { %v6653_v22 = vpop.f32.mrf.mxu1  ;;  %6714 = vmatpush3.msra.mxu0 %v8318_v16  ;;  %6735 = vmatpush3.msra.mxu1 %v8323_v17 }
 0x748   :  { %6715 = vmatprep.subr.mxu0 %v7232_v0  ;;  %6736 = vmatprep.subr.mxu1 %v7232_v0  ;;  %v8607_v22 = vld [vmem:[#allocation11 + $0x8] sm:$0xff] }
 0x749   :  { %6716 = vmatpush3.msra.mxu0 %v8334_v20  ;;  %6737 = vmatpush3.msra.mxu1 %v8339_v21 }
 0x74a   :  { %6717 = vmatprep.subr.mxu0 %v7232_v0  ;;  %6738 = vmatprep.subr.mxu1 %v7232_v0 }
 0x74b   :  { %6718 = vmatpush3.msra.mxu0 %v8348_v23  ;;  %6739 = vmatpush3.msra.mxu1 %v8353_v24 }
 0x74c   :  { %6719 = vmatprep.subr.mxu0 %v7232_v0  ;;  %6740 = vmatprep.subr.mxu1 %v7232_v0 }
 0x74d   :  { %6720 = vmatpush3.msra.mxu0 %v8362_v25  ;;  %6741 = vmatpush3.msra.mxu1 %v8367_v26 }
 0x74e   :  { %6721 = vmatprep.subr.mxu0 %v7232_v0  ;;  %6742 = vmatprep.subr.mxu1 %v7232_v0 }
 0x74f   :  { %6722 = vmatpush3.msra.mxu0 %v8376_v27  ;;  %6743 = vmatpush3.msra.mxu1 %v8381_v28 }
 0x750   :  { %6723 = vmatprep.subr.mxu0 %v7232_v0  ;;  %6744 = vmatprep.subr.mxu1 %v7232_v0 }
 0x751   :  { %6724 = vmatpush3.msra.mxu0 %v8390_v29  ;;  %6745 = vmatpush3.msra.mxu1 %v8395_v30 }
 0x752   :  { %6726 = vmatmul.mubr.msk.f32.vlgmr.msra.gmra.mxu0 %vm107_vm3, %v3007_v32  ;;  %6746 = vmatprep.subr.mxu1 %v7232_v0  ;;  %v8646_v32 = vld [vmem:[#allocation11 + $0x60] sm:$0xff] }
 0x753   :  { %6747 = vmatpush3.msra.mxu1 %v8404_v31  ;;  %6748 = vmatprep.mubr.msk.f32.mxu1 %vm7233_vm0, %v7232_v0 }
 0x754   :  { %6749 = vmatmul.mubr.msk.f32.vlgmr.msra.gmra.mxu1 %vm107_vm3, %v8280_v11  ;;  %6761 = vmatprep.subr.mxu1 %v7232_v0  ;;  %v5722_v11 = vld [vmem:[%s9123_s11 + $0x4] sm:$0xf] }
 0x755   :  { %6762 = vmatpush3.msra.mxu1 %v8169_v51  ;;  %6781 = vmatprep.mubr.msk.f32.mxu1 %vm7233_vm0, %v7232_v0  ;;  %v8519_v51 = vld [vmem:[#allocation11 + $0xd8] sm:$0xff] }
 0x756   :  { %6763 = vmatprep.subr.mxu1 %v7232_v0  ;;  %6751 = vmatprep.subr.mxu0 %v7232_v0 }
 0x757   :  { %6764 = vmatpush3.msra.mxu1 %v8179_v52  ;;  %6753 = vmatprep.mubr.msk.f32.mxu0 %vm7233_vm0, %v7232_v0  ;;  %v8523_v52 = vld [vmem:[#allocation11 + $0xd0] sm:$0xff] }
 0x758   :  { %6765 = vmatprep.subr.mxu1 %v7232_v0 }
 0x759   :  { %6766 = vmatpush3.msra.mxu1 %v8187_v53  ;;  %v8527_v53 = vld [vmem:[#allocation11 + $0xc8] sm:$0xff] }
 0x75a   :  { %6767 = vmatprep.subr.mxu1 %v7232_v0 }
 0x75b   :  { %6768 = vmatpush3.msra.mxu1 %v8212_v54  ;;  %v8531_v54 = vld [vmem:[#allocation11 + $0xc0] sm:$0xff] }
 0x75c   :  { %6769 = vmatprep.subr.mxu1 %v7232_v0 }
 0x75d   :  { %6770 = vmatpush3.msra.mxu1 %v8219_v55  ;;  %v8535_v55 = vld [vmem:[#allocation11 + $0xb8] sm:$0xff] }
 0x75e   :  { %6771 = vmatprep.subr.mxu1 %v7232_v0 }
 0x75f   :  { %6772 = vmatpush3.msra.mxu1 %v8226_v56  ;;  %v8537_v56 = vld [vmem:[#allocation11 + $0xb0] sm:$0xff] }
 0x760   :  { %6773 = vmatprep.subr.mxu1 %v7232_v0 }
 0x761   :  { %6774 = vmatpush3.msra.mxu1 %v8233_v57  ;;  %v8541_v57 = vld [vmem:[#allocation11 + $0xa8] sm:$0xff] }
 0x762   :  { %6775 = vmatprep.subr.mxu1 %v7232_v0 }
 0x763   :  { %6776 = vmatpush3.msra.mxu1 %v8239_v58  ;;  %v8545_v58 = vld [vmem:[#allocation11 + $0xa0] sm:$0xff] }
 0x764   :  { %6777 = vmatprep.subr.mxu1 %v7232_v0 }
 0x765   :  { %6778 = vmatpush3.msra.mxu1 %v8246_v59 }
 0x766   :  { %6779 = vmatprep.subr.mxu1 %v7232_v0 }
 0x767   :  { %6780 = vmatpush3.msra.mxu1 %v8254_v60 }
 0x768   :  { %6807 = vmatprep.subr.mxu1 %v7232_v0 }
 0x7fe   :  { %v2990_v33 = vpop.f32.mrf.mxu0 }
 0x7ff   :  { %v2994_v34 = vadd.f32 %v2990_v33, %v8327_v19  ;;  %v8595_v19 = vld [vmem:[#allocation11 + $0x20] sm:$0xff]  ;;  %v8650_v33 = vld [vmem:[#allocation11 + $0x58] sm:$0xff] }
 0x800   :  { %v6681_v35 = vpop.f32.mrf.mxu0  ;;  %v3087_v36 = vpop.f32.mrf.mxu1 }
 0x801   :  { %v3002_v37 = vadd.f32 %v8258_v62, %v2994_v34  ;;  %v8654_v34 = vld [vmem:[#allocation11 + $0x50] sm:$0xff] }
 0x802   :  { %v6704_v38 = vpop.f32.mrf.mxu1 }
 0x803   :  { %v3003_v39 = vmax.f32 %v3002_v37, 0.0 }
 0x805   :  { %3005 = vst.msk [vmem:[#allocation4 + $0x4] sm:$0x3] %vm2517_vm9, %v3003_v39 }
 0x80c   :  { %v3423_v40 = vld [vmem:[#allocation4 + $0x4] sm:$0x3] }
 0x80d   :  { %6782 = vmatmul.mubr.msk.f32.vlgmr.msra.gmra.mxu1 %vm107_vm3, %v3423_v40  ;;  %v3424_v48 = vld [vmem:[#allocation4 + $0x5] sm:$0x3] }
 0x80e   :  { %6808 = vmatpush3.msra.mxu1 %v8277_v9  ;;  %6827 = vmatprep.mubr.msk.f32.mxu1 %vm7233_vm0, %v7232_v0 }
 0x80f   :  { %6809 = vmatprep.subr.mxu1 %v7232_v0 }
 0x810   :  { %6810 = vmatpush3.msra.mxu1 %v8295_v13  ;;  %v3671_v13 = vld [vmem:[%s9123_s11] sm:$0xf] }
 0x811   :  { %6811 = vmatprep.subr.mxu1 %v7232_v0 }
 0x812   :  { %v3182_v41 = vpop.f32.mrf.mxu0  ;;  %6812 = vmatpush3.msra.mxu1 %v8309_v15  ;;  %v8577_v15 = vld [vmem:[#allocation11 + $0x40] sm:$0xff] }
 0x813   :  { %6813 = vmatprep.subr.mxu1 %v7232_v0 }
 0x814   :  { %v6727_v42 = vpop.f32.mrf.mxu0  ;;  %v3252_v43 = vpop.f32.mrf.mxu1  ;;  %6814 = vmatpush3.msra.mxu1 %v8323_v17  ;;  %v8587_v17 = vld [vmem:[#allocation11 + $0x30] sm:$0xff] }
 0x815   :  { %v3253_v44 = vadd.f32 %v3252_v43, %v3182_v41  ;;  %6815 = vmatprep.subr.mxu1 %v7232_v0 }
 0x816   :  { %v6750_v46 = vpop.f32.mrf.mxu1  ;;  %6816 = vmatpush3.msra.mxu1 %v8339_v21  ;;  %v8603_v21 = vld [vmem:[#allocation11 + $0x10] sm:$0xff] }
 0x817   :  { %6752 = vmatpush3.msk.msra.mxu0 %vm3263_vm10, %v3253_v44  ;;  %6817 = vmatprep.subr.mxu1 %v7232_v0 }
 0x818   :  { %6754 = vmatmul.mubr.msk.f32.vlgmr.msra.gmra.mxu0 %vm3259_vm11, %v5693_v45  ;;  %6756 = vmatprep.subr.mxu0 %v7232_v0 }
 0x819   :  { %6818 = vmatpush3.msra.mxu1 %v8353_v24  ;;  %6757 = vmatpush3.msk.msra.mxu0 %vm3263_vm10, %v3087_v36  ;;  %v8615_v24 = vld [vmem:[#allocation11 + $0x98] sm:$0xff] }
 0x81a   :  { %6819 = vmatprep.subr.mxu1 %v7232_v0  ;;  %6758 = vmatprep.mubr.msk.f32.mxu0 %vm7233_vm0, %v7232_v0 }
 0x81b   :  { %6820 = vmatpush3.msra.mxu1 %v8367_v26  ;;  %6784 = vmatprep.subr.mxu0 %v7232_v0  ;;  %v8620_v26 = vld [vmem:[#allocation11 + $0x90] sm:$0xff] }
 0x81c   :  { %6821 = vmatprep.subr.mxu1 %v7232_v0  ;;  %6759 = vmatmul.mubr.msk.f32.vlgmr.msra.gmra.mxu0 %vm3259_vm11, %v3256_v47 }
 0x81d   :  { %6785 = vmatpush3.msra.mxu0 %v8266_v6  ;;  %6822 = vmatpush3.msra.mxu1 %v8381_v28  ;;  %v8630_v28 = vld [vmem:[#allocation11 + $0x80] sm:$0xff] }
 0x81e   :  { %6786 = vmatprep.subr.mxu0 %v7232_v0  ;;  %6823 = vmatprep.subr.mxu1 %v7232_v0 }
 0x81f   :  { %6787 = vmatpush3.msra.mxu0 %v8272_v8  ;;  %6824 = vmatpush3.msra.mxu1 %v8395_v30  ;;  %v8638_v30 = vld [vmem:[#allocation11 + $0x70] sm:$0xff] }
 0x820   :  { %6788 = vmatprep.subr.mxu0 %v7232_v0  ;;  %6825 = vmatprep.subr.mxu1 %v7232_v0 }
 0x821   :  { %6789 = vmatpush3.msra.mxu0 %v8290_v12  ;;  %6826 = vmatpush3.msra.mxu1 %v8404_v31  ;;  %v8642_v31 = vld [vmem:[#allocation11 + $0x68] sm:$0xff] }
 0x822   :  { %6790 = vmatprep.subr.mxu0 %v7232_v0  ;;  %6828 = vmatmul.mubr.msk.f32.vlgmr.msra.gmra.mxu1 %vm107_vm3, %v3423_v40 }
 0x823   :  { %6791 = vmatpush3.msra.mxu0 %v8304_v14  ;;  %6804 = vmatprep.mubr.msk.f32.mxu0 %vm7233_vm0, %v7232_v0  ;;  %v8574_v14 = vld [vmem:[#allocation11 + $0x48] sm:$0xff] }
 0x824   :  { %6792 = vmatprep.subr.mxu0 %v7232_v0  ;;  %6863 = vmatprep.subr.mxu1 %v7232_v0 }
 0x825   :  { %6793 = vmatpush3.msra.mxu0 %v8318_v16  ;;  %6883 = vmatprep.mubr.msk.f32.mxu1 %vm7233_vm0, %v7232_v0  ;;  %v8583_v16 = vld [vmem:[#allocation11 + $0x38] sm:$0xff] }
 0x826   :  { %6794 = vmatprep.subr.mxu0 %v7232_v0  ;;  %6864 = vmatpush3.msra.mxu1 %v8509_v49 }
 0x827   :  { %6795 = vmatpush3.msra.mxu0 %v8334_v20  ;;  %6865 = vmatprep.subr.mxu1 %v7232_v0  ;;  %v8599_v20 = vld [vmem:[#allocation11 + $0x18] sm:$0xff] }
 0x828   :  { %6796 = vmatprep.subr.mxu0 %v7232_v0  ;;  %6866 = vmatpush3.msra.mxu1 %v8513_v50 }
 0x829   :  { %6797 = vmatpush3.msra.mxu0 %v8348_v23  ;;  %6867 = vmatprep.subr.mxu1 %v7232_v0  ;;  %v8611_v23 = vld [vmem:[#allocation11] sm:$0xff] }
 0x82a   :  { %6798 = vmatprep.subr.mxu0 %v7232_v0  ;;  %6868 = vmatpush3.msra.mxu1 %v8519_v51 }
 0x82b   :  { %6799 = vmatpush3.msra.mxu0 %v8362_v25  ;;  %6869 = vmatprep.subr.mxu1 %v7232_v0 }
 0x82c   :  { %6800 = vmatprep.subr.mxu0 %v7232_v0  ;;  %6870 = vmatpush3.msra.mxu1 %v8523_v52 }
 0x82d   :  { %6801 = vmatpush3.msra.mxu0 %v8376_v27  ;;  %6871 = vmatprep.subr.mxu1 %v7232_v0  ;;  %v8626_v27 = vld [vmem:[#allocation11 + $0x88] sm:$0xff] }
 0x82e   :  { %6802 = vmatprep.subr.mxu0 %v7232_v0  ;;  %6872 = vmatpush3.msra.mxu1 %v8527_v53 }
 0x82f   :  { %6803 = vmatpush3.msra.mxu0 %v8390_v29  ;;  %6873 = vmatprep.subr.mxu1 %v7232_v0  ;;  %v8634_v29 = vld [vmem:[#allocation11 + $0x78] sm:$0xff] }
 0x830   :  { %6805 = vmatmul.mubr.msk.f32.vlgmr.msra.gmra.mxu0 %vm107_vm3, %v3424_v48  ;;  %6830 = vmatprep.subr.mxu0 %v7232_v0 }
 0x831   :  { %6832 = vmatprep.mubr.msk.f32.mxu0 %vm7233_vm0, %v7232_v0  ;;  %6874 = vmatpush3.msra.mxu1 %v8531_v54 }
 0x832   :  { %6875 = vmatprep.subr.mxu1 %v7232_v0 }
 0x833   :  { %6876 = vmatpush3.msra.mxu1 %v8535_v55 }
 0x834   :  { %6877 = vmatprep.subr.mxu1 %v7232_v0 }
 0x835   :  { %6878 = vmatpush3.msra.mxu1 %v8537_v56 }
 0x836   :  { %6879 = vmatprep.subr.mxu1 %v7232_v0 }
 0x837   :  { %6880 = vmatpush3.msra.mxu1 %v8541_v57 }
 0x838   :  { %6881 = vmatprep.subr.mxu1 %v7232_v0 }
 0x839   :  { %6882 = vmatpush3.msra.mxu1 %v8545_v58 }
 0x83a   :  { %6909 = vmatprep.subr.mxu1 %v7232_v0 }
 0x8cd   :  { %v3504_v59 = vpop.f32.mrf.mxu1 }
 0x8cf   :  { %v6783_v60 = vpop.f32.mrf.mxu1 }
 0x8d0   :  { %v8806_v60 = vld [vmem:[%s9128_s16 + $0xb0] sm:$0xff] }
 0x8d8   :  { %v3333_v61 = vpop.f32.mrf.mxu0 }
 0x8da   :  { %v6755_v62 = vpop.f32.mrf.mxu0 }
 0x8db   :  { %v8822_v62 = vld [vmem:[%s9128_s16 + $0xa0] sm:$0xff] }
 0x8dc   :  { %v3409_v63 = vpop.f32.mrf.mxu0 }
 0x8dd   :  { %v3410_v2 = vadd.f32 %v3409_v63, %v3333_v61  ;;  %v8815_v61 = vld [vmem:[%s9128_s16 + $0xa8] sm:$0xff] }
 0x8de   :  { %v6760_v3 = vpop.f32.mrf.mxu0 }
 0x8df   :  { %v3420_v4 = vadd.f32 %v8554_v1, %v3410_v2 }
 0x8e1   :  { %v3421_v5 = vmax.f32 %v3420_v4, 0.0 }
 0x8e2   :  { %v3667_v6 = vpop.f32.mrf.mxu1 }
 0x8e3   :  { %3422 = vst.msk [vmem:[#allocation5] sm:$0xf] %vm1540_vm5, %v3421_v5  ;;  %v8830_v5 = vld [vmem:[%s9127_s15] ss:$0 sm:$0xff] }
 0x8e4   :  { %v6829_v7 = vpop.f32.mrf.mxu1 }
 0x8ea   :  { %v3837_v8 = vld [vmem:[#allocation5 + $0x1] sm:$0xf] }
 0x8eb   :  { %6884 = vmatmul.mubr.msk.f32.vlgmr.msra.gmra.mxu1 %vm107_vm3, %v3837_v8  ;;  %v3836_v25 = vld [vmem:[#allocation5] sm:$0xf] }
 0x8ec   :  { %6911 = vmatprep.mubr.msk.f32.mxu1 %vm7233_vm0, %v7232_v0 }
 0x8f0   :  { %v3597_v9 = vpop.f32.mrf.mxu0 }
 0x8f1   :  { %v3668_v10 = vadd.f32 %v3667_v6, %v3597_v9 }
 0x8f2   :  { %v6806_v12 = vpop.f32.mrf.mxu0 }
 0x8f3   :  { %6831 = vmatpush3.msk.msra.mxu0 %vm3263_vm10, %v3668_v10 }
 0x8f4   :  { %6833 = vmatmul.mubr.msk.f32.vlgmr.msra.gmra.mxu0 %vm3259_vm11, %v5722_v11  ;;  %6835 = vmatprep.subr.mxu0 %v7232_v0 }
 0x8f5   :  { %6836 = vmatpush3.msk.msra.mxu0 %vm3263_vm10, %v3504_v59  ;;  %6837 = vmatprep.mubr.msk.f32.mxu0 %vm7233_vm0, %v7232_v0  ;;  %v8800_v59 = vld [vmem:[%s9128_s16 + $0xb8] sm:$0xff] }
 0x8f6   :  { %6840 = vmatprep.subr.mxu0 %v7232_v0 }
 0x8f8   :  { %6838 = vmatmul.mubr.msk.f32.vlgmr.msra.gmra.mxu0 %vm3259_vm11, %v3671_v13 }
 0x8f9   :  { %6841 = vmatpush3.msra.mxu0 %v8574_v14  ;;  %6860 = vmatprep.mubr.msk.f32.mxu0 %vm7233_vm0, %v7232_v0 }
 0x8fa   :  { %6842 = vmatprep.subr.mxu0 %v7232_v0 }
 0x8fb   :  { %6843 = vmatpush3.msra.mxu0 %v8577_v15 }
 0x8fc   :  { %6844 = vmatprep.subr.mxu0 %v7232_v0 }
 0x8fd   :  { %6845 = vmatpush3.msra.mxu0 %v8583_v16 }
 0x8fe   :  { %6846 = vmatprep.subr.mxu0 %v7232_v0 }
 0x8ff   :  { %6847 = vmatpush3.msra.mxu0 %v8587_v17 }
 0x900   :  { %6848 = vmatprep.subr.mxu0 %v7232_v0 }
 0x901   :  { %6849 = vmatpush3.msra.mxu0 %v8591_v18 }
 0x902   :  { %6850 = vmatprep.subr.mxu0 %v7232_v0 }
 0x903   :  { %6851 = vmatpush3.msra.mxu0 %v8595_v19 }
 0x904   :  { %6852 = vmatprep.subr.mxu0 %v7232_v0 }
 0x905   :  { %6853 = vmatpush3.msra.mxu0 %v8599_v20 }
 0x906   :  { %6854 = vmatprep.subr.mxu0 %v7232_v0 }
 0x907   :  { %6855 = vmatpush3.msra.mxu0 %v8603_v21 }
 0x908   :  { %6856 = vmatprep.subr.mxu0 %v7232_v0 }
 0x909   :  { %6857 = vmatpush3.msra.mxu0 %v8607_v22 }
 0x90a   :  { %6858 = vmatprep.subr.mxu0 %v7232_v0 }
 0x90b   :  { %6859 = vmatpush3.msra.mxu0 %v8611_v23 }
 0x90c   :  { %6861 = vmatmul.mubr.msk.f32.vlgmr.msra.gmra.mxu0 %vm107_vm3, %v3836_v25  ;;  %6886 = vmatprep.subr.mxu0 %v7232_v0 }
 0x90d   :  { %6887 = vmatpush3.msra.mxu0 %v8615_v24  ;;  %6906 = vmatprep.mubr.msk.f32.mxu0 %vm7233_vm0, %v7232_v0 }
 0x90e   :  { %6888 = vmatprep.subr.mxu0 %v7232_v0 }
 0x90f   :  { %6889 = vmatpush3.msra.mxu0 %v8620_v26 }
 0x910   :  { %6890 = vmatprep.subr.mxu0 %v7232_v0 }
 0x911   :  { %6891 = vmatpush3.msra.mxu0 %v8626_v27 }
 0x912   :  { %6892 = vmatprep.subr.mxu0 %v7232_v0 }
 0x913   :  { %6893 = vmatpush3.msra.mxu0 %v8630_v28 }
 0x914   :  { %6894 = vmatprep.subr.mxu0 %v7232_v0 }
 0x915   :  { %6895 = vmatpush3.msra.mxu0 %v8634_v29 }
 0x916   :  { %6896 = vmatprep.subr.mxu0 %v7232_v0 }
 0x917   :  { %6897 = vmatpush3.msra.mxu0 %v8638_v30 }
 0x918   :  { %6898 = vmatprep.subr.mxu0 %v7232_v0 }
 0x919   :  { %6899 = vmatpush3.msra.mxu0 %v8642_v31 }
 0x91a   :  { %6900 = vmatprep.subr.mxu0 %v7232_v0 }
 0x91b   :  { %6901 = vmatpush3.msra.mxu0 %v8646_v32 }
 0x91c   :  { %6902 = vmatprep.subr.mxu0 %v7232_v0 }
 0x91d   :  { %6903 = vmatpush3.msra.mxu0 %v8650_v33 }
 0x91e   :  { %6904 = vmatprep.subr.mxu0 %v7232_v0 }
 0x91f   :  { %6905 = vmatpush3.msra.mxu0 %v8654_v34 }
 0x920   :  { %6907 = vmatmul.mubr.msk.f32.vlgmr.msra.gmra.mxu0 %vm107_vm3, %v3836_v25  ;;  %6942 = vmatprep.subr.mxu0 %v7232_v0  ;;  %v8911_v25 = vld [vmem:[%s9128_s16] sm:$0xff] }
 0x921   :  { %6943 = vmatpush3.msra.mxu0 %v8509_v49  ;;  %6962 = vmatprep.mubr.msk.f32.mxu0 %vm7233_vm0, %v7232_v0  ;;  %v8691_v49 = vld [vmem:[%s9126_s14 + $0x8] sm:$0xff] }
 0x922   :  { %6944 = vmatprep.subr.mxu0 %v7232_v0 }
 0x923   :  { %6945 = vmatpush3.msra.mxu0 %v8513_v50 }
 0x924   :  { %6946 = vmatprep.subr.mxu0 %v7232_v0 }
 0x925   :  { %6947 = vmatpush3.msra.mxu0 %v8519_v51  ;;  %v8703_v51 = vld [vmem:[%s9126_s14] sm:$0xff] }
 0x926   :  { %6948 = vmatprep.subr.mxu0 %v7232_v0 }
 0x927   :  { %6949 = vmatpush3.msra.mxu0 %v8523_v52 }
 0x928   :  { %6950 = vmatprep.subr.mxu0 %v7232_v0 }
 0x929   :  { %6951 = vmatpush3.msra.mxu0 %v8527_v53  ;;  %v8759_v53 = vld [vmem:[%s9128_s16 + $0xe8] sm:$0xff] }
 0x92a   :  { %6952 = vmatprep.subr.mxu0 %v7232_v0 }
 0x92b   :  { %6953 = vmatpush3.msra.mxu0 %v8531_v54  ;;  %v8766_v54 = vld [vmem:[%s9128_s16 + $0xe0] sm:$0xff] }
 0x92c   :  { %6954 = vmatprep.subr.mxu0 %v7232_v0 }
 0x92d   :  { %6955 = vmatpush3.msra.mxu0 %v8535_v55  ;;  %v8773_v55 = vld [vmem:[%s9128_s16 + $0xd8] sm:$0xff] }
 0x92e   :  { %6956 = vmatprep.subr.mxu0 %v7232_v0 }
 0x92f   :  { %6957 = vmatpush3.msra.mxu0 %v8537_v56  ;;  %v8780_v56 = vld [vmem:[%s9128_s16 + $0xd0] sm:$0xff] }
 0x930   :  { %6958 = vmatprep.subr.mxu0 %v7232_v0 }
 0x931   :  { %6959 = vmatpush3.msra.mxu0 %v8541_v57  ;;  %v8787_v57 = vld [vmem:[%s9128_s16 + $0xc8] sm:$0xff] }
 0x932   :  { %6960 = vmatprep.subr.mxu0 %v7232_v0 }
 0x933   :  { %6961 = vmatpush3.msra.mxu0 %v8545_v58  ;;  %v8794_v58 = vld [vmem:[%s9128_s16 + $0xc0] sm:$0xff] }
 0x934   :  { %6988 = vmatprep.subr.mxu0 %v7232_v0 }
 0x9ab   :  { %v4012_v35 = vpop.f32.mrf.mxu1 }
 0x9ad   :  { %v6885_v36 = vpop.f32.mrf.mxu1 }
 0x9ae   :  { %v8984_v36 = vld [vmem:[%s9128_s16 + $0x50] sm:$0xff] }
 0x9b4   :  { %v3745_v37 = vpop.f32.mrf.mxu0 }
 0x9b6   :  { %v6834_v38 = vpop.f32.mrf.mxu0 }
 0x9b8   :  { %v3821_v39 = vpop.f32.mrf.mxu0 }
 0x9b9   :  { %v3822_v40 = vadd.f32 %v3821_v39, %v3745_v37  ;;  %v5769_v37 = vld [vmem:[%s9129_s17 + $0x10] sm:$0xff] }
 0x9ba   :  { %v6839_v41 = vpop.f32.mrf.mxu0 }
 0x9bb   :  { %v3832_v42 = vadd.f32 %v8554_v1, %v3822_v40 }
 0x9bd   :  { %v3833_v43 = vmax.f32 %v3832_v42, 0.0 }
 0x9bf   :  { %3835 = vst.msk [vmem:[#allocation5 + $0x8] sm:$0xf] %vm1540_vm5, %v3833_v43 }
 0x9c6   :  { %v4252_v44 = vld [vmem:[#allocation5 + $0x9] sm:$0xf] }
 0x9c7   :  { %6963 = vmatmul.mubr.msk.f32.vlgmr.msra.gmra.mxu0 %vm107_vm3, %v4252_v44  ;;  %v4251_v52 = vld [vmem:[#allocation5 + $0x8] sm:$0xf] }
 0x9c8   :  { %6990 = vmatprep.mubr.msk.f32.mxu0 %vm7233_vm0, %v7232_v0 }
 0x9cc   :  { %v3917_v45 = vpop.f32.mrf.mxu0 }
 0x9ce   :  { %v6862_v46 = vpop.f32.mrf.mxu0 }
 0x9e0   :  { %v4082_v47 = vpop.f32.mrf.mxu0 }
 0x9e1   :  { %v4083_v48 = vadd.f32 %v4082_v47, %v4012_v35  ;;  %v8977_v35 = vld [vmem:[%s9128_s16 + $0x58] sm:$0xff] }
 0x9e2   :  { %v6908_v50 = vpop.f32.mrf.mxu0 }
 0x9e3   :  { %6910 = vmatpush3.msk.msra.mxu1 %vm2032_vm6, %v4083_v48 }
 0x9e4   :  { %6912 = vmatmul.mubr.msk.f32.vlgmr.msra.gmra.mxu1 %vm2028_vm7, %v8691_v49  ;;  %6914 = vmatprep.subr.mxu1 %v7232_v0 }
 0x9e5   :  { %6915 = vmatpush3.msk.msra.mxu1 %vm2032_vm6, %v3917_v45  ;;  %6916 = vmatprep.mubr.msk.f32.mxu1 %vm7233_vm0, %v7232_v0 }
 0x9e6   :  { %6919 = vmatprep.subr.mxu1 %v7232_v0 }
 0x9e8   :  { %6917 = vmatmul.mubr.msk.f32.vlgmr.msra.gmra.mxu1 %vm2028_vm7, %v8703_v51 }
 0x9e9   :  { %6920 = vmatpush3.msra.mxu1 %v8574_v14  ;;  %6939 = vmatprep.mubr.msk.f32.mxu1 %vm7233_vm0, %v7232_v0 }
 0x9ea   :  { %6921 = vmatprep.subr.mxu1 %v7232_v0 }
 0x9eb   :  { %6922 = vmatpush3.msra.mxu1 %v8577_v15 }
 0x9ec   :  { %6923 = vmatprep.subr.mxu1 %v7232_v0 }
 0x9ed   :  { %6924 = vmatpush3.msra.mxu1 %v8583_v16  ;;  %v8846_v16 = vld [vmem:[%s9128_s16 + $0x48] sm:$0xff] }
 0x9ee   :  { %6925 = vmatprep.subr.mxu1 %v7232_v0 }
 0x9ef   :  { %6926 = vmatpush3.msra.mxu1 %v8587_v17  ;;  %v8853_v17 = vld [vmem:[%s9128_s16 + $0x40] sm:$0xff] }
 0x9f0   :  { %6927 = vmatprep.subr.mxu1 %v7232_v0 }
 0x9f1   :  { %6928 = vmatpush3.msra.mxu1 %v8591_v18  ;;  %v8862_v18 = vld [vmem:[%s9128_s16 + $0x38] sm:$0xff] }
 0x9f2   :  { %6929 = vmatprep.subr.mxu1 %v7232_v0 }
 0x9f3   :  { %6930 = vmatpush3.msra.mxu1 %v8595_v19  ;;  %v8869_v19 = vld [vmem:[%s9128_s16 + $0x30] sm:$0xff] }
 0x9f4   :  { %6931 = vmatprep.subr.mxu1 %v7232_v0 }
 0x9f5   :  { %6932 = vmatpush3.msra.mxu1 %v8599_v20  ;;  %v8876_v20 = vld [vmem:[%s9128_s16 + $0x28] sm:$0xff] }
 0x9f6   :  { %6933 = vmatprep.subr.mxu1 %v7232_v0 }
 0x9f7   :  { %6934 = vmatpush3.msra.mxu1 %v8603_v21  ;;  %v8883_v21 = vld [vmem:[%s9128_s16 + $0x20] sm:$0xff] }
 0x9f8   :  { %6935 = vmatprep.subr.mxu1 %v7232_v0 }
 0x9f9   :  { %6936 = vmatpush3.msra.mxu1 %v8607_v22  ;;  %v8890_v22 = vld [vmem:[%s9128_s16 + $0x18] sm:$0xff] }
 0x9fa   :  { %6937 = vmatprep.subr.mxu1 %v7232_v0 }
 0x9fb   :  { %6938 = vmatpush3.msra.mxu1 %v8611_v23  ;;  %v8897_v23 = vld [vmem:[%s9128_s16 + $0x10] sm:$0xff] }
 0x9fc   :  { %6940 = vmatmul.mubr.msk.f32.vlgmr.msra.gmra.mxu1 %vm107_vm3, %v4251_v52  ;;  %6965 = vmatprep.subr.mxu1 %v7232_v0 }
 0x9fd   :  { %6966 = vmatpush3.msra.mxu1 %v8615_v24  ;;  %6985 = vmatprep.mubr.msk.f32.mxu1 %vm7233_vm0, %v7232_v0  ;;  %v8904_v24 = vld [vmem:[%s9128_s16 + $0x8] sm:$0xff] }
 0x9fe   :  { %6967 = vmatprep.subr.mxu1 %v7232_v0 }
 0x9ff   :  { %6968 = vmatpush3.msra.mxu1 %v8620_v26  ;;  %v8918_v26 = vld [vmem:[%s9128_s16 + $0x98] sm:$0xff] }
 0xa00   :  { %6969 = vmatprep.subr.mxu1 %v7232_v0 }
 0xa01   :  { %6970 = vmatpush3.msra.mxu1 %v8626_v27 }
 0xa02   :  { %6971 = vmatprep.subr.mxu1 %v7232_v0 }
 0xa03   :  { %6972 = vmatpush3.msra.mxu1 %v8630_v28  ;;  %v8926_v28 = vld [vmem:[%s9128_s16 + $0x90] sm:$0xff] }
 0xa04   :  { %6973 = vmatprep.subr.mxu1 %v7232_v0 }
 0xa05   :  { %6974 = vmatpush3.msra.mxu1 %v8634_v29  ;;  %v8935_v29 = vld [vmem:[%s9128_s16 + $0x88] sm:$0xff] }
 0xa06   :  { %6975 = vmatprep.subr.mxu1 %v7232_v0 }
 0xa07   :  { %6976 = vmatpush3.msra.mxu1 %v8638_v30  ;;  %v8942_v30 = vld [vmem:[%s9128_s16 + $0x80] sm:$0xff] }
 0xa08   :  { %6977 = vmatprep.subr.mxu1 %v7232_v0 }
 0xa09   :  { %6978 = vmatpush3.msra.mxu1 %v8642_v31  ;;  %v8949_v31 = vld [vmem:[%s9128_s16 + $0x78] sm:$0xff] }
 0xa0a   :  { %6979 = vmatprep.subr.mxu1 %v7232_v0 }
 0xa0b   :  { %6980 = vmatpush3.msra.mxu1 %v8646_v32  ;;  %v8956_v32 = vld [vmem:[%s9128_s16 + $0x70] sm:$0xff] }
 0xa0c   :  { %6981 = vmatprep.subr.mxu1 %v7232_v0 }
 0xa0d   :  { %6982 = vmatpush3.msra.mxu1 %v8650_v33  ;;  %v8963_v33 = vld [vmem:[%s9128_s16 + $0x68] sm:$0xff] }
 0xa0e   :  { %6983 = vmatprep.subr.mxu1 %v7232_v0 }
 0xa0f   :  { %6984 = vmatpush3.msra.mxu1 %v8654_v34  ;;  %v8970_v34 = vld [vmem:[%s9128_s16 + $0x60] sm:$0xff] }
 0xa10   :  { %6986 = vmatmul.mubr.msk.f32.vlgmr.msra.gmra.mxu1 %vm107_vm3, %v4251_v52  ;;  %7021 = vmatprep.subr.mxu1 %v7232_v0 }
 0xa11   :  { %7041 = vmatprep.mubr.msk.f32.mxu1 %vm7233_vm0, %v7232_v0  ;;  %7022 = vmatpush3.msra.mxu1 %v8759_v53 }
 0xa12   :  { %7023 = vmatprep.subr.mxu1 %v7232_v0 }
 0xa13   :  { %7024 = vmatpush3.msra.mxu1 %v8766_v54 }
 0xa14   :  { %7025 = vmatprep.subr.mxu1 %v7232_v0 }
 0xa15   :  { %7026 = vmatpush3.msra.mxu1 %v8773_v55 }
 0xa16   :  { %7027 = vmatprep.subr.mxu1 %v7232_v0 }
 0xa17   :  { %7028 = vmatpush3.msra.mxu1 %v8780_v56 }
 0xa18   :  { %7029 = vmatprep.subr.mxu1 %v7232_v0 }
 0xa19   :  { %7030 = vmatpush3.msra.mxu1 %v8787_v57 }
 0xa1a   :  { %7031 = vmatprep.subr.mxu1 %v7232_v0 }
 0xa1b   :  { %7032 = vmatpush3.msra.mxu1 %v8794_v58 }
 0xa1c   :  { %7033 = vmatprep.subr.mxu1 %v7232_v0 }
 0xa1d   :  { %7034 = vmatpush3.msra.mxu1 %v8800_v59 }
 0xa1e   :  { %7035 = vmatprep.subr.mxu1 %v7232_v0 }
 0xa1f   :  { %7036 = vmatpush3.msra.mxu1 %v8806_v60 }
 0xa20   :  { %7037 = vmatprep.subr.mxu1 %v7232_v0 }
 0xa21   :  { %7038 = vmatpush3.msra.mxu1 %v8815_v61 }
 0xa22   :  { %7039 = vmatprep.subr.mxu1 %v7232_v0 }
 0xa23   :  { %7040 = vmatpush3.msra.mxu1 %v8822_v62 }
 0xa87   :  { %v4425_v63 = vpop.f32.mrf.mxu0 }
 0xa89   :  { %v6964_v1 = vpop.f32.mrf.mxu0 }
 0xaa4   :  { %v4161_v2 = vpop.f32.mrf.mxu1 }
 0xaa6   :  { %v6913_v3 = vpop.f32.mrf.mxu1 }
 0xaa8   :  { %v4237_v4 = vpop.f32.mrf.mxu1 }
 0xaa9   :  { %v4238_v6 = vadd.f32 %v4237_v4, %v4161_v2 }
 0xaaa   :  { %v6918_v7 = vpop.f32.mrf.mxu1 }
 0xaab   :  { %v4248_v8 = vadd.f32 %v8830_v5, %v4238_v6 }
 0xaad   :  { %v4249_v9 = vmax.f32 %v4248_v8, 0.0 }
 0xaaf   :  { %4250 = vst.msk [vmem:[#allocation6] sm:$0xff] %vm107_vm3, %v4249_v9 }
 0xab6   :  { %v4665_v10 = vld [vmem:[#allocation6 + $0x1] sm:$0xff] }
 0xab7   :  { %7042 = vmatmul.mubr.msk.f32.vlgmr.msra.gmra.mxu1 %vm107_vm3, %v4665_v10  ;;  %v4664_v27 = vld [vmem:[#allocation6] sm:$0xff] }
 0xab8   :  { %7069 = vmatprep.mubr.msk.f32.mxu1 %vm1055_vm4, %v5769_v37 }
 0xabc   :  { %v4332_v11 = vpop.f32.mrf.mxu1 }
 0xabe   :  { %v6941_v12 = vpop.f32.mrf.mxu1 }
 0xad0   :  { %v4495_v13 = vpop.f32.mrf.mxu1 }
 0xad1   :  { %v4496_v14 = vadd.f32 %v4495_v13, %v4425_v63 }
 0xad2   :  { %v6987_v15 = vpop.f32.mrf.mxu1 }
 0xad3   :  { %6989 = vmatpush3.msk.msra.mxu0 %vm2032_vm6, %v4496_v14 }
 0xad4   :  { %6991 = vmatmul.mubr.msk.f32.vlgmr.msra.gmra.mxu0 %vm2028_vm7, %v8691_v49  ;;  %6993 = vmatprep.subr.mxu0 %v7232_v0 }
 0xad5   :  { %6994 = vmatpush3.msk.msra.mxu0 %vm2032_vm6, %v4332_v11  ;;  %6995 = vmatprep.mubr.msk.f32.mxu0 %vm7233_vm0, %v7232_v0 }
 0xad6   :  { %6998 = vmatprep.subr.mxu0 %v7232_v0 }
 0xad8   :  { %6996 = vmatmul.mubr.msk.f32.vlgmr.msra.gmra.mxu0 %vm2028_vm7, %v8703_v51 }
 0xad9   :  { %6999 = vmatpush3.msra.mxu0 %v8846_v16  ;;  %7018 = vmatprep.mubr.msk.f32.mxu0 %vm7233_vm0, %v7232_v0 }
 0xada   :  { %7000 = vmatprep.subr.mxu0 %v7232_v0 }
 0xadb   :  { %7001 = vmatpush3.msra.mxu0 %v8853_v17 }
 0xadc   :  { %7002 = vmatprep.subr.mxu0 %v7232_v0 }
 0xadd   :  { %7003 = vmatpush3.msra.mxu0 %v8862_v18 }
 0xade   :  { %7004 = vmatprep.subr.mxu0 %v7232_v0 }
 0xadf   :  { %7005 = vmatpush3.msra.mxu0 %v8869_v19 }
 0xae0   :  { %7006 = vmatprep.subr.mxu0 %v7232_v0 }
 0xae1   :  { %7007 = vmatpush3.msra.mxu0 %v8876_v20 }
 0xae2   :  { %7008 = vmatprep.subr.mxu0 %v7232_v0 }
 0xae3   :  { %7009 = vmatpush3.msra.mxu0 %v8883_v21 }
 0xae4   :  { %7010 = vmatprep.subr.mxu0 %v7232_v0 }
 0xae5   :  { %7011 = vmatpush3.msra.mxu0 %v8890_v22 }
 0xae6   :  { %7012 = vmatprep.subr.mxu0 %v7232_v0 }
 0xae7   :  { %7013 = vmatpush3.msra.mxu0 %v8897_v23 }
 0xae8   :  { %7014 = vmatprep.subr.mxu0 %v7232_v0 }
 0xae9   :  { %7015 = vmatpush3.msra.mxu0 %v8904_v24 }
 0xaea   :  { %7016 = vmatprep.subr.mxu0 %v7232_v0 }
 0xaeb   :  { %7017 = vmatpush3.msra.mxu0 %v8911_v25 }
 0xaec   :  { %7019 = vmatmul.mubr.msk.f32.vlgmr.msra.gmra.mxu0 %vm107_vm3, %v4664_v27  ;;  %7044 = vmatprep.subr.mxu0 %v7232_v0 }
 0xaed   :  { %7045 = vmatpush3.msra.mxu0 %v8918_v26  ;;  %7064 = vmatprep.mubr.msk.f32.mxu0 %vm7233_vm0, %v7232_v0 }
 0xaee   :  { %7046 = vmatprep.subr.mxu0 %v7232_v0 }
 0xaef   :  { %7047 = vmatpush3.msra.mxu0 %v8926_v28 }
 0xaf0   :  { %7048 = vmatprep.subr.mxu0 %v7232_v0 }
 0xaf1   :  { %7049 = vmatpush3.msra.mxu0 %v8935_v29 }
 0xaf2   :  { %7050 = vmatprep.subr.mxu0 %v7232_v0 }
 0xaf3   :  { %7051 = vmatpush3.msra.mxu0 %v8942_v30 }
 0xaf4   :  { %7052 = vmatprep.subr.mxu0 %v7232_v0 }
 0xaf5   :  { %7053 = vmatpush3.msra.mxu0 %v8949_v31 }
 0xaf6   :  { %7054 = vmatprep.subr.mxu0 %v7232_v0 }
 0xaf7   :  { %7055 = vmatpush3.msra.mxu0 %v8956_v32 }
 0xaf8   :  { %7056 = vmatprep.subr.mxu0 %v7232_v0 }
 0xaf9   :  { %7057 = vmatpush3.msra.mxu0 %v8963_v33 }
 0xafa   :  { %7058 = vmatprep.subr.mxu0 %v7232_v0 }
 0xafb   :  { %7059 = vmatpush3.msra.mxu0 %v8970_v34 }
 0xafc   :  { %7060 = vmatprep.subr.mxu0 %v7232_v0 }
 0xafd   :  { %7061 = vmatpush3.msra.mxu0 %v8977_v35 }
 0xafe   :  { %7062 = vmatprep.subr.mxu0 %v7232_v0 }
 0xaff   :  { %7063 = vmatpush3.msra.mxu0 %v8984_v36 }
 0xb00   :  { %7065 = vmatmul.mubr.msk.f32.vlgmr.msra.gmra.mxu0 %vm107_vm3, %v4664_v27  ;;  %7100 = vmatprep.subr.mxu0 %v7232_v0 }
 0xb01   :  { %7101 = vmatpush3.msra.mxu0 %v8759_v53  ;;  %7120 = vmatprep.mubr.msk.f32.mxu0 %vm7233_vm0, %v7232_v0  ;;  %v9023_v53 = vld [vmem:[%s9129_s17 + $0x18] sm:$0xff] }
 0xb02   :  { %7102 = vmatprep.subr.mxu0 %v7232_v0 }
 0xb03   :  { %7103 = vmatpush3.msra.mxu0 %v8766_v54  ;;  %v9028_v54 = vld [vmem:[%s9129_s17] sm:$0xff] }
 0xb04   :  { %7104 = vmatprep.subr.mxu0 %v7232_v0 }
 0xb05   :  { %7105 = vmatpush3.msra.mxu0 %v8773_v55  ;;  %v9037_v55 = vld [vmem:[%s9129_s17 + $0x8] sm:$0xff] }
 0xb06   :  { %7106 = vmatprep.subr.mxu0 %v7232_v0 }
 0xb07   :  { %7107 = vmatpush3.msra.mxu0 %v8780_v56 }
 0xb08   :  { %7108 = vmatprep.subr.mxu0 %v7232_v0 }
 0xb09   :  { %7109 = vmatpush3.msra.mxu0 %v8787_v57 }
 0xb0a   :  { %7110 = vmatprep.subr.mxu0 %v7232_v0 }
 0xb0b   :  { %7111 = vmatpush3.msra.mxu0 %v8794_v58 }
 0xb0c   :  { %7112 = vmatprep.subr.mxu0 %v7232_v0 }
 0xb0d   :  { %7113 = vmatpush3.msra.mxu0 %v8800_v59 }
 0xb0e   :  { %7114 = vmatprep.subr.mxu0 %v7232_v0 }
 0xb0f   :  { %7115 = vmatpush3.msra.mxu0 %v8806_v60 }
 0xb10   :  { %7116 = vmatprep.subr.mxu0 %v7232_v0 }
 0xb11   :  { %7117 = vmatpush3.msra.mxu0 %v8815_v61 }
 0xb12   :  { %7118 = vmatprep.subr.mxu0 %v7232_v0 }
 0xb13   :  { %7119 = vmatpush3.msra.mxu0 %v8822_v62  ;;  %v5775_v62 = vld [vmem:[%s9130_s18] ss:$0 sm:$0xff] }
 0xb77   :  { %v4840_v38 = vpop.f32.mrf.mxu1 }
 0xb79   :  { %v7043_v39 = vpop.f32.mrf.mxu1 }
 0xb94   :  { %v4573_v40 = vpop.f32.mrf.mxu0 }
 0xb96   :  { %v6992_v41 = vpop.f32.mrf.mxu0 }
 0xb98   :  { %v4649_v42 = vpop.f32.mrf.mxu0 }
 0xb99   :  { %v4650_v43 = vadd.f32 %v4649_v42, %v4573_v40 }
 0xb9a   :  { %v6997_v44 = vpop.f32.mrf.mxu0 }
 0xb9b   :  { %v4660_v45 = vadd.f32 %v8830_v5, %v4650_v43 }
 0xb9d   :  { %v4661_v46 = vmax.f32 %v4660_v45, 0.0 }
 0xb9f   :  { %4663 = vst.msk [vmem:[#allocation6 + $0x10] sm:$0xff] %vm107_vm3, %v4661_v46 }
 0xba6   :  { %v5095_v47 = vld [vmem:[#allocation6 + $0x11] sm:$0xff] }
 0xba7   :  { %7121 = vmatmul.mubr.msk.f32.vlgmr.msra.gmra.mxu0 %vm107_vm3, %v5095_v47  ;;  %v5094_v56 = vld [vmem:[#allocation6 + $0x10] sm:$0xff] }
 0xba8   :  { %7148 = vmatprep.mubr.msk.f32.mxu0 %vm1055_vm4, %v5769_v37 }
 0xbac   :  { %v4745_v48 = vpop.f32.mrf.mxu0 }
 0xbae   :  { %v7020_v49 = vpop.f32.mrf.mxu0 }
 0xbc0   :  { %v4910_v50 = vpop.f32.mrf.mxu0 }
 0xbc1   :  { %v4911_v51 = vadd.f32 %v4910_v50, %v4840_v38 }
 0xbc2   :  { %v7066_v52 = vpop.f32.mrf.mxu0 }
 0xbc3   :  { %7067 = vmatprep.subr.mxu1 %v4911_v51 }
 0xbc4   :  { %7068 = vmatpush3.msra.mxu1 %v4911_v51 }
 0xbc5   :  { %7070 = vmatmul.mubr.msk.f32.vlgmr.msra.gmra.mxu1 %vm1055_vm4, %v9023_v53  ;;  %7072 = vmatprep.subr.mxu1 %v4745_v48 }
 0xbc6   :  { %7073 = vmatpush3.msra.mxu1 %v4745_v48  ;;  %7074 = vmatprep.mubr.msk.f32.mxu1 %vm1055_vm4, %v9028_v54 }
 0xbc7   :  { %7077 = vmatprep.subr.mxu1 %v7232_v0 }
 0xbc9   :  { %7075 = vmatmul.mubr.msk.f32.vlgmr.msra.gmra.mxu1 %vm1055_vm4, %v9037_v55 }
 0xbca   :  { %7078 = vmatpush3.msra.mxu1 %v8846_v16  ;;  %7097 = vmatprep.mubr.msk.f32.mxu1 %vm7233_vm0, %v7232_v0 }
 0xbcb   :  { %7079 = vmatprep.subr.mxu1 %v7232_v0 }
 0xbcc   :  { %7080 = vmatpush3.msra.mxu1 %v8853_v17 }
 0xbcd   :  { %7081 = vmatprep.subr.mxu1 %v7232_v0 }
 0xbce   :  { %7082 = vmatpush3.msra.mxu1 %v8862_v18 }
 0xbcf   :  { %7083 = vmatprep.subr.mxu1 %v7232_v0 }
 0xbd0   :  { %7084 = vmatpush3.msra.mxu1 %v8869_v19 }
 0xbd1   :  { %7085 = vmatprep.subr.mxu1 %v7232_v0 }
 0xbd2   :  { %7086 = vmatpush3.msra.mxu1 %v8876_v20 }
 0xbd3   :  { %7087 = vmatprep.subr.mxu1 %v7232_v0 }
 0xbd4   :  { %7088 = vmatpush3.msra.mxu1 %v8883_v21 }
 0xbd5   :  { %7089 = vmatprep.subr.mxu1 %v7232_v0 }
 0xbd6   :  { %7090 = vmatpush3.msra.mxu1 %v8890_v22 }
 0xbd7   :  { %7091 = vmatprep.subr.mxu1 %v7232_v0 }
 0xbd8   :  { %7092 = vmatpush3.msra.mxu1 %v8897_v23 }
 0xbd9   :  { %7093 = vmatprep.subr.mxu1 %v7232_v0 }
 0xbda   :  { %7094 = vmatpush3.msra.mxu1 %v8904_v24 }
 0xbdb   :  { %7095 = vmatprep.subr.mxu1 %v7232_v0 }
 0xbdc   :  { %7096 = vmatpush3.msra.mxu1 %v8911_v25 }
 0xbdd   :  { %7098 = vmatmul.mubr.msk.f32.vlgmr.msra.gmra.mxu1 %vm107_vm3, %v5094_v56  ;;  %7123 = vmatprep.subr.mxu1 %v7232_v0 }
 0xbde   :  { %7124 = vmatpush3.msra.mxu1 %v8918_v26  ;;  %7143 = vmatprep.mubr.msk.f32.mxu1 %vm7233_vm0, %v7232_v0 }
 0xbdf   :  { %7125 = vmatprep.subr.mxu1 %v7232_v0 }
 0xbe0   :  { %7126 = vmatpush3.msra.mxu1 %v8926_v28 }
 0xbe1   :  { %7127 = vmatprep.subr.mxu1 %v7232_v0 }
 0xbe2   :  { %7128 = vmatpush3.msra.mxu1 %v8935_v29 }
 0xbe3   :  { %7129 = vmatprep.subr.mxu1 %v7232_v0 }
 0xbe4   :  { %7130 = vmatpush3.msra.mxu1 %v8942_v30 }
 0xbe5   :  { %7131 = vmatprep.subr.mxu1 %v7232_v0 }
 0xbe6   :  { %7132 = vmatpush3.msra.mxu1 %v8949_v31 }
 0xbe7   :  { %7133 = vmatprep.subr.mxu1 %v7232_v0 }
 0xbe8   :  { %7134 = vmatpush3.msra.mxu1 %v8956_v32 }
 0xbe9   :  { %7135 = vmatprep.subr.mxu1 %v7232_v0 }
 0xbea   :  { %7136 = vmatpush3.msra.mxu1 %v8963_v33 }
 0xbeb   :  { %7137 = vmatprep.subr.mxu1 %v7232_v0 }
 0xbec   :  { %7138 = vmatpush3.msra.mxu1 %v8970_v34 }
 0xbed   :  { %7139 = vmatprep.subr.mxu1 %v7232_v0 }
 0xbee   :  { %7140 = vmatpush3.msra.mxu1 %v8977_v35 }
 0xbef   :  { %7141 = vmatprep.subr.mxu1 %v7232_v0 }
 0xbf0   :  { %7142 = vmatpush3.msra.mxu1 %v8984_v36 }
 0xbf1   :  { %7144 = vmatmul.mubr.msk.f32.vlgmr.msra.gmra.mxu1 %vm107_vm3, %v5094_v56 }
 0xc67   :  { %v5268_v57 = vpop.f32.mrf.mxu0 }
 0xc69   :  { %v7122_v58 = vpop.f32.mrf.mxu0 }
 0xc85   :  { %v7071_v59 = vpop.f32.mrf.mxu1 }
 0xc87   :  { %v4991_v60 = vpop.f32.mrf.mxu1 }
 0xc89   :  { %v7076_v61 = vpop.f32.mrf.mxu1 }
 0xc8a   :  { %v5078_v63 = vadd.f32 %v7076_v61, %v7071_v59 }
 0xc8b   :  { %v5072_v1 = vpop.f32.mrf.mxu1 }
 0xc8c   :  { %v5089_v2 = vadd.f32 %v5775_v62, %v5078_v63  ;;  %v5073_v3 = vadd.f32 %v5072_v1, %v4991_v60 }
 0xc8e   :  { %v5091_v4 = vmax.f32 %v5089_v2, 0.0  ;;  %v5088_v5 = vadd.f32 %v5775_v62, %v5073_v3 }
 0xc90   :  { %5093 = vst.msk [vmem:[%s9131_s19 + $0x8] sm:$0xff] %vm274_vm2, %v5091_v4  ;;  %v5090_v0 = vmax.f32 %v5088_v5, 0.0 }
 0xc92   :  { %5092 = vst.msk [vmem:[%s9131_s19] sm:$0xff] %vm274_vm2, %v5090_v0 }
 0xc9d   :  { %v5175_v6 = vpop.f32.mrf.mxu1 }
 0xc9f   :  { %v7099_v7 = vpop.f32.mrf.mxu1 }
 0xcb1   :  { %v5338_v8 = vpop.f32.mrf.mxu1 }
 0xcb2   :  { %v5339_v9 = vadd.f32 %v5338_v8, %v5268_v57 }
 0xcb3   :  { %v7145_v10 = vpop.f32.mrf.mxu1 }
 0xcb4   :  { %7146 = vmatprep.subr.mxu0 %v5339_v9 }
 0xcb5   :  { %7147 = vmatpush3.msra.mxu0 %v5339_v9 }
 0xcb6   :  { %7149 = vmatmul.mubr.msk.f32.vlgmr.msra.gmra.mxu0 %vm1055_vm4, %v9023_v53  ;;  %7151 = vmatprep.subr.mxu0 %v5175_v6 }
 0xcb7   :  { %7152 = vmatpush3.msra.mxu0 %v5175_v6  ;;  %7153 = vmatprep.mubr.msk.f32.mxu0 %vm1055_vm4, %v9028_v54 }
 0xcba   :  { %7154 = vmatmul.mubr.msk.f32.vlgmr.msra.gmra.mxu0 %vm1055_vm4, %v9037_v55 }
 0xd76   :  { %v7150_v11 = vpop.f32.mrf.mxu0 }
 0xd78   :  { %v5418_v12 = vpop.f32.mrf.mxu0 }
 0xd7a   :  { %v7155_v13 = vpop.f32.mrf.mxu0 }
 0xd7b   :  { %v5505_v14 = vadd.f32 %v7155_v13, %v7150_v11 }
 0xd7c   :  { %v5499_v15 = vpop.f32.mrf.mxu0 }
 0xd7d   :  { %v5516_v16 = vadd.f32 %v5775_v62, %v5505_v14  ;;  %v5500_v17 = vadd.f32 %v5499_v15, %v5418_v12 }
 0xd7f   :  { %v5518_v18 = vmax.f32 %v5516_v16, 0.0  ;;  %v5515_v19 = vadd.f32 %v5775_v62, %v5500_v17 }
 0xd81   :  { %5807 = vst.msk [vmem:[%s9131_s19 + $0x18] sm:$0xff] %vm274_vm2, %v5518_v18  ;;  %v5517_v20 = vmax.f32 %v5515_v19, 0.0 }
 0xd83   :  { %5806 = vst.msk [vmem:[%s9131_s19 + $0x10] sm:$0xff] %vm274_vm2, %v5517_v20 }
 0xd84   :  { %5526 = vsyncpa [#allocation8], 1 }
 0xd85   :  { %5527 = vsyncpa [#allocation10], 1 }

</bundles_post_ra>
